<compile_context>
chip_gen: v6e
topology: v6e:2x2x1
jax: 0.10.0
libtpu: 0.0.40
codegen_flags: <defaults>
</compile_context>

<pallas_src>
import functools

import jax
import jax.numpy as jnp
from jax.experimental import pallas as pl
from jax.experimental.pallas import tpu as pltpu

INPUT_DIM = 28 * 28      # 784
HIDDEN_DIM = 400
LATENT_DIM = 200
Z_DIM = 2

# Lane-aligned (multiple-of-128) padded sizes.
IN_PAD = 896             # 7 * 128
HID_PAD = 512            # 4 * 128
LAT_PAD = 256             # 2 * 128
HEAD_PAD = 128            # packed [mean | logvar | zeros]


def _round_up(x, m):
    return (x + m - 1) // m * m


def _leaky_relu(x, alpha=0.2):
    return jnp.where(x > 0, x, alpha * x)


def _sigmoid_tanh(x):
    # Numerically robust sigmoid that runs in the EUP slot (tanh), not the VALU divide.
    return 0.5 * (jnp.tanh(0.5 * x) + 1.0)


def vae_kernel(x_ref, eps_ref,
               w_e1, b_e1, w_e2, b_e2,
               w_head, b_head,
               w_d1, b_d1, w_d2, b_d2, w_d3, b_d3,
               xhat_ref, head_ref):
    x = x_ref[...]                                             # (TM, IN_PAD) f32

    # ---- encoder: Linear(784,400)+LReLU, Linear(400,200)+LReLU (bf16 MXU, f32 acc) ----
    h = jnp.dot(x.astype(jnp.bfloat16), w_e1[...],
                preferred_element_type=jnp.float32) + b_e1[...]
    h = _leaky_relu(h)
    h = jnp.dot(h.astype(jnp.bfloat16), w_e2[...],
                preferred_element_type=jnp.float32) + b_e2[...]
    h = _leaky_relu(h)                                         # (TM, LAT_PAD)

    # ---- fused mean/logvar head: one (LAT_PAD, HEAD_PAD) dot, packed output ----
    head = jnp.dot(h.astype(jnp.bfloat16), w_head[...],
                   preferred_element_type=jnp.float32) + b_head[...]
    head_ref[...] = head                                       # lane-dense (TM, 128) store

    mean = head[:, 0:Z_DIM]
    logvar = head[:, Z_DIM:2 * Z_DIM]

    # ---- reparameterization (matches the PyTorch code literally: mean + logvar * eps) ----
    z = mean + logvar * eps_ref[...]                           # (TM, Z_DIM) f32

    # ---- decoder layer 1 (K=2): VPU outer-product instead of an MXU dot ----
    wd1 = w_d1[...]                                            # (Z_DIM, LAT_PAD) f32
    d = z[:, 0:1] * wd1[0:1, :] + z[:, 1:2] * wd1[1:2, :] + b_d1[...]
    d = _leaky_relu(d)                                         # (TM, LAT_PAD)

    # ---- decoder: Linear(200,400)+LReLU, Linear(400,784)+Sigmoid ----
    d = jnp.dot(d.astype(jnp.bfloat16), w_d2[...],
                preferred_element_type=jnp.float32) + b_d2[...]
    d = _leaky_relu(d)
    logits = jnp.dot(d.astype(jnp.bfloat16), w_d3[...],
                     preferred_element_type=jnp.float32) + b_d3[...]

    xhat_ref[...] = _sigmoid_tanh(logits)                      # lane-dense (TM, IN_PAD) store


def init_params(key):
    """Deterministic PyTorch-style (uniform +/- 1/sqrt(fan_in)) init, unpadded f32."""
    def linear(k, fan_in, fan_out):
        k_w, k_b = jax.random.split(k)
        bound = 1.0 / jnp.sqrt(jnp.float32(fan_in))
        w = jax.random.uniform(k_w, (fan_in, fan_out), jnp.float32, -bound, bound)
        b = jax.random.uniform(k_b, (1, fan_out), jnp.float32, -bound, bound)
        return w, b

    ks = jax.random.split(key, 7)
    w_e1, b_e1 = linear(ks[0], INPUT_DIM, HIDDEN_DIM)
    w_e2, b_e2 = linear(ks[1], HIDDEN_DIM, LATENT_DIM)
    w_mu, b_mu = linear(ks[2], LATENT_DIM, Z_DIM)
    w_lv, b_lv = linear(ks[3], LATENT_DIM, Z_DIM)
    w_d1, b_d1 = linear(ks[4], Z_DIM, LATENT_DIM)
    w_d2, b_d2 = linear(ks[5], LATENT_DIM, HIDDEN_DIM)
    w_d3, b_d3 = linear(ks[6], HIDDEN_DIM, INPUT_DIM)
    return (w_e1, b_e1, w_e2, b_e2, w_mu, b_mu, w_lv, b_lv,
            w_d1, b_d1, w_d2, b_d2, w_d3, b_d3)


def pack_params(params):
    """Pad to lane-aligned dims, fuse mu|logvar head, cast MXU weights to bf16 (once)."""
    (w_e1, b_e1, w_e2, b_e2, w_mu, b_mu, w_lv, b_lv,
     w_d1, b_d1, w_d2, b_d2, w_d3, b_d3) = params

    def padw(w, rows, cols, dtype):
        return jnp.pad(w, ((0, rows - w.shape[0]), (0, cols - w.shape[1]))).astype(dtype)

    def padb(b, cols):
        return jnp.pad(b, ((0, 0), (0, cols - b.shape[1]))).astype(jnp.float32)

    w_head = jnp.concatenate([w_mu, w_lv], axis=1)             # (LATENT, 2*Z)
    b_head = jnp.concatenate([b_mu, b_lv], axis=1)             # (1, 2*Z)

    return (
        padw(w_e1, IN_PAD, HID_PAD, jnp.bfloat16), padb(b_e1, HID_PAD),
        padw(w_e2, HID_PAD, LAT_PAD, jnp.bfloat16), padb(b_e2, LAT_PAD),
        padw(w_head, LAT_PAD, HEAD_PAD, jnp.bfloat16), padb(b_head, HEAD_PAD),
        padw(w_d1, Z_DIM, LAT_PAD, jnp.float32), padb(b_d1, LAT_PAD),   # K=2 layer stays f32/VPU
        padw(w_d2, LAT_PAD, HID_PAD, jnp.bfloat16), padb(b_d2, HID_PAD),
        padw(w_d3, HID_PAD, IN_PAD, jnp.bfloat16), padb(b_d3, IN_PAD),
    )


@functools.partial(jax.jit, static_argnames=("tm_max",))
def vae_forward(x, eps, packed_params, *, tm_max=256):
    """Returns (x_hat, mean, logvar) just like VariationalAE.forward."""
    B = x.shape[0]
    Bp = _round_up(B, 8)
    TM = min(tm_max, Bp)
    Bp = _round_up(Bp, TM)

    x_p = jnp.pad(x.astype(jnp.float32), ((0, Bp - B), (0, IN_PAD - INPUT_DIM)))
    eps_p = jnp.pad(eps.astype(jnp.float32), ((0, Bp - B), (0, 0)))

    def row_spec(cols):
        return pl.BlockSpec((TM, cols), lambda i: (i, 0))

    def const_spec(shape):
        return pl.BlockSpec(shape, lambda i: (0, 0))    # VMEM-resident across grid steps

    in_specs = [row_spec(IN_PAD), row_spec(Z_DIM)]
    in_specs += [const_spec(p.shape) for p in packed_params]

    out_shape = (jax.ShapeDtypeStruct((Bp, IN_PAD), jnp.float32),
                 jax.ShapeDtypeStruct((Bp, HEAD_PAD), jnp.float32))
    out_specs = (row_spec(IN_PAD), row_spec(HEAD_PAD))

    xhat_p, head_p = pl.pallas_call(
        vae_kernel,
        grid=(Bp // TM,),
        out_shape=out_shape,
        in_specs=in_specs,
        out_specs=out_specs,
        compiler_params=pltpu.CompilerParams(
            dimension_semantics=("parallel",)),        # shard batch tiles across TCs (v7x)
    )(x_p, eps_p, *packed_params)

    x_hat = xhat_p[:B, :INPUT_DIM]
    mean = head_p[:B, 0:Z_DIM]
    logvar = head_p[:B, Z_DIM:2 * Z_DIM]
    return x_hat, mean, logvar


def vae_reference(x, eps, params, bf16_matmul=True):
    """Pure-JAX reference with the same precision recipe as the kernel."""
    (w_e1, b_e1, w_e2, b_e2, w_mu, b_mu, w_lv, b_lv,
     w_d1, b_d1, w_d2, b_d2, w_d3, b_d3) = params

    def mm(a, w):
        if bf16_matmul:
            return jnp.dot(a.astype(jnp.bfloat16), w.astype(jnp.bfloat16),
                           preferred_element_type=jnp.float32)
        return jnp.dot(a, w)

    h = _leaky_relu(mm(x, w_e1) + b_e1)
    h = _leaky_relu(mm(h, w_e2) + b_e2)
    mean = mm(h, w_mu) + b_mu
    logvar = mm(h, w_lv) + b_lv
    z = mean + logvar * eps
    d = _leaky_relu(jnp.dot(z, w_d1) + b_d1)        # K=2 layer in f32, like the kernel
    d = _leaky_relu(mm(d, w_d2) + b_d2)
    x_hat = _sigmoid_tanh(mm(d, w_d3) + b_d3)
    return x_hat, mean, logvar


if __name__ == "__main__":
    key = jax.random.PRNGKey(0)
    k_x, k_eps, k_params = jax.random.split(key, 3)

    B = 8  # small batch
    x = jax.random.uniform(k_x, (B, INPUT_DIM), jnp.float32)     # MNIST-like in [0, 1]
    eps = jax.random.normal(k_eps, (B, Z_DIM), jnp.float32)      # epsilon for reparameterization
    params = init_params(k_params)
    packed = pack_params(params)

    x_hat, mean, logvar = vae_forward(x, eps, packed)
    jax.block_until_ready((x_hat, mean, logvar))

    # sanity check against a precision-matched pure-JAX reference
    x_hat_ref, mean_ref, logvar_ref = vae_reference(x, eps, params, bf16_matmul=True)
    assert x_hat.shape == (B, INPUT_DIM) and mean.shape == (B, Z_DIM) and logvar.shape == (B, Z_DIM)
    assert jnp.allclose(x_hat, x_hat_ref, atol=5e-3, rtol=5e-3)
    assert jnp.allclose(mean, mean_ref, atol=5e-3, rtol=5e-3)
    assert jnp.allclose(logvar, logvar_ref, atol=5e-3, rtol=5e-3)

    # TODO(synk): z = mean + logvar * eps reproduces the PyTorch module literally
    # (standard VAE would use mean + exp(0.5*logvar) * eps).

    print("KERNEL_OK")
</pallas_src>

<mosaic_0001>
module attributes {stable_mosaic.version = 11 : i64} {
  func.func @vae_kernel(%arg0: i32, %arg1: memref<8x896xf32, #tpu.memory_space<vmem>>, %arg2: memref<8x2xf32, #tpu.memory_space<vmem>>, %arg3: memref<896x512xbf16, #tpu.memory_space<vmem>>, %arg4: memref<1x512xf32, #tpu.memory_space<vmem>>, %arg5: memref<512x256xbf16, #tpu.memory_space<vmem>>, %arg6: memref<1x256xf32, #tpu.memory_space<vmem>>, %arg7: memref<256x128xbf16, #tpu.memory_space<vmem>>, %arg8: memref<1x128xf32, #tpu.memory_space<vmem>>, %arg9: memref<2x256xf32, #tpu.memory_space<vmem>>, %arg10: memref<1x256xf32, #tpu.memory_space<vmem>>, %arg11: memref<256x512xbf16, #tpu.memory_space<vmem>>, %arg12: memref<1x512xf32, #tpu.memory_space<vmem>>, %arg13: memref<512x896xbf16, #tpu.memory_space<vmem>>, %arg14: memref<1x896xf32, #tpu.memory_space<vmem>>, %arg15: memref<8x896xf32, #tpu.memory_space<vmem>>, %arg16: memref<8x128xf32, #tpu.memory_space<vmem>>) attributes {dimension_semantics = [#tpu.dimension_semantics<parallel>], iteration_bounds = array<i64: 1>, scalar_prefetch = 0 : i64, scratch_operands = 0 : i64, tpu.core_type = #tpu.core_type<tc>, window_params = [{transform_indices = @transform_0, window_bounds = array<i64: 8, 896>}, {transform_indices = @transform_1, window_bounds = array<i64: 8, 2>}, {pipeline_mode = #tpu.pipeline_mode<synchronous>, transform_indices = @transform_2, window_bounds = array<i64: 896, 512>}, {pipeline_mode = #tpu.pipeline_mode<synchronous>, transform_indices = @transform_3, window_bounds = array<i64: 1, 512>}, {pipeline_mode = #tpu.pipeline_mode<synchronous>, transform_indices = @transform_4, window_bounds = array<i64: 512, 256>}, {pipeline_mode = #tpu.pipeline_mode<synchronous>, transform_indices = @transform_5, window_bounds = array<i64: 1, 256>}, {pipeline_mode = #tpu.pipeline_mode<synchronous>, transform_indices = @transform_6, window_bounds = array<i64: 256, 128>}, {pipeline_mode = #tpu.pipeline_mode<synchronous>, transform_indices = @transform_7, window_bounds = array<i64: 1, 128>}, {pipeline_mode = #tpu.pipeline_mode<synchronous>, transform_indices = @transform_8, window_bounds = array<i64: 2, 256>}, {pipeline_mode = #tpu.pipeline_mode<synchronous>, transform_indices = @transform_9, window_bounds = array<i64: 1, 256>}, {pipeline_mode = #tpu.pipeline_mode<synchronous>, transform_indices = @transform_10, window_bounds = array<i64: 256, 512>}, {pipeline_mode = #tpu.pipeline_mode<synchronous>, transform_indices = @transform_11, window_bounds = array<i64: 1, 512>}, {pipeline_mode = #tpu.pipeline_mode<synchronous>, transform_indices = @transform_12, window_bounds = array<i64: 512, 896>}, {pipeline_mode = #tpu.pipeline_mode<synchronous>, transform_indices = @transform_13, window_bounds = array<i64: 1, 896>}, {transform_indices = @transform_14, window_bounds = array<i64: 8, 896>}, {transform_indices = @transform_15, window_bounds = array<i64: 8, 128>}]} {
    %c0 = arith.constant 0 : index
    %c0_0 = arith.constant 0 : index
    %0 = vector.load %arg1[%c0, %c0_0] : memref<8x896xf32, #tpu.memory_space<vmem>>, vector<8x896xf32>
    %1 = arith.truncf %0 : vector<8x896xf32> to vector<8x896xbf16>
    %c0_1 = arith.constant 0 : index
    %c0_2 = arith.constant 0 : index
    %2 = vector.load %arg3[%c0_1, %c0_2] : memref<896x512xbf16, #tpu.memory_space<vmem>>, vector<896x512xbf16>
    %cst = arith.constant dense<0.000000e+00> : vector<8x512xf32>
    %3 = tpu.matmul %1, %2, %cst {dimension_numbers = #tpu.dot_dimension_numbers<[1], [0], [0], [1], [0, 0, 1, 1], [], []>} : vector<8x896xbf16>, vector<896x512xbf16>, vector<8x512xf32> -> vector<8x512xf32>
    %c0_3 = arith.constant 0 : index
    %c0_4 = arith.constant 0 : index
    %4 = vector.load %arg4[%c0_3, %c0_4] : memref<1x512xf32, #tpu.memory_space<vmem>>, vector<1x512xf32>
    %5 = vector.broadcast %4 : vector<1x512xf32> to vector<8x512xf32>
    %6 = arith.addf %3, %5 : vector<8x512xf32>
    %cst_5 = arith.constant 0.000000e+00 : f32
    %7 = vector.broadcast %cst_5 : f32 to vector<8x512xf32>
    %8 = arith.cmpf ogt, %6, %7 : vector<8x512xf32>
    %cst_6 = arith.constant 2.000000e-01 : f32
    %9 = vector.broadcast %cst_6 : f32 to vector<8x512xf32>
    %10 = arith.mulf %9, %6 : vector<8x512xf32>
    %11 = arith.select %8, %6, %10 : vector<8x512xi1>, vector<8x512xf32>
    %12 = arith.truncf %11 : vector<8x512xf32> to vector<8x512xbf16>
    %c0_7 = arith.constant 0 : index
    %c0_8 = arith.constant 0 : index
    %13 = vector.load %arg5[%c0_7, %c0_8] : memref<512x256xbf16, #tpu.memory_space<vmem>>, vector<512x256xbf16>
    %cst_9 = arith.constant dense<0.000000e+00> : vector<8x256xf32>
    %14 = tpu.matmul %12, %13, %cst_9 {dimension_numbers = #tpu.dot_dimension_numbers<[1], [0], [0], [1], [0, 0, 1, 1], [], []>} : vector<8x512xbf16>, vector<512x256xbf16>, vector<8x256xf32> -> vector<8x256xf32>
    %c0_10 = arith.constant 0 : index
    %c0_11 = arith.constant 0 : index
    %15 = vector.load %arg6[%c0_10, %c0_11] : memref<1x256xf32, #tpu.memory_space<vmem>>, vector<1x256xf32>
    %16 = vector.broadcast %15 : vector<1x256xf32> to vector<8x256xf32>
    %17 = arith.addf %14, %16 : vector<8x256xf32>
    %cst_12 = arith.constant 0.000000e+00 : f32
    %18 = vector.broadcast %cst_12 : f32 to vector<8x256xf32>
    %19 = arith.cmpf ogt, %17, %18 : vector<8x256xf32>
    %cst_13 = arith.constant 2.000000e-01 : f32
    %20 = vector.broadcast %cst_13 : f32 to vector<8x256xf32>
    %21 = arith.mulf %20, %17 : vector<8x256xf32>
    %22 = arith.select %19, %17, %21 : vector<8x256xi1>, vector<8x256xf32>
    %23 = arith.truncf %22 : vector<8x256xf32> to vector<8x256xbf16>
    %c0_14 = arith.constant 0 : index
    %c0_15 = arith.constant 0 : index
    %24 = vector.load %arg7[%c0_14, %c0_15] : memref<256x128xbf16, #tpu.memory_space<vmem>>, vector<256x128xbf16>
    %cst_16 = arith.constant dense<0.000000e+00> : vector<8x128xf32>
    %25 = tpu.matmul %23, %24, %cst_16 {dimension_numbers = #tpu.dot_dimension_numbers<[1], [0], [0], [1], [0, 0, 1, 1], [], []>} : vector<8x256xbf16>, vector<256x128xbf16>, vector<8x128xf32> -> vector<8x128xf32>
    %c0_17 = arith.constant 0 : index
    %c0_18 = arith.constant 0 : index
    %26 = vector.load %arg8[%c0_17, %c0_18] : memref<1x128xf32, #tpu.memory_space<vmem>>, vector<1x128xf32>
    %27 = vector.broadcast %26 : vector<1x128xf32> to vector<8x128xf32>
    %28 = arith.addf %25, %27 : vector<8x128xf32>
    %c0_19 = arith.constant 0 : index
    %c0_20 = arith.constant 0 : index
    %29 = vector.load %arg16[%c0_19, %c0_20] : memref<8x128xf32, #tpu.memory_space<vmem>>, vector<8x128xf32>
    tpu.vector_store %arg16[%c0_19, %c0_20], %28 {strides = array<i32>} : memref<8x128xf32, #tpu.memory_space<vmem>>, vector<8x128xf32>,
    %30 = vector.extract_strided_slice %28 {offsets = [0, 0], sizes = [8, 2], strides = [1, 1]} : vector<8x128xf32> to vector<8x2xf32>
    %31 = vector.extract_strided_slice %28 {offsets = [0, 2], sizes = [8, 2], strides = [1, 1]} : vector<8x128xf32> to vector<8x2xf32>
    %c0_21 = arith.constant 0 : index
    %c0_22 = arith.constant 0 : index
    %32 = vector.load %arg2[%c0_21, %c0_22] : memref<8x2xf32, #tpu.memory_space<vmem>>, vector<8x2xf32>
    %33 = arith.mulf %31, %32 : vector<8x2xf32>
    %34 = arith.addf %30, %33 : vector<8x2xf32>
    %c0_23 = arith.constant 0 : index
    %c0_24 = arith.constant 0 : index
    %35 = vector.load %arg9[%c0_23, %c0_24] : memref<2x256xf32, #tpu.memory_space<vmem>>, vector<2x256xf32>
    %36 = vector.extract_strided_slice %34 {offsets = [0, 0], sizes = [8, 1], strides = [1, 1]} : vector<8x2xf32> to vector<8x1xf32>
    %37 = vector.extract_strided_slice %35 {offsets = [0, 0], sizes = [1, 256], strides = [1, 1]} : vector<2x256xf32> to vector<1x256xf32>
    %38 = vector.broadcast %36 : vector<8x1xf32> to vector<8x256xf32>
    %39 = vector.broadcast %37 : vector<1x256xf32> to vector<8x256xf32>
    %40 = arith.mulf %38, %39 : vector<8x256xf32>
    %41 = vector.extract_strided_slice %34 {offsets = [0, 1], sizes = [8, 1], strides = [1, 1]} : vector<8x2xf32> to vector<8x1xf32>
    %42 = vector.extract_strided_slice %35 {offsets = [1, 0], sizes = [1, 256], strides = [1, 1]} : vector<2x256xf32> to vector<1x256xf32>
    %43 = vector.broadcast %41 : vector<8x1xf32> to vector<8x256xf32>
    %44 = vector.broadcast %42 : vector<1x256xf32> to vector<8x256xf32>
    %45 = arith.mulf %43, %44 : vector<8x256xf32>
    %46 = arith.addf %40, %45 : vector<8x256xf32>
    %c0_25 = arith.constant 0 : index
    %c0_26 = arith.constant 0 : index
    %47 = vector.load %arg10[%c0_25, %c0_26] : memref<1x256xf32, #tpu.memory_space<vmem>>, vector<1x256xf32>
    %48 = vector.broadcast %47 : vector<1x256xf32> to vector<8x256xf32>
    %49 = arith.addf %46, %48 : vector<8x256xf32>
    %cst_27 = arith.constant 0.000000e+00 : f32
    %50 = vector.broadcast %cst_27 : f32 to vector<8x256xf32>
    %51 = arith.cmpf ogt, %49, %50 : vector<8x256xf32>
    %cst_28 = arith.constant 2.000000e-01 : f32
    %52 = vector.broadcast %cst_28 : f32 to vector<8x256xf32>
    %53 = arith.mulf %52, %49 : vector<8x256xf32>
    %54 = arith.select %51, %49, %53 : vector<8x256xi1>, vector<8x256xf32>
    %55 = arith.truncf %54 : vector<8x256xf32> to vector<8x256xbf16>
    %c0_29 = arith.constant 0 : index
    %c0_30 = arith.constant 0 : index
    %56 = vector.load %arg11[%c0_29, %c0_30] : memref<256x512xbf16, #tpu.memory_space<vmem>>, vector<256x512xbf16>
    %cst_31 = arith.constant dense<0.000000e+00> : vector<8x512xf32>
    %57 = tpu.matmul %55, %56, %cst_31 {dimension_numbers = #tpu.dot_dimension_numbers<[1], [0], [0], [1], [0, 0, 1, 1], [], []>} : vector<8x256xbf16>, vector<256x512xbf16>, vector<8x512xf32> -> vector<8x512xf32>
    %c0_32 = arith.constant 0 : index
    %c0_33 = arith.constant 0 : index
    %58 = vector.load %arg12[%c0_32, %c0_33] : memref<1x512xf32, #tpu.memory_space<vmem>>, vector<1x512xf32>
    %59 = vector.broadcast %58 : vector<1x512xf32> to vector<8x512xf32>
    %60 = arith.addf %57, %59 : vector<8x512xf32>
    %cst_34 = arith.constant 0.000000e+00 : f32
    %61 = vector.broadcast %cst_34 : f32 to vector<8x512xf32>
    %62 = arith.cmpf ogt, %60, %61 : vector<8x512xf32>
    %cst_35 = arith.constant 2.000000e-01 : f32
    %63 = vector.broadcast %cst_35 : f32 to vector<8x512xf32>
    %64 = arith.mulf %63, %60 : vector<8x512xf32>
    %65 = arith.select %62, %60, %64 : vector<8x512xi1>, vector<8x512xf32>
    %66 = arith.truncf %65 : vector<8x512xf32> to vector<8x512xbf16>
    %c0_36 = arith.constant 0 : index
    %c0_37 = arith.constant 0 : index
    %67 = vector.load %arg13[%c0_36, %c0_37] : memref<512x896xbf16, #tpu.memory_space<vmem>>, vector<512x896xbf16>
    %cst_38 = arith.constant dense<0.000000e+00> : vector<8x896xf32>
    %68 = tpu.matmul %66, %67, %cst_38 {dimension_numbers = #tpu.dot_dimension_numbers<[1], [0], [0], [1], [0, 0, 1, 1], [], []>} : vector<8x512xbf16>, vector<512x896xbf16>, vector<8x896xf32> -> vector<8x896xf32>
    %c0_39 = arith.constant 0 : index
    %c0_40 = arith.constant 0 : index
    %69 = vector.load %arg14[%c0_39, %c0_40] : memref<1x896xf32, #tpu.memory_space<vmem>>, vector<1x896xf32>
    %70 = vector.broadcast %69 : vector<1x896xf32> to vector<8x896xf32>
    %71 = arith.addf %68, %70 : vector<8x896xf32>
    %cst_41 = arith.constant 5.000000e-01 : f32
    %72 = vector.broadcast %cst_41 : f32 to vector<8x896xf32>
    %73 = arith.mulf %72, %71 : vector<8x896xf32>
    %74 = math.tanh %73 : vector<8x896xf32>
    %cst_42 = arith.constant 1.000000e+00 : f32
    %75 = vector.broadcast %cst_42 : f32 to vector<8x896xf32>
    %76 = arith.addf %74, %75 : vector<8x896xf32>
    %cst_43 = arith.constant 5.000000e-01 : f32
    %77 = vector.broadcast %cst_43 : f32 to vector<8x896xf32>
    %78 = arith.mulf %77, %76 : vector<8x896xf32>
    %c0_44 = arith.constant 0 : index
    %c0_45 = arith.constant 0 : index
    %79 = vector.load %arg15[%c0_44, %c0_45] : memref<8x896xf32, #tpu.memory_space<vmem>>, vector<8x896xf32>
    tpu.vector_store %arg15[%c0_44, %c0_45], %78 {strides = array<i32>} : memref<8x896xf32, #tpu.memory_space<vmem>>, vector<8x896xf32>,
    return
  }
  func.func @transform_0(%arg0: i32) -> (i32, i32) {
    %c0_i32 = arith.constant 0 : i32
    %c0_i32_0 = arith.constant 0 : i32
    return %arg0, %c0_i32 : i32, i32
  }
  func.func @transform_1(%arg0: i32) -> (i32, i32) {
    %c0_i32 = arith.constant 0 : i32
    %c0_i32_0 = arith.constant 0 : i32
    return %arg0, %c0_i32 : i32, i32
  }
  func.func @transform_2(%arg0: i32) -> (i32, i32) {
    %c0_i32 = arith.constant 0 : i32
    %c0_i32_0 = arith.constant 0 : i32
    %c0_i32_1 = arith.constant 0 : i32
    return %c0_i32, %c0_i32_0 : i32, i32
  }
  func.func @transform_3(%arg0: i32) -> (i32, i32) {
    %c0_i32 = arith.constant 0 : i32
    %c0_i32_0 = arith.constant 0 : i32
    %c0_i32_1 = arith.constant 0 : i32
    return %c0_i32, %c0_i32_0 : i32, i32
  }
  func.func @transform_4(%arg0: i32) -> (i32, i32) {
    %c0_i32 = arith.constant 0 : i32
    %c0_i32_0 = arith.constant 0 : i32
    %c0_i32_1 = arith.constant 0 : i32
    return %c0_i32, %c0_i32_0 : i32, i32
  }
  func.func @transform_5(%arg0: i32) -> (i32, i32) {
    %c0_i32 = arith.constant 0 : i32
    %c0_i32_0 = arith.constant 0 : i32
    %c0_i32_1 = arith.constant 0 : i32
    return %c0_i32, %c0_i32_0 : i32, i32
  }
  func.func @transform_6(%arg0: i32) -> (i32, i32) {
    %c0_i32 = arith.constant 0 : i32
    %c0_i32_0 = arith.constant 0 : i32
    %c0_i32_1 = arith.constant 0 : i32
    return %c0_i32, %c0_i32_0 : i32, i32
  }
  func.func @transform_7(%arg0: i32) -> (i32, i32) {
    %c0_i32 = arith.constant 0 : i32
    %c0_i32_0 = arith.constant 0 : i32
    %c0_i32_1 = arith.constant 0 : i32
    return %c0_i32, %c0_i32_0 : i32, i32
  }
  func.func @transform_8(%arg0: i32) -> (i32, i32) {
    %c0_i32 = arith.constant 0 : i32
    %c0_i32_0 = arith.constant 0 : i32
    %c0_i32_1 = arith.constant 0 : i32
    return %c0_i32, %c0_i32_0 : i32, i32
  }
  func.func @transform_9(%arg0: i32) -> (i32, i32) {
    %c0_i32 = arith.constant 0 : i32
    %c0_i32_0 = arith.constant 0 : i32
    %c0_i32_1 = arith.constant 0 : i32
    return %c0_i32, %c0_i32_0 : i32, i32
  }
  func.func @transform_10(%arg0: i32) -> (i32, i32) {
    %c0_i32 = arith.constant 0 : i32
    %c0_i32_0 = arith.constant 0 : i32
    %c0_i32_1 = arith.constant 0 : i32
    return %c0_i32, %c0_i32_0 : i32, i32
  }
  func.func @transform_11(%arg0: i32) -> (i32, i32) {
    %c0_i32 = arith.constant 0 : i32
    %c0_i32_0 = arith.constant 0 : i32
    %c0_i32_1 = arith.constant 0 : i32
    return %c0_i32, %c0_i32_0 : i32, i32
  }
  func.func @transform_12(%arg0: i32) -> (i32, i32) {
    %c0_i32 = arith.constant 0 : i32
    %c0_i32_0 = arith.constant 0 : i32
    %c0_i32_1 = arith.constant 0 : i32
    return %c0_i32, %c0_i32_0 : i32, i32
  }
  func.func @transform_13(%arg0: i32) -> (i32, i32) {
    %c0_i32 = arith.constant 0 : i32
    %c0_i32_0 = arith.constant 0 : i32
    %c0_i32_1 = arith.constant 0 : i32
    return %c0_i32, %c0_i32_0 : i32, i32
  }
  func.func @transform_14(%arg0: i32) -> (i32, i32) {
    %c0_i32 = arith.constant 0 : i32
    %c0_i32_0 = arith.constant 0 : i32
    return %arg0, %c0_i32 : i32, i32
  }
  func.func @transform_15(%arg0: i32) -> (i32, i32) {
    %c0_i32 = arith.constant 0 : i32
    %c0_i32_0 = arith.constant 0 : i32
    return %arg0, %c0_i32 : i32, i32
  }
}

</mosaic_0001>

<bundles_post_ra>
// kernel: vae_forward.1
= control target key start
LH: loop header
LB: loop body
LE: loop exit
PB: predicated region body
PF: predicated region fallthrough
CT: control target
= control target key end

     0   :  { %21 = vsyncpa [#allocation3], 0  ;;  %s7075_s0 = inlined_call_operand.vmem [shape: f32[8,896], index: 0, kind: input, shape index: {}]   ;;  %s7076_s1 = inlined_call_operand.vmem [shape: f32[8,2], index: 1, kind: input, shape index: {}]   ;;  %s7077_s2 = inlined_call_operand.hbm [shape: bf16[896,512], index: 2, kind: input, shape index: {}]   ;;  %s7078_s3 = inlined_call_operand.hbm [shape: f32[1,512], index: 3, kind: input, shape index: {}]   ;;  %s7079_s4 = inlined_call_operand.hbm [shape: bf16[512,256], index: 4, kind: input, shape index: {}]   ;;  %s7080_s5 = inlined_call_operand.hbm [shape: f32[1,256], index: 5, kind: input, shape index: {}]   ;;  %s7081_s6 = inlined_call_operand.vmem [shape: bf16[256,128], index: 6, kind: input, shape index: {}]   ;;  %s7082_s7 = inlined_call_operand.hbm [shape: f32[1,128], index: 7, kind: input, shape index: {}]   ;;  %s7083_s8 = inlined_call_operand.hbm [shape: f32[2,256], index: 8, kind: input, shape index: {}]   ;;  %s7084_s9 = inlined_call_operand.hbm [shape: f32[1,256], index: 9, kind: input, shape index: {}]   ;;  %s7085_s10 = inlined_call_operand.hbm [shape: bf16[256,512], index: 10, kind: input, shape index: {}]   ;;  %s7086_s11 = inlined_call_operand.vmem [shape: f32[1,512], index: 11, kind: input, shape index: {}]   ;;  %s7087_s12 = inlined_call_operand.hbm [shape: bf16[512,896], index: 12, kind: input, shape index: {}]   ;;  %s7088_s13 = inlined_call_operand.vmem [shape: f32[1,896], index: 13, kind: input, shape index: {}]   ;;  %s7089_s14 = inlined_call_operand.hbm [shape: f32[8,896], index: 14, kind: output, shape index: {0}]   ;;  %s7090_s15 = inlined_call_operand.vmem [shape: f32[8,128], index: 15, kind: output, shape index: {1}]  }
   0x1   :  { %22 = vsyncpa [#allocation6], 0 }
   0x2   :  { %23 = vsyncpa [#allocation9], 0 }
   0x3   :  { %24 = vsyncpa [#allocation12], 0 }
   0x4   :  { %25 = vsyncpa [#allocation15], 0 }
   0x5   :  { %26 = vsyncpa [#allocation4], 0  ;;  %s6740_s18 = smov [#allocation5]   ;;  %s6741_s20 = smov [#allocation8]  }
   0x6   :  { %s49_s19 = sshll.u32 %s6740_s18, 4  ;;  %s71_s21 = sshll.u32 %s6741_s20, 4  ;;  %s50_s19 = int_to_ptr.vmem [resolvable:$true] %s49_s19  ;;  %s72_s21 = int_to_ptr.vmem [resolvable:$true] %s71_s21 }
   0x7   :  { %s6536_s22 = scalar_lea.vmem %s50_s19, 64  ;;  %p6541_p1 = scmp.lt.s32.totalorder %s50_s19, %s50_s19 }
   0x8   :  { %p6537_p0 = scmp.ne.s32.totalorder %s50_s19, %s6536_s22  ;;  %p6542_p2 = scmp.lt.s32.totalorder %s6536_s22, %s6536_s22 }
   0xa   :  { %p6543_p3 = por %p6542_p2, %p6541_p1 }
   0xc   :  { %p6544_p4 = pnand %p6543_p3, %p6537_p0 }
   0xe   :  { %6547 = shalt.err (!%p6544_p4)
}
   0xf   :  { %52 = dma.hbm_to_vmem [thread:$0]  %s7078_s3, 64, %s50_s19, [#allocation6]  }
  0x10   :  { %s6556_s25 = scalar_lea.vmem %s72_s21, 32  ;;  %p6561_p6 = scmp.lt.s32.totalorder %s72_s21, %s72_s21 }
  0x11   :  { %p6557_p5 = scmp.ne.s32.totalorder %s72_s21, %s6556_s25  ;;  %p6562_p7 = scmp.lt.s32.totalorder %s6556_s25, %s6556_s25 }
  0x13   :  { %p6563_p8 = por %p6562_p7, %p6561_p6 }
  0x15   :  { %p6564_p9 = pnand %p6563_p8, %p6557_p5 }
  0x17   :  { %6567 = shalt.err (!%p6564_p9)
}
  0x18   :  { %74 = dma.hbm_to_vmem [thread:$0]  %s7080_s5, 32, %s72_s21, [#allocation9]  }
  0x19   :  { %s6742_s28 = smov [#allocation11]  }
  0x1a   :  { %s93_s29 = sshll.u32 %s6742_s28, 4  ;;  %s94_s29 = int_to_ptr.vmem [resolvable:$true] %s93_s29 }
  0x1b   :  { %s6576_s30 = scalar_lea.vmem %s94_s29, 64  ;;  %p6581_p11 = scmp.lt.s32.totalorder %s94_s29, %s94_s29 }
  0x1c   :  { %p6577_p10 = scmp.ne.s32.totalorder %s94_s29, %s6576_s30  ;;  %p6582_p12 = scmp.lt.s32.totalorder %s6576_s30, %s6576_s30 }
  0x1e   :  { %p6583_p13 = por %p6582_p12, %p6581_p11 }
  0x20   :  { %p6584_p0 = pnand %p6583_p13, %p6577_p10 }
  0x22   :  { %6587 = shalt.err (!%p6584_p0)
}
  0x23   :  { %96 = dma.hbm_to_vmem [thread:$0]  %s7083_s8, 64, %s94_s29, [#allocation12]  }
  0x24   :  { %s6743_s17 = smov [#allocation14]   ;;  %s6744_s19 = smov [#allocation2]  }
  0x25   :  { %s112_s18 = sshll.u32 %s6743_s17, 4  ;;  %s36_s20 = sshll.u32 %s6744_s19, 4  ;;  %s113_s18 = int_to_ptr.vmem [resolvable:$true] %s112_s18  ;;  %s37_s20 = int_to_ptr.vmem [resolvable:$true] %s36_s20 }
  0x26   :  { %s6596_s5 = scalar_lea.vmem %s113_s18, 8192  ;;  %p6601_p2 = scmp.lt.s32.totalorder %s113_s18, %s113_s18 }
  0x27   :  { %p6597_p1 = scmp.ne.s32.totalorder %s113_s18, %s6596_s5  ;;  %p6602_p3 = scmp.lt.s32.totalorder %s6596_s5, %s6596_s5 }
  0x29   :  { %p6603_p4 = por %p6602_p3, %p6601_p2 }
  0x2b   :  { %p6604_p5 = pnand %p6603_p4, %p6597_p1 }
  0x2d   :  { %6607 = shalt.err (!%p6604_p5)
}
  0x2e   :  { %s6745_s21 = smov 256   ;;  %s6746_s22 = smov 16  }
  0x2f   :  { %118 = dma.hbm_to_vmem [thread:$0]  %s7085_s10, 8192, %s113_s18, [#allocation15], %s6745_s21, %s6745_s21, %s6746_s22  }
  0x30   :  { %s6616_s8 = scalar_lea.vmem %s37_s20, 28672  ;;  %p6621_p7 = scmp.lt.s32.totalorder %s37_s20, %s37_s20 }
  0x31   :  { %p6617_p6 = scmp.ne.s32.totalorder %s37_s20, %s6616_s8  ;;  %p6622_p8 = scmp.lt.s32.totalorder %s6616_s8, %s6616_s8 }
  0x33   :  { %p6623_p9 = por %p6622_p8, %p6621_p7 }
  0x35   :  { %p6624_p10 = pnand %p6623_p9, %p6617_p6 }
  0x37   :  { %6627 = shalt.err (!%p6624_p10)
}
  0x38   :  { %42 = dma.hbm_to_vmem [thread:$0]  %s7077_s2, 28672, %s37_s20, [#allocation3], %s6745_s21, %s6745_s21, %s6746_s22  }
  0x39   :  { %s6747_s27 = smov [#allocation7]  }
  0x3a   :  { %s58_s28 = sshll.u32 %s6747_s27, 4  ;;  %s59_s28 = int_to_ptr.vmem [resolvable:$true] %s58_s28 }
  0x3b   :  { %s6636_s29 = scalar_lea.vmem %s59_s28, 8192  ;;  %p6641_p12 = scmp.lt.s32.totalorder %s59_s28, %s59_s28 }
  0x3c   :  { %p6637_p11 = scmp.ne.s32.totalorder %s59_s28, %s6636_s29  ;;  %p6642_p13 = scmp.lt.s32.totalorder %s6636_s29, %s6636_s29 }
  0x3e   :  { %p6643_p0 = por %p6642_p13, %p6641_p12 }
  0x40   :  { %p6644_p1 = pnand %p6643_p0, %p6637_p11 }
  0x42   :  { %6647 = shalt.err (!%p6644_p1)
}
  0x43   :  { %s6748_s10 = smov 128   ;;  %s6749_s30 = smov 8  }
  0x44   :  { %64 = dma.hbm_to_vmem [thread:$0]  %s7079_s4, 8192, %s59_s28, [#allocation6], %s6748_s10, %s6748_s10, %s6749_s30  }
  0x45   :  { %s6750_s17 = smov [#allocation10]   ;;  %s6751_s19 = smov [#allocation13]  }
  0x46   :  { %s83_s18 = sshll.u32 %s6750_s17, 4  ;;  %s103_s2 = sshll.u32 %s6751_s19, 4  ;;  %s84_s18 = int_to_ptr.vmem [resolvable:$true] %s83_s18  ;;  %s104_s2 = int_to_ptr.vmem [resolvable:$true] %s103_s2 }
  0x47   :  { %s6656_s20 = scalar_lea.vmem %s84_s18, 16  ;;  %s6660_s5 = scalar_lea.vmem %s84_s18, 32 }
  0x48   :  { %p6657_p2 = scmp.ne.s32.totalorder %s84_s18, %s6656_s20  ;;  %p6661_p3 = scmp.lt.s32.totalorder %s84_s18, %s84_s18 }
  0x49   :  { %p6662_p4 = scmp.lt.s32.totalorder %s6660_s5, %s6656_s20 }
  0x4b   :  { %p6663_p5 = por %p6662_p4, %p6661_p3 }
  0x4d   :  { %p6664_p6 = pnand %p6663_p5, %p6657_p2 }
  0x4f   :  { %6667 = shalt.err (!%p6664_p6)
}
  0x50   :  { %86 = dma.hbm_to_vmem [thread:$0]  %s7082_s7, 16, %s84_s18, [#allocation9]  }
  0x51   :  { %s6676_s23 = scalar_lea.vmem %s104_s2, 32  ;;  %p6681_p8 = scmp.lt.s32.totalorder %s104_s2, %s104_s2 }
  0x52   :  { %p6677_p7 = scmp.ne.s32.totalorder %s104_s2, %s6676_s23  ;;  %p6682_p9 = scmp.lt.s32.totalorder %s6676_s23, %s6676_s23 }
  0x54   :  { %p6683_p10 = por %p6682_p9, %p6681_p8 }
  0x56   :  { %p6684_p11 = pnand %p6683_p10, %p6677_p7 }
  0x58   :  { %6687 = shalt.err (!%p6684_p11)
}
  0x59   :  { %106 = dma.hbm_to_vmem [thread:$0]  %s7084_s9, 32, %s104_s2, [#allocation12]  }
  0x5a   :  { %s6752_s8 = smov [#allocation16]  }
  0x5b   :  { %s126_s25 = sshll.u32 %s6752_s8, 4  ;;  %s127_s25 = int_to_ptr.vmem [resolvable:$true] %s126_s25 }
  0x5c   :  { %s6696_s26 = scalar_lea.vmem %s127_s25, 28672  ;;  %p6701_p13 = scmp.lt.s32.totalorder %s127_s25, %s127_s25 }
  0x5d   :  { %p6697_p12 = scmp.ne.s32.totalorder %s127_s25, %s6696_s26  ;;  %p6702_p0 = scmp.lt.s32.totalorder %s6696_s26, %s6696_s26 }
  0x5f   :  { %p6703_p1 = por %p6702_p0, %p6701_p13 }
  0x61   :  { %p6704_p2 = pnand %p6703_p1, %p6697_p12 }
  0x63   :  { %6707 = shalt.err (!%p6704_p2)
}
  0x64   :  { %s6753_s7 = smov 448   ;;  %s6754_s27 = smov 28  }
  0x65   :  { %132 = dma.hbm_to_vmem [thread:$0]  %s7087_s12, 28672, %s127_s25, [#allocation15], %s6753_s7, %s6753_s7, %s6754_s27  }
  0x66   :  { %6728 = dma.done.wait [#allocation3], 28672  }
  0x67   :  { %6729 = vsyncadd [#allocation3], 4294938624 }
  0x68   :  { %6730 = dma.done.wait [#allocation6], 8256  }
  0x69   :  { %6731 = vsyncadd [#allocation6], 4294959040 }
  0x6a   :  { %6732 = dma.done.wait [#allocation9], 48  }
  0x6b   :  { %6733 = vsyncadd [#allocation9], 4294967248 }
  0x6c   :  { %6734 = dma.done.wait [#allocation12], 96  }
  0x6d   :  { %6735 = vsyncadd [#allocation12], 4294967200 }
  0x6e   :  { %6736 = dma.done.wait [#allocation15], 36864  }
  0x6f   :  { %6737 = vsyncadd [#allocation15], 4294930432  ;;  %v6755_v0 = vmov 0   ;;  %v5650_v1 = vld [vmem:[#allocation2 + $0xe4] ss:$16 sps:$4 sm:$0xff]   ;;  %v164_v47 = vld [vmem:[%s7075_s0 + $0x8] sm:$0xff] }
  0x70   :  { %5647 = vset.pattern.permute.xlu1 %v6755_v0  ;;  %v5652_v2 = vld [vmem:[#allocation2 + $0x2e4] ss:$16 sps:$4 sm:$0xff]   ;;  %1543 = vmatprep.subr.bf16.mxu0 %v5650_v1  ;;  %v5654_v3 = vld [vmem:[#allocation2 + $0xe0] ss:$16 sps:$4 sm:$0xff]   ;;  %v6871_v50 = vpack.c.bf16 %v164_v47, %v164_v47  ;;  %v166_v51 = vld [vmem:[%s7075_s0 + $0x18] sm:$0xff]  ;;  %s6756_s28 = smov 2  }
  0x71   :  { %v5655_v4 = vld [vmem:[#allocation2 + $0x2e0] ss:$16 sps:$4 sm:$0xff]   ;;  %1584 = vmatprep.subr.bf16.mxu1 %v5652_v2  ;;  %v5656_v5 = vld [vmem:[#allocation2 + $0xc4] ss:$16 sps:$4 sm:$0xff]   ;;  %1544 = vmatpush1.bf16.msra.mxu0 %v5654_v3  ;;  %v6876_v53 = vpack.c.bf16 %v166_v51, %v166_v51  ;;  %s6758_s29 = smov 126  }
  0x72   :  { %1585 = vmatpush1.bf16.msra.mxu1 %v5655_v4  ;;  %v5658_v6 = vld [vmem:[#allocation2 + $0x2c4] ss:$16 sps:$4 sm:$0xff]   ;;  %v5660_v7 = vld [vmem:[#allocation2 + $0xc0] ss:$16 sps:$4 sm:$0xff]   ;;  %1545 = vmatprep.subr.bf16.mxu0 %v5656_v5 }
  0x73   :  { %v5661_v8 = vld [vmem:[#allocation2 + $0x2c0] ss:$16 sps:$4 sm:$0xff]   ;;  %1586 = vmatprep.subr.bf16.mxu1 %v5658_v6  ;;  %v5662_v9 = vld [vmem:[#allocation2 + $0xa4] ss:$16 sps:$4 sm:$0xff]   ;;  %1575 = vmatprep.mubr.bf16.mxu0 %v6871_v50 }
  0x74   :  { %v5664_v10 = vld [vmem:[#allocation2 + $0x2a4] ss:$16 sps:$4 sm:$0xff]   ;;  %v5666_v11 = vld [vmem:[#allocation2 + $0xa0] ss:$16 sps:$4 sm:$0xff]   ;;  %1616 = vmatprep.mubr.bf16.mxu1 %v6876_v53 }
  0x75   :  { %v5667_v12 = vld [vmem:[#allocation2 + $0x2a0] ss:$16 sps:$4 sm:$0xff]   ;;  %1546 = vmatpush1.bf16.msra.mxu0 %v5660_v7  ;;  %v5668_v13 = vld [vmem:[#allocation2 + $0x84] ss:$16 sps:$4 sm:$0xff]  }
  0x76   :  { %1587 = vmatpush1.bf16.msra.mxu1 %v5661_v8  ;;  %1547 = vmatprep.subr.bf16.mxu0 %v5662_v9  ;;  %v5670_v14 = vld [vmem:[#allocation2 + $0x284] ss:$16 sps:$4 sm:$0xff]   ;;  %v5672_v15 = vld [vmem:[#allocation2 + $0x80] ss:$16 sps:$4 sm:$0xff]  }
  0x77   :  { %1588 = vmatprep.subr.bf16.mxu1 %v5664_v10  ;;  %v5673_v16 = vld [vmem:[#allocation2 + $0x280] ss:$16 sps:$4 sm:$0xff]   ;;  %v5674_v17 = vld [vmem:[#allocation2 + $0x64] ss:$16 sps:$4 sm:$0xff]  }
  0x78   :  { %v5676_v18 = vld [vmem:[#allocation2 + $0x264] ss:$16 sps:$4 sm:$0xff]   ;;  %v5678_v19 = vld [vmem:[#allocation2 + $0x60] ss:$16 sps:$4 sm:$0xff]  }
  0x79   :  { %1548 = vmatpush1.bf16.msra.mxu0 %v5666_v11  ;;  %v5679_v20 = vld [vmem:[#allocation2 + $0x260] ss:$16 sps:$4 sm:$0xff]   ;;  %v5680_v21 = vld [vmem:[#allocation2 + $0x44] ss:$16 sps:$4 sm:$0xff]  }
  0x7a   :  { %1589 = vmatpush1.bf16.msra.mxu1 %v5667_v12  ;;  %1549 = vmatprep.subr.bf16.mxu0 %v5668_v13  ;;  %v5682_v22 = vld [vmem:[#allocation2 + $0x244] ss:$16 sps:$4 sm:$0xff]   ;;  %v5684_v23 = vld [vmem:[#allocation2 + $0x40] ss:$16 sps:$4 sm:$0xff]  }
  0x7b   :  { %1590 = vmatprep.subr.bf16.mxu1 %v5670_v14  ;;  %v5685_v24 = vld [vmem:[#allocation2 + $0x240] ss:$16 sps:$4 sm:$0xff]   ;;  %v5686_v25 = vld [vmem:[#allocation2 + $0x24] ss:$16 sps:$4 sm:$0xff]  }
  0x7c   :  { %v5688_v26 = vld [vmem:[#allocation2 + $0x224] ss:$16 sps:$4 sm:$0xff]   ;;  %v5690_v27 = vld [vmem:[#allocation2 + $0x20] ss:$16 sps:$4 sm:$0xff]  }
  0x7d   :  { %1550 = vmatpush1.bf16.msra.mxu0 %v5672_v15  ;;  %v5691_v28 = vld [vmem:[#allocation2 + $0x220] ss:$16 sps:$4 sm:$0xff]   ;;  %v5692_v29 = vld [vmem:[#allocation2 + $0x4] ss:$16 sps:$4 sm:$0xff]  }
  0x7e   :  { %1591 = vmatpush1.bf16.msra.mxu1 %v5673_v16  ;;  %1551 = vmatprep.subr.bf16.mxu0 %v5674_v17  ;;  %v5694_v30 = vld [vmem:[#allocation2 + $0x204] ss:$16 sps:$4 sm:$0xff]   ;;  %v5696_v31 = vld [vmem:[#allocation2] ss:$16 sps:$4 sm:$0xff]  }
  0x7f   :  { %1592 = vmatprep.subr.bf16.mxu1 %v5676_v18  ;;  %v5697_v32 = vld [vmem:[#allocation2 + $0x200] ss:$16 sps:$4 sm:$0xff]   ;;  %v5698_v33 = vld [vmem:[#allocation2 + $0x1e4] ss:$16 sps:$4 sm:$0xff]  }
  0x80   :  { %v5700_v34 = vld [vmem:[#allocation2 + $0x3e4] ss:$16 sps:$4 sm:$0xff]   ;;  %v5702_v35 = vld [vmem:[#allocation2 + $0x1e0] ss:$16 sps:$4 sm:$0xff]  }
  0x81   :  { %1552 = vmatpush1.bf16.msra.mxu0 %v5678_v19  ;;  %v5703_v36 = vld [vmem:[#allocation2 + $0x3e0] ss:$16 sps:$4 sm:$0xff]   ;;  %v5704_v37 = vld [vmem:[#allocation2 + $0x1c4] ss:$16 sps:$4 sm:$0xff]  }
  0x82   :  { %1593 = vmatpush1.bf16.msra.mxu1 %v5679_v20  ;;  %1553 = vmatprep.subr.bf16.mxu0 %v5680_v21  ;;  %v5706_v38 = vld [vmem:[#allocation2 + $0x3c4] ss:$16 sps:$4 sm:$0xff]   ;;  %v5708_v39 = vld [vmem:[#allocation2 + $0x1c0] ss:$16 sps:$4 sm:$0xff]  }
  0x83   :  { %1594 = vmatprep.subr.bf16.mxu1 %v5682_v22  ;;  %v5709_v40 = vld [vmem:[#allocation2 + $0x3c0] ss:$16 sps:$4 sm:$0xff]   ;;  %v5710_v41 = vld [vmem:[#allocation2 + $0x1a4] ss:$16 sps:$4 sm:$0xff]  }
  0x84   :  { %v5712_v42 = vld [vmem:[#allocation2 + $0x3a4] ss:$16 sps:$4 sm:$0xff]   ;;  %v5714_v43 = vld [vmem:[#allocation2 + $0x1a0] ss:$16 sps:$4 sm:$0xff]  }
  0x85   :  { %1554 = vmatpush1.bf16.msra.mxu0 %v5684_v23  ;;  %v5715_v44 = vld [vmem:[#allocation2 + $0x3a0] ss:$16 sps:$4 sm:$0xff]   ;;  %v5716_v45 = vld [vmem:[#allocation2 + $0x184] ss:$16 sps:$4 sm:$0xff]  }
  0x86   :  { %1595 = vmatpush1.bf16.msra.mxu1 %v5685_v24  ;;  %1555 = vmatprep.subr.bf16.mxu0 %v5686_v25  ;;  %v5718_v46 = vld [vmem:[#allocation2 + $0x384] ss:$16 sps:$4 sm:$0xff]   ;;  %v5720_v48 = vld [vmem:[#allocation2 + $0x180] ss:$16 sps:$4 sm:$0xff]  }
  0x87   :  { %1596 = vmatprep.subr.bf16.mxu1 %v5688_v26  ;;  %v5721_v49 = vld [vmem:[#allocation2 + $0x380] ss:$16 sps:$4 sm:$0xff]   ;;  %v5722_v52 = vld [vmem:[#allocation2 + $0x164] ss:$16 sps:$4 sm:$0xff]  }
  0x88   :  { %v5724_v54 = vld [vmem:[#allocation2 + $0x364] ss:$16 sps:$4 sm:$0xff]   ;;  %v5726_v55 = vld [vmem:[#allocation2 + $0x160] ss:$16 sps:$4 sm:$0xff]  }
  0x89   :  { %1556 = vmatpush1.bf16.msra.mxu0 %v5690_v27  ;;  %v5727_v56 = vld [vmem:[#allocation2 + $0x360] ss:$16 sps:$4 sm:$0xff]   ;;  %v5728_v57 = vld [vmem:[#allocation2 + $0x144] ss:$16 sps:$4 sm:$0xff]  }
  0x8a   :  { %1597 = vmatpush1.bf16.msra.mxu1 %v5691_v28  ;;  %1557 = vmatprep.subr.bf16.mxu0 %v5692_v29  ;;  %v5730_v58 = vld [vmem:[#allocation2 + $0x344] ss:$16 sps:$4 sm:$0xff]   ;;  %v5732_v59 = vld [vmem:[#allocation2 + $0x140] ss:$16 sps:$4 sm:$0xff]  }
  0x8b   :  { %1598 = vmatprep.subr.bf16.mxu1 %v5694_v30  ;;  %v5733_v60 = vld [vmem:[#allocation2 + $0x340] ss:$16 sps:$4 sm:$0xff]   ;;  %v5734_v61 = vld [vmem:[#allocation2 + $0x124] ss:$16 sps:$4 sm:$0xff]  }
  0x8c   :  { %v5736_v62 = vld [vmem:[#allocation2 + $0x324] ss:$16 sps:$4 sm:$0xff]   ;;  %v5738_v63 = vld [vmem:[#allocation2 + $0x120] ss:$16 sps:$4 sm:$0xff]  }
  0x8d   :  { %1558 = vmatpush1.bf16.msra.mxu0 %v5696_v31  ;;  %v5739_v1 = vld [vmem:[#allocation2 + $0x320] ss:$16 sps:$4 sm:$0xff]   ;;  %v5740_v2 = vld [vmem:[#allocation2 + $0x104] ss:$16 sps:$4 sm:$0xff]  }
  0x8e   :  { %1599 = vmatpush1.bf16.msra.mxu1 %v5697_v32  ;;  %1559 = vmatprep.subr.bf16.mxu0 %v5698_v33  ;;  %v5742_v3 = vld [vmem:[#allocation2 + $0x304] ss:$16 sps:$4 sm:$0xff]   ;;  %v5744_v4 = vld [vmem:[#allocation2 + $0x100] ss:$16 sps:$4 sm:$0xff]  }
  0x8f   :  { %1600 = vmatprep.subr.bf16.mxu1 %v5700_v34  ;;  %v5745_v5 = vld [vmem:[#allocation2 + $0x300] ss:$16 sps:$4 sm:$0xff]   ;;  %v5748_v8 = vld [vmem:[#allocation2 + $0x4e4] ss:$16 sps:$4 sm:$0xff]  }
  0x90   :  { %v163_v6 = vld [vmem:[%s7075_s0] sm:$0xff]  ;;  %v165_v7 = vld [vmem:[%s7075_s0 + $0x10] sm:$0xff] }
  0x91   :  { %1560 = vmatpush2.bf16.msra.mxu0 %v5702_v35  ;;  %v5751_v9 = vld [vmem:[#allocation2 + $0x6e4] ss:$16 sps:$4 sm:$0xff]   ;;  %v6886_v10 = vpack.c.bf16 %v163_v6, %v163_v6  ;;  %v6888_v11 = vpack.c.bf16 %v165_v7, %v165_v7  ;;  %v5746_v12 = vld [vmem:[#allocation2 + $0x4e0] ss:$16 sps:$4 sm:$0xff]   ;;  %v5827_v7 = vld [vmem:[#allocation2 + $0x48] ss:$16 sps:$4 sm:$0xff]  }
  0x92   :  { %1601 = vmatpush2.bf16.msra.mxu1 %v5703_v36  ;;  %1561 = vmatprep.subr.bf16.mxu0 %v5704_v37  ;;  %v5749_v13 = vld [vmem:[#allocation2 + $0x6e0] ss:$16 sps:$4 sm:$0xff]   ;;  %v5754_v14 = vld [vmem:[#allocation2 + $0x4c4] ss:$16 sps:$4 sm:$0xff]   ;;  %v168_v37 = vld [vmem:[%s7075_s0 + $0x28] sm:$0xff] }
  0x93   :  { %1602 = vmatprep.subr.bf16.mxu1 %v5706_v38  ;;  %v5757_v15 = vld [vmem:[#allocation2 + $0x6c4] ss:$16 sps:$4 sm:$0xff]   ;;  %v5752_v16 = vld [vmem:[#allocation2 + $0x4c0] ss:$16 sps:$4 sm:$0xff]  }
  0x94   :  { %v5755_v17 = vld [vmem:[#allocation2 + $0x6c0] ss:$16 sps:$4 sm:$0xff]   ;;  %v5760_v18 = vld [vmem:[#allocation2 + $0x4a4] ss:$16 sps:$4 sm:$0xff]  }
  0x95   :  { %1562 = vmatpush2.bf16.msra.mxu0 %v5708_v39  ;;  %v5763_v19 = vld [vmem:[#allocation2 + $0x6a4] ss:$16 sps:$4 sm:$0xff]   ;;  %v5758_v20 = vld [vmem:[#allocation2 + $0x4a0] ss:$16 sps:$4 sm:$0xff]  }
  0x96   :  { %1603 = vmatpush2.bf16.msra.mxu1 %v5709_v40  ;;  %1563 = vmatprep.subr.bf16.mxu0 %v5710_v41  ;;  %v5761_v21 = vld [vmem:[#allocation2 + $0x6a0] ss:$16 sps:$4 sm:$0xff]   ;;  %v5766_v22 = vld [vmem:[#allocation2 + $0x484] ss:$16 sps:$4 sm:$0xff]   ;;  %v6896_v40 = vpack.c.bf16 %v168_v37, %v168_v37  ;;  %v5871_v37 = vld [vmem:[#allocation2 + $0x26c] ss:$16 sps:$4 sm:$0xff]  }
  0x97   :  { %1604 = vmatprep.subr.bf16.mxu1 %v5712_v42  ;;  %v5769_v23 = vld [vmem:[#allocation2 + $0x684] ss:$16 sps:$4 sm:$0xff]   ;;  %v5764_v24 = vld [vmem:[#allocation2 + $0x480] ss:$16 sps:$4 sm:$0xff]  }
  0x98   :  { %v5767_v25 = vld [vmem:[#allocation2 + $0x680] ss:$16 sps:$4 sm:$0xff]   ;;  %v5772_v26 = vld [vmem:[#allocation2 + $0x464] ss:$16 sps:$4 sm:$0xff]  }
  0x99   :  { %1564 = vmatpush2.bf16.msra.mxu0 %v5714_v43  ;;  %v5775_v27 = vld [vmem:[#allocation2 + $0x664] ss:$16 sps:$4 sm:$0xff]   ;;  %v5770_v28 = vld [vmem:[#allocation2 + $0x460] ss:$16 sps:$4 sm:$0xff]  }
  0x9a   :  { %1605 = vmatpush2.bf16.msra.mxu1 %v5715_v44  ;;  %1565 = vmatprep.subr.bf16.mxu0 %v5716_v45  ;;  %v5773_v29 = vld [vmem:[#allocation2 + $0x660] ss:$16 sps:$4 sm:$0xff]   ;;  %v5778_v30 = vld [vmem:[#allocation2 + $0x444] ss:$16 sps:$4 sm:$0xff]  }
  0x9b   :  { %1606 = vmatprep.subr.bf16.mxu1 %v5718_v46  ;;  %v5781_v31 = vld [vmem:[#allocation2 + $0x644] ss:$16 sps:$4 sm:$0xff]   ;;  %v5776_v32 = vld [vmem:[#allocation2 + $0x440] ss:$16 sps:$4 sm:$0xff]   ;;  %v5799_v46 = vld [vmem:[#allocation2 + $0xec] ss:$16 sps:$4 sm:$0xff]  }
  0x9c   :  { %v5779_v33 = vld [vmem:[#allocation2 + $0x640] ss:$16 sps:$4 sm:$0xff]   ;;  %v5784_v34 = vld [vmem:[#allocation2 + $0x424] ss:$16 sps:$4 sm:$0xff]  }
  0x9d   :  { %1566 = vmatpush2.bf16.msra.mxu0 %v5720_v48  ;;  %v5787_v35 = vld [vmem:[#allocation2 + $0x624] ss:$16 sps:$4 sm:$0xff]   ;;  %v5782_v36 = vld [vmem:[#allocation2 + $0x420] ss:$16 sps:$4 sm:$0xff]  }
  0x9e   :  { %1607 = vmatpush2.bf16.msra.mxu1 %v5721_v49  ;;  %1567 = vmatprep.subr.bf16.mxu0 %v5722_v52  ;;  %v5785_v38 = vld [vmem:[#allocation2 + $0x620] ss:$16 sps:$4 sm:$0xff]   ;;  %v5790_v39 = vld [vmem:[#allocation2 + $0x404] ss:$16 sps:$4 sm:$0xff]   ;;  %v5797_v49 = vld [vmem:[#allocation2 + $0xe8] ss:$16 sps:$4 sm:$0xff]  }
  0x9f   :  { %1608 = vmatprep.subr.bf16.mxu1 %v5724_v54  ;;  %v5793_v41 = vld [vmem:[#allocation2 + $0x604] ss:$16 sps:$4 sm:$0xff]   ;;  %v5788_v42 = vld [vmem:[#allocation2 + $0x400] ss:$16 sps:$4 sm:$0xff]   ;;  %v5805_v52 = vld [vmem:[#allocation2 + $0xcc] ss:$16 sps:$4 sm:$0xff]  }
  0xa0   :  { %v5791_v43 = vld [vmem:[#allocation2 + $0x600] ss:$16 sps:$4 sm:$0xff]   ;;  %v5796_v44 = vld [vmem:[#allocation2 + $0x5e4] ss:$16 sps:$4 sm:$0xff]  }
  0xa1   :  { %1568 = vmatpush2.bf16.msra.mxu0 %v5726_v55  ;;  %v169_v45 = vld [vmem:[%s7075_s0 + $0x30] sm:$0xff]  ;;  %v5803_v55 = vld [vmem:[#allocation2 + $0xc8] ss:$16 sps:$4 sm:$0xff]  }
  0xa2   :  { %1609 = vmatpush2.bf16.msra.mxu1 %v5727_v56  ;;  %1569 = vmatprep.subr.bf16.mxu0 %v5728_v57  ;;  %v5794_v47 = vld [vmem:[#allocation2 + $0x5e0] ss:$16 sps:$4 sm:$0xff]   ;;  %v6902_v48 = vpack.c.bf16 %v169_v45, %v169_v45  ;;  %v5802_v51 = vld [vmem:[#allocation2 + $0x5c4] ss:$16 sps:$4 sm:$0xff]   ;;  %v5811_v57 = vld [vmem:[#allocation2 + $0xac] ss:$16 sps:$4 sm:$0xff]  }
  0xa3   :  { %1610 = vmatprep.subr.bf16.mxu1 %v5730_v58  ;;  %v5800_v54 = vld [vmem:[#allocation2 + $0x5c0] ss:$16 sps:$4 sm:$0xff]   ;;  %v5808_v56 = vld [vmem:[#allocation2 + $0x5a4] ss:$16 sps:$4 sm:$0xff]   ;;  %v5883_v45 = vld [vmem:[#allocation2 + $0x22c] ss:$16 sps:$4 sm:$0xff]  }
  0xa4   :  { %v5806_v58 = vld [vmem:[#allocation2 + $0x5a0] ss:$16 sps:$4 sm:$0xff]  }
  0xa5   :  { %1570 = vmatpush2.bf16.msra.mxu0 %v5732_v59  ;;  %v5809_v59 = vld [vmem:[#allocation2 + $0xa8] ss:$16 sps:$4 sm:$0xff]   ;;  %v5824_v6 = vld [vmem:[#allocation2 + $0x540] ss:$16 sps:$4 sm:$0xff]  }
  0xa6   :  { %1611 = vmatpush2.bf16.msra.mxu1 %v5733_v60  ;;  %1571 = vmatprep.subr.bf16.mxu0 %v5734_v61  ;;  %v5814_v60 = vld [vmem:[#allocation2 + $0x584] ss:$16 sps:$4 sm:$0xff]   ;;  %v5817_v61 = vld [vmem:[#allocation2 + $0x8c] ss:$16 sps:$4 sm:$0xff]  }
  0xa7   :  { %1612 = vmatprep.subr.bf16.mxu1 %v5736_v62  ;;  %v5812_v62 = vld [vmem:[#allocation2 + $0x580] ss:$16 sps:$4 sm:$0xff]  }
  0xa9   :  { %1572 = vmatpush2.bf16.msra.mxu0 %v5738_v63  ;;  %v5815_v63 = vld [vmem:[#allocation2 + $0x88] ss:$16 sps:$4 sm:$0xff]  }
  0xaa   :  { %1613 = vmatpush2.bf16.msra.mxu1 %v5739_v1  ;;  %1573 = vmatprep.subr.bf16.mxu0 %v5740_v2  ;;  %v5820_v1 = vld [vmem:[#allocation2 + $0x564] ss:$16 sps:$4 sm:$0xff]   ;;  %v5823_v2 = vld [vmem:[#allocation2 + $0x6c] ss:$16 sps:$4 sm:$0xff]  }
  0xab   :  { %1614 = vmatprep.subr.bf16.mxu1 %v5742_v3  ;;  %v5818_v3 = vld [vmem:[#allocation2 + $0x560] ss:$16 sps:$4 sm:$0xff]  }
  0xad   :  { %1574 = vmatpush2.bf16.msra.mxu0 %v5744_v4  ;;  %v5826_v4 = vld [vmem:[#allocation2 + $0x544] ss:$16 sps:$4 sm:$0xff]  }
  0xae   :  { %1615 = vmatpush2.bf16.msra.mxu1 %v5745_v5  ;;  %1625 = vmatprep.subr.bf16.mxu0 %v5748_v8  ;;  %v5829_v5 = vld [vmem:[#allocation2 + $0x4c] ss:$16 sps:$4 sm:$0xff]   ;;  %v5832_v8 = vld [vmem:[#allocation2 + $0x524] ss:$16 sps:$4 sm:$0xff]  }
  0xaf   :  { %1666 = vmatprep.subr.bf16.mxu1 %v5751_v9  ;;  %v5835_v9 = vld [vmem:[#allocation2 + $0x2c] ss:$16 sps:$4 sm:$0xff]  }
  0xb0   :  { %1576 = vmatmul.mubr.bf16.vlgmr.msra.gmra.mxu0 %v6886_v10 }
  0xb1   :  { %1617 = vmatmul.mubr.bf16.vlgmr.msra.gmra.mxu1 %v6888_v11  ;;  %1626 = vmatpush1.bf16.msra.mxu0 %v5746_v12  ;;  %v5830_v12 = vld [vmem:[#allocation2 + $0x520] ss:$16 sps:$4 sm:$0xff]  }
  0xb2   :  { %1667 = vmatpush1.bf16.msra.mxu1 %v5749_v13  ;;  %1627 = vmatprep.subr.bf16.mxu0 %v5754_v14  ;;  %v5833_v13 = vld [vmem:[#allocation2 + $0x28] ss:$16 sps:$4 sm:$0xff]   ;;  %v5838_v14 = vld [vmem:[#allocation2 + $0x504] ss:$16 sps:$4 sm:$0xff]  }
  0xb3   :  { %1668 = vmatprep.subr.bf16.mxu1 %v5757_v15  ;;  %1698 = vmatprep.mubr.bf16.mxu1 %v6755_v0  ;;  %v5841_v15 = vld [vmem:[#allocation2 + $0xc] ss:$16 sps:$4 sm:$0xff]  }
  0xb4   :  { %1657 = vmatprep.mubr.bf16.mxu0 %v6896_v40 }
  0xb5   :  { %1628 = vmatpush1.bf16.msra.mxu0 %v5752_v16  ;;  %v5836_v16 = vld [vmem:[#allocation2 + $0x500] ss:$16 sps:$4 sm:$0xff]  }
  0xb6   :  { %1669 = vmatpush1.bf16.msra.mxu1 %v5755_v17  ;;  %1629 = vmatprep.subr.bf16.mxu0 %v5760_v18  ;;  %v5839_v17 = vld [vmem:[#allocation2 + $0x8] ss:$16 sps:$4 sm:$0xff]   ;;  %v167_v18 = vld [vmem:[%s7075_s0 + $0x20] sm:$0xff] }
  0xb7   :  { %1670 = vmatprep.subr.bf16.mxu1 %v5763_v19  ;;  %v5844_v19 = vld [vmem:[#allocation2 + $0x1ec] ss:$16 sps:$4 sm:$0xff]  }
  0xb9   :  { %1630 = vmatpush1.bf16.msra.mxu0 %v5758_v20  ;;  %v5847_v20 = vld [vmem:[#allocation2 + $0x2ec] ss:$16 sps:$4 sm:$0xff]  }
  0xba   :  { %1671 = vmatpush1.bf16.msra.mxu1 %v5761_v21  ;;  %1631 = vmatprep.subr.bf16.mxu0 %v5766_v22  ;;  %v6909_v21 = vpack.c.bf16 %v167_v18, %v167_v18  ;;  %v5842_v22 = vld [vmem:[#allocation2 + $0x1e8] ss:$16 sps:$4 sm:$0xff]  }
  0xbb   :  { %1672 = vmatprep.subr.bf16.mxu1 %v5769_v23  ;;  %v5845_v23 = vld [vmem:[#allocation2 + $0x2e8] ss:$16 sps:$4 sm:$0xff]  }
  0xbc   :  { %v5929_v18 = vld [vmem:[#allocation2 + $0x428] ss:$16 sps:$4 sm:$0xff]  }
  0xbd   :  { %1632 = vmatpush1.bf16.msra.mxu0 %v5764_v24  ;;  %v5850_v24 = vld [vmem:[#allocation2 + $0x1cc] ss:$16 sps:$4 sm:$0xff]  }
  0xbe   :  { %1673 = vmatpush1.bf16.msra.mxu1 %v5767_v25  ;;  %1633 = vmatprep.subr.bf16.mxu0 %v5772_v26  ;;  %v5853_v25 = vld [vmem:[#allocation2 + $0x2cc] ss:$16 sps:$4 sm:$0xff]   ;;  %v5848_v26 = vld [vmem:[#allocation2 + $0x1c8] ss:$16 sps:$4 sm:$0xff]  }
  0xbf   :  { %1674 = vmatprep.subr.bf16.mxu1 %v5775_v27  ;;  %v5851_v27 = vld [vmem:[#allocation2 + $0x2c8] ss:$16 sps:$4 sm:$0xff]  }
  0xc1   :  { %1634 = vmatpush1.bf16.msra.mxu0 %v5770_v28  ;;  %v5856_v28 = vld [vmem:[#allocation2 + $0x1ac] ss:$16 sps:$4 sm:$0xff]  }
  0xc2   :  { %1675 = vmatpush1.bf16.msra.mxu1 %v5773_v29  ;;  %1635 = vmatprep.subr.bf16.mxu0 %v5778_v30  ;;  %v5859_v29 = vld [vmem:[#allocation2 + $0x2ac] ss:$16 sps:$4 sm:$0xff]   ;;  %v5854_v30 = vld [vmem:[#allocation2 + $0x1a8] ss:$16 sps:$4 sm:$0xff]  }
  0xc3   :  { %1676 = vmatprep.subr.bf16.mxu1 %v5781_v31  ;;  %v5857_v31 = vld [vmem:[#allocation2 + $0x2a8] ss:$16 sps:$4 sm:$0xff]  }
  0xc5   :  { %1636 = vmatpush1.bf16.msra.mxu0 %v5776_v32  ;;  %v5862_v32 = vld [vmem:[#allocation2 + $0x18c] ss:$16 sps:$4 sm:$0xff]  }
  0xc6   :  { %1677 = vmatpush1.bf16.msra.mxu1 %v5779_v33  ;;  %1637 = vmatprep.subr.bf16.mxu0 %v5784_v34  ;;  %v5865_v33 = vld [vmem:[#allocation2 + $0x28c] ss:$16 sps:$4 sm:$0xff]   ;;  %v5860_v34 = vld [vmem:[#allocation2 + $0x188] ss:$16 sps:$4 sm:$0xff]  }
  0xc7   :  { %1678 = vmatprep.subr.bf16.mxu1 %v5787_v35  ;;  %v5863_v35 = vld [vmem:[#allocation2 + $0x288] ss:$16 sps:$4 sm:$0xff]  }
  0xc9   :  { %1638 = vmatpush1.bf16.msra.mxu0 %v5782_v36  ;;  %v5868_v36 = vld [vmem:[#allocation2 + $0x16c] ss:$16 sps:$4 sm:$0xff]  }
  0xca   :  { %1679 = vmatpush1.bf16.msra.mxu1 %v5785_v38  ;;  %1639 = vmatprep.subr.bf16.mxu0 %v5790_v39  ;;  %v5866_v38 = vld [vmem:[#allocation2 + $0x168] ss:$16 sps:$4 sm:$0xff]   ;;  %v5874_v39 = vld [vmem:[#allocation2 + $0x14c] ss:$16 sps:$4 sm:$0xff]  }
  0xcb   :  { %1680 = vmatprep.subr.bf16.mxu1 %v5793_v41  ;;  %v5877_v41 = vld [vmem:[#allocation2 + $0x24c] ss:$16 sps:$4 sm:$0xff]  }
  0xcd   :  { %1640 = vmatpush1.bf16.msra.mxu0 %v5788_v42  ;;  %v5872_v42 = vld [vmem:[#allocation2 + $0x148] ss:$16 sps:$4 sm:$0xff]  }
  0xce   :  { %1681 = vmatpush1.bf16.msra.mxu1 %v5791_v43  ;;  %1641 = vmatprep.subr.bf16.mxu0 %v5796_v44  ;;  %v5875_v43 = vld [vmem:[#allocation2 + $0x248] ss:$16 sps:$4 sm:$0xff]   ;;  %v5880_v44 = vld [vmem:[#allocation2 + $0x12c] ss:$16 sps:$4 sm:$0xff]  }
  0xcf   :  { %1707 = vmatprep.subr.bf16.mxu1 %v5799_v46  ;;  %v5878_v46 = vld [vmem:[#allocation2 + $0x128] ss:$16 sps:$4 sm:$0xff]  }
  0xd1   :  { %1699 = vmatmul.mubr.bf16.vlgmr.msra.gmra.mxu1 %v6902_v48  ;;  %1642 = vmatpush2.bf16.msra.mxu0 %v5794_v47  ;;  %v5881_v47 = vld [vmem:[#allocation2 + $0x228] ss:$16 sps:$4 sm:$0xff]  }
  0xd2   :  { %1708 = vmatpush1.bf16.msra.mxu1 %v5797_v49  ;;  %1643 = vmatprep.subr.bf16.mxu0 %v5802_v51  ;;  %v5886_v49 = vld [vmem:[#allocation2 + $0x10c] ss:$16 sps:$4 sm:$0xff]  }
  0xd3   :  { %1709 = vmatprep.subr.bf16.mxu1 %v5805_v52  ;;  %1739 = vmatprep.mubr.bf16.mxu1 %v6871_v50  ;;  %v5821_v50 = vld [vmem:[#allocation2 + $0x68] ss:$16 sps:$4 sm:$0xff]   ;;  %v5889_v51 = vld [vmem:[#allocation2 + $0x20c] ss:$16 sps:$4 sm:$0xff]  }
  0xd4   :  { %v5884_v52 = vld [vmem:[#allocation2 + $0x108] ss:$16 sps:$4 sm:$0xff]  }
  0xd5   :  { %1644 = vmatpush2.bf16.msra.mxu0 %v5800_v54  ;;  %v5887_v54 = vld [vmem:[#allocation2 + $0x208] ss:$16 sps:$4 sm:$0xff]  }
  0xd6   :  { %1710 = vmatpush1.bf16.msra.mxu1 %v5803_v55  ;;  %1645 = vmatprep.subr.bf16.mxu0 %v5808_v56  ;;  %v5892_v55 = vld [vmem:[#allocation2 + $0x3ec] ss:$16 sps:$4 sm:$0xff]  }
  0xd7   :  { %1711 = vmatprep.subr.bf16.mxu1 %v5811_v57  ;;  %v5895_v56 = vld [vmem:[#allocation2 + $0x4ec] ss:$16 sps:$4 sm:$0xff]   ;;  %v5890_v57 = vld [vmem:[#allocation2 + $0x3e8] ss:$16 sps:$4 sm:$0xff]  }
  0xd9   :  { %1646 = vmatpush2.bf16.msra.mxu0 %v5806_v58  ;;  %v5893_v58 = vld [vmem:[#allocation2 + $0x4e8] ss:$16 sps:$4 sm:$0xff]  }
  0xda   :  { %1712 = vmatpush1.bf16.msra.mxu1 %v5809_v59  ;;  %1647 = vmatprep.subr.bf16.mxu0 %v5814_v60  ;;  %v5898_v59 = vld [vmem:[#allocation2 + $0x3cc] ss:$16 sps:$4 sm:$0xff]  }
  0xdb   :  { %1713 = vmatprep.subr.bf16.mxu1 %v5817_v61  ;;  %v5901_v60 = vld [vmem:[#allocation2 + $0x4cc] ss:$16 sps:$4 sm:$0xff]   ;;  %v5896_v61 = vld [vmem:[#allocation2 + $0x3c8] ss:$16 sps:$4 sm:$0xff]  }
  0xdd   :  { %1648 = vmatpush2.bf16.msra.mxu0 %v5812_v62  ;;  %v5899_v62 = vld [vmem:[#allocation2 + $0x4c8] ss:$16 sps:$4 sm:$0xff]  }
  0xde   :  { %1714 = vmatpush1.bf16.msra.mxu1 %v5815_v63  ;;  %1649 = vmatprep.subr.bf16.mxu0 %v5820_v1  ;;  %v5904_v63 = vld [vmem:[#allocation2 + $0x3ac] ss:$16 sps:$4 sm:$0xff]  }
  0xdf   :  { %1715 = vmatprep.subr.bf16.mxu1 %v5823_v2  ;;  %v5907_v1 = vld [vmem:[#allocation2 + $0x4ac] ss:$16 sps:$4 sm:$0xff]   ;;  %v5902_v2 = vld [vmem:[#allocation2 + $0x3a8] ss:$16 sps:$4 sm:$0xff]  }
  0xe1   :  { %1650 = vmatpush2.bf16.msra.mxu0 %v5818_v3  ;;  %v5905_v3 = vld [vmem:[#allocation2 + $0x4a8] ss:$16 sps:$4 sm:$0xff]  }
  0xe2   :  { %1716 = vmatpush1.bf16.msra.mxu1 %v5821_v50  ;;  %1651 = vmatprep.subr.bf16.mxu0 %v5826_v4  ;;  %v5910_v50 = vld [vmem:[#allocation2 + $0x38c] ss:$16 sps:$4 sm:$0xff]  }
  0xe3   :  { %1717 = vmatprep.subr.bf16.mxu1 %v5829_v5  ;;  %v5913_v4 = vld [vmem:[#allocation2 + $0x48c] ss:$16 sps:$4 sm:$0xff]   ;;  %v5908_v5 = vld [vmem:[#allocation2 + $0x388] ss:$16 sps:$4 sm:$0xff]  }
  0xe5   :  { %1652 = vmatpush2.bf16.msra.mxu0 %v5824_v6  ;;  %v5916_v6 = vld [vmem:[#allocation2 + $0x36c] ss:$16 sps:$4 sm:$0xff]  }
  0xe6   :  { %1718 = vmatpush1.bf16.msra.mxu1 %v5827_v7  ;;  %1653 = vmatprep.subr.bf16.mxu0 %v5832_v8  ;;  %v5919_v7 = vld [vmem:[#allocation2 + $0x46c] ss:$16 sps:$4 sm:$0xff]   ;;  %v5914_v8 = vld [vmem:[#allocation2 + $0x368] ss:$16 sps:$4 sm:$0xff]  }
  0xe7   :  { %1719 = vmatprep.subr.bf16.mxu1 %v5835_v9  ;;  %v5917_v9 = vld [vmem:[#allocation2 + $0x468] ss:$16 sps:$4 sm:$0xff]  }
  0xe9   :  { %1654 = vmatpush2.bf16.msra.mxu0 %v5830_v12  ;;  %v5922_v12 = vld [vmem:[#allocation2 + $0x34c] ss:$16 sps:$4 sm:$0xff]  }
  0xea   :  { %1720 = vmatpush1.bf16.msra.mxu1 %v5833_v13  ;;  %1655 = vmatprep.subr.bf16.mxu0 %v5838_v14  ;;  %v5925_v13 = vld [vmem:[#allocation2 + $0x44c] ss:$16 sps:$4 sm:$0xff]   ;;  %v5923_v14 = vld [vmem:[#allocation2 + $0x448] ss:$16 sps:$4 sm:$0xff]  }
  0xeb   :  { %1721 = vmatprep.subr.bf16.mxu1 %v5841_v15  ;;  %v5928_v15 = vld [vmem:[#allocation2 + $0x32c] ss:$16 sps:$4 sm:$0xff]  }
  0xed   :  { %1656 = vmatpush2.bf16.msra.mxu0 %v5836_v16  ;;  %v5931_v16 = vld [vmem:[#allocation2 + $0x42c] ss:$16 sps:$4 sm:$0xff]  }
  0xee   :  { %1722 = vmatpush1.bf16.msra.mxu1 %v5839_v17  ;;  %1748 = vmatprep.subr.bf16.mxu0 %v5847_v20  ;;  %v5926_v17 = vld [vmem:[#allocation2 + $0x328] ss:$16 sps:$4 sm:$0xff]   ;;  %v5937_v20 = vld [vmem:[#allocation2 + $0x40c] ss:$16 sps:$4 sm:$0xff]  }
  0xef   :  { %1723 = vmatprep.subr.bf16.mxu1 %v5844_v19  ;;  %v5934_v19 = vld [vmem:[#allocation2 + $0x30c] ss:$16 sps:$4 sm:$0xff]  }
  0xf0   :  { %1658 = vmatmul.mubr.bf16.vlgmr.msra.gmra.mxu0 %v6909_v21 }
  0xf1   :  { %1749 = vmatpush1.bf16.msra.mxu0 %v5845_v23  ;;  %1780 = vmatprep.mubr.bf16.mxu0 %v6876_v53  ;;  %v5869_v53 = vld [vmem:[#allocation2 + $0x268] ss:$16 sps:$4 sm:$0xff]  }
  0xf2   :  { %1724 = vmatpush2.bf16.msra.mxu1 %v5842_v22  ;;  %1750 = vmatprep.subr.bf16.mxu0 %v5853_v25  ;;  %v5932_v22 = vld [vmem:[#allocation2 + $0x308] ss:$16 sps:$4 sm:$0xff]   ;;  %v5943_v25 = vld [vmem:[#allocation2 + $0x6ec] ss:$16 sps:$4 sm:$0xff]  }
  0xf3   :  { %1725 = vmatprep.subr.bf16.mxu1 %v5850_v24  ;;  %v5935_v23 = vld [vmem:[#allocation2 + $0x408] ss:$16 sps:$4 sm:$0xff]   ;;  %v5940_v24 = vld [vmem:[#allocation2 + $0x5ec] ss:$16 sps:$4 sm:$0xff]  }
  0xf5   :  { %1751 = vmatpush1.bf16.msra.mxu0 %v5851_v27  ;;  %v5941_v27 = vld [vmem:[#allocation2 + $0x6e8] ss:$16 sps:$4 sm:$0xff]  }
  0xf6   :  { %1726 = vmatpush2.bf16.msra.mxu1 %v5848_v26  ;;  %1752 = vmatprep.subr.bf16.mxu0 %v5859_v29  ;;  %v5938_v26 = vld [vmem:[#allocation2 + $0x5e8] ss:$16 sps:$4 sm:$0xff]   ;;  %v5949_v29 = vld [vmem:[#allocation2 + $0x6cc] ss:$16 sps:$4 sm:$0xff]  }
  0xf7   :  { %1727 = vmatprep.subr.bf16.mxu1 %v5856_v28  ;;  %v5946_v28 = vld [vmem:[#allocation2 + $0x5cc] ss:$16 sps:$4 sm:$0xff]  }
  0xf9   :  { %1753 = vmatpush1.bf16.msra.mxu0 %v5857_v31  ;;  %v5947_v31 = vld [vmem:[#allocation2 + $0x6c8] ss:$16 sps:$4 sm:$0xff]  }
  0xfa   :  { %1728 = vmatpush2.bf16.msra.mxu1 %v5854_v30  ;;  %1754 = vmatprep.subr.bf16.mxu0 %v5865_v33  ;;  %v5944_v30 = vld [vmem:[#allocation2 + $0x5c8] ss:$16 sps:$4 sm:$0xff]   ;;  %v5955_v33 = vld [vmem:[#allocation2 + $0x6ac] ss:$16 sps:$4 sm:$0xff]  }
  0xfb   :  { %1729 = vmatprep.subr.bf16.mxu1 %v5862_v32  ;;  %v5952_v32 = vld [vmem:[#allocation2 + $0x5ac] ss:$16 sps:$4 sm:$0xff]  }
  0xfd   :  { %1755 = vmatpush1.bf16.msra.mxu0 %v5863_v35  ;;  %v5953_v35 = vld [vmem:[#allocation2 + $0x6a8] ss:$16 sps:$4 sm:$0xff]  }
  0xfe   :  { %1730 = vmatpush2.bf16.msra.mxu1 %v5860_v34  ;;  %1756 = vmatprep.subr.bf16.mxu0 %v5871_v37  ;;  %v5950_v34 = vld [vmem:[#allocation2 + $0x5a8] ss:$16 sps:$4 sm:$0xff]   ;;  %v5961_v37 = vld [vmem:[#allocation2 + $0x68c] ss:$16 sps:$4 sm:$0xff]  }
  0xff   :  { %1731 = vmatprep.subr.bf16.mxu1 %v5868_v36  ;;  %v5958_v36 = vld [vmem:[#allocation2 + $0x58c] ss:$16 sps:$4 sm:$0xff]  }
 0x101   :  { %1757 = vmatpush1.bf16.msra.mxu0 %v5869_v53  ;;  %v5959_v53 = vld [vmem:[#allocation2 + $0x688] ss:$16 sps:$4 sm:$0xff]  }
 0x102   :  { %1732 = vmatpush2.bf16.msra.mxu1 %v5866_v38  ;;  %1758 = vmatprep.subr.bf16.mxu0 %v5877_v41  ;;  %v5956_v38 = vld [vmem:[#allocation2 + $0x588] ss:$16 sps:$4 sm:$0xff]  }
 0x103   :  { %1733 = vmatprep.subr.bf16.mxu1 %v5874_v39  ;;  %v5964_v39 = vld [vmem:[#allocation2 + $0x56c] ss:$16 sps:$4 sm:$0xff]   ;;  %v5962_v41 = vld [vmem:[#allocation2 + $0x568] ss:$16 sps:$4 sm:$0xff]  }
 0x105   :  { %1759 = vmatpush1.bf16.msra.mxu0 %v5875_v43  ;;  %v5970_v43 = vld [vmem:[#allocation2 + $0x54c] ss:$16 sps:$4 sm:$0xff]  }
 0x106   :  { %1734 = vmatpush2.bf16.msra.mxu1 %v5872_v42  ;;  %1760 = vmatprep.subr.bf16.mxu0 %v5883_v45  ;;  %v5965_v42 = vld [vmem:[#allocation2 + $0x668] ss:$16 sps:$4 sm:$0xff]  }
 0x107   :  { %1735 = vmatprep.subr.bf16.mxu1 %v5880_v44  ;;  %v5973_v44 = vld [vmem:[#allocation2 + $0x64c] ss:$16 sps:$4 sm:$0xff]   ;;  %v5971_v45 = vld [vmem:[#allocation2 + $0x648] ss:$16 sps:$4 sm:$0xff]  }
 0x109   :  { %1761 = vmatpush1.bf16.msra.mxu0 %v5881_v47  ;;  %v5979_v47 = vld [vmem:[#allocation2 + $0x62c] ss:$16 sps:$4 sm:$0xff]  }
 0x10a   :  { %1736 = vmatpush2.bf16.msra.mxu1 %v5878_v46  ;;  %1762 = vmatprep.subr.bf16.mxu0 %v5889_v51  ;;  %v5976_v46 = vld [vmem:[#allocation2 + $0x52c] ss:$16 sps:$4 sm:$0xff]   ;;  %v5977_v51 = vld [vmem:[#allocation2 + $0x628] ss:$16 sps:$4 sm:$0xff]  }
 0x10b   :  { %1737 = vmatprep.subr.bf16.mxu1 %v5886_v49  ;;  %v5974_v49 = vld [vmem:[#allocation2 + $0x528] ss:$16 sps:$4 sm:$0xff]  }
 0x10d   :  { %1763 = vmatpush1.bf16.msra.mxu0 %v5887_v54  ;;  %v5985_v54 = vld [vmem:[#allocation2 + $0x60c] ss:$16 sps:$4 sm:$0xff]  }
 0x10e   :  { %1738 = vmatpush2.bf16.msra.mxu1 %v5884_v52  ;;  %1764 = vmatprep.subr.bf16.mxu0 %v5892_v55  ;;  %v5982_v52 = vld [vmem:[#allocation2 + $0x50c] ss:$16 sps:$4 sm:$0xff]   ;;  %v5980_v55 = vld [vmem:[#allocation2 + $0x508] ss:$16 sps:$4 sm:$0xff]  }
 0x10f   :  { %1789 = vmatprep.subr.bf16.mxu1 %v5895_v56  ;;  %v5983_v56 = vld [vmem:[#allocation2 + $0x608] ss:$16 sps:$4 sm:$0xff]  }
 0x111   :  { %1740 = vmatmul.mubr.bf16.vlgmr.msra.gmra.mxu1 %v6886_v10  ;;  %1765 = vmatpush2.bf16.msra.mxu0 %v5890_v57  ;;  %v5911_v10 = vld [vmem:[#allocation2 + $0x488] ss:$16 sps:$4 sm:$0xff]  }
 0x112   :  { %1790 = vmatpush1.bf16.msra.mxu1 %v5893_v58  ;;  %1766 = vmatprep.subr.bf16.mxu0 %v5898_v59  ;;  %v5988_v57 = vld [vmem:[#allocation7 + $0x74] ss:$8 sps:$4 sm:$0xff]   ;;  %v5986_v58 = vld [vmem:[#allocation7 + $0x70] ss:$8 sps:$4 sm:$0xff]   ;;  %v5991_v59 = vld [vmem:[#allocation7 + $0x64] ss:$8 sps:$4 sm:$0xff]  }
 0x113   :  { %1791 = vmatprep.subr.bf16.mxu1 %v5901_v60  ;;  %1821 = vmatprep.mubr.bf16.mxu1 %v6896_v40  ;;  %v5920_v40 = vld [vmem:[#allocation2 + $0x348] ss:$16 sps:$4 sm:$0xff]   ;;  %v5989_v60 = vld [vmem:[#allocation7 + $0x60] ss:$8 sps:$4 sm:$0xff]  }
 0x115   :  { %1767 = vmatpush2.bf16.msra.mxu0 %v5896_v61  ;;  %v5994_v61 = vld [vmem:[#allocation7 + $0x54] ss:$8 sps:$4 sm:$0xff]  }
 0x116   :  { %1792 = vmatpush1.bf16.msra.mxu1 %v5899_v62  ;;  %1768 = vmatprep.subr.bf16.mxu0 %v5904_v63  ;;  %v5992_v62 = vld [vmem:[#allocation7 + $0x50] ss:$8 sps:$4 sm:$0xff]   ;;  %v5997_v63 = vld [vmem:[#allocation7 + $0x44] ss:$8 sps:$4 sm:$0xff]  }
 0x117   :  { %1793 = vmatprep.subr.bf16.mxu1 %v5907_v1  ;;  %v6034_v1 = vld [vmem:[#allocation7 + $0x170] ss:$8 sps:$4 sm:$0xff]  }
 0x119   :  { %1769 = vmatpush2.bf16.msra.mxu0 %v5902_v2  ;;  %v6036_v2 = vld [vmem:[#allocation7 + $0x174] ss:$8 sps:$4 sm:$0xff]  }
 0x11a   :  { %1794 = vmatpush1.bf16.msra.mxu1 %v5905_v3  ;;  %1770 = vmatprep.subr.bf16.mxu0 %v5910_v50  ;;  %v6039_v3 = vld [vmem:[#allocation7 + $0x164] ss:$8 sps:$4 sm:$0xff]   ;;  %v5995_v50 = vld [vmem:[#allocation7 + $0x40] ss:$8 sps:$4 sm:$0xff]  }
 0x11b   :  { %1795 = vmatprep.subr.bf16.mxu1 %v5913_v4  ;;  %v6000_v4 = vld [vmem:[#allocation7 + $0x34] ss:$8 sps:$4 sm:$0xff]  }
 0x11d   :  { %1771 = vmatpush2.bf16.msra.mxu0 %v5908_v5  ;;  %v6037_v5 = vld [vmem:[#allocation7 + $0x160] ss:$8 sps:$4 sm:$0xff]  }
 0x11e   :  { %1796 = vmatpush1.bf16.msra.mxu1 %v5911_v10  ;;  %1772 = vmatprep.subr.bf16.mxu0 %v5916_v6  ;;  %v6042_v10 = vld [vmem:[#allocation7 + $0x154] ss:$8 sps:$4 sm:$0xff]   ;;  %v6003_v6 = vld [vmem:[#allocation7 + $0x24] ss:$8 sps:$4 sm:$0xff]  }
 0x11f   :  { %1797 = vmatprep.subr.bf16.mxu1 %v5919_v7  ;;  %v6045_v7 = vld [vmem:[#allocation7 + $0x144] ss:$8 sps:$4 sm:$0xff]  }
 0x121   :  { %1773 = vmatpush2.bf16.msra.mxu0 %v5914_v8  ;;  %v6001_v8 = vld [vmem:[#allocation7 + $0x20] ss:$8 sps:$4 sm:$0xff]  }
 0x122   :  { %1798 = vmatpush1.bf16.msra.mxu1 %v5917_v9  ;;  %1774 = vmatprep.subr.bf16.mxu0 %v5922_v12  ;;  %v6043_v9 = vld [vmem:[#allocation7 + $0x140] ss:$8 sps:$4 sm:$0xff]   ;;  %v6006_v12 = vld [vmem:[#allocation7 + $0x14] ss:$8 sps:$4 sm:$0xff]  }
 0x123   :  { %1799 = vmatprep.subr.bf16.mxu1 %v5925_v13  ;;  %v6048_v13 = vld [vmem:[#allocation7 + $0x134] ss:$8 sps:$4 sm:$0xff]  }
 0x125   :  { %1775 = vmatpush2.bf16.msra.mxu0 %v5920_v40  ;;  %v6004_v40 = vld [vmem:[#allocation7 + $0x10] ss:$8 sps:$4 sm:$0xff]  }
 0x126   :  { %1800 = vmatpush1.bf16.msra.mxu1 %v5923_v14  ;;  %1776 = vmatprep.subr.bf16.mxu0 %v5928_v15  ;;  %v6046_v14 = vld [vmem:[#allocation7 + $0x130] ss:$8 sps:$4 sm:$0xff]   ;;  %v6009_v15 = vld [vmem:[#allocation7 + $0x4] ss:$8 sps:$4 sm:$0xff]  }
 0x127   :  { %1801 = vmatprep.subr.bf16.mxu1 %v5931_v16  ;;  %v6007_v16 = vld [vmem:[#allocation7] ss:$8 sps:$4 sm:$0xff]  }
 0x129   :  { %1777 = vmatpush2.bf16.msra.mxu0 %v5926_v17  ;;  %v6012_v17 = vld [vmem:[#allocation7 + $0xf4] ss:$8 sps:$4 sm:$0xff]  }
 0x12a   :  { %1802 = vmatpush1.bf16.msra.mxu1 %v5929_v18  ;;  %1778 = vmatprep.subr.bf16.mxu0 %v5934_v19  ;;  %v6010_v18 = vld [vmem:[#allocation7 + $0xf0] ss:$8 sps:$4 sm:$0xff]   ;;  %v6015_v19 = vld [vmem:[#allocation7 + $0xe4] ss:$8 sps:$4 sm:$0xff]  }
 0x12b   :  { %1803 = vmatprep.subr.bf16.mxu1 %v5937_v20  ;;  %v6013_v20 = vld [vmem:[#allocation7 + $0xe0] ss:$8 sps:$4 sm:$0xff]  }
 0x12d   :  { %1779 = vmatpush2.bf16.msra.mxu0 %v5932_v22  ;;  %v6051_v22 = vld [vmem:[#allocation7 + $0x124] ss:$8 sps:$4 sm:$0xff]  }
 0x12e   :  { %1804 = vmatpush1.bf16.msra.mxu1 %v5935_v23  ;;  %1830 = vmatprep.subr.bf16.mxu0 %v5943_v25  ;;  %v6018_v25 = vld [vmem:[#allocation7 + $0xd4] ss:$8 sps:$4 sm:$0xff]  }
 0x12f   :  { %1805 = vmatprep.subr.bf16.mxu1 %v5940_v24 }
 0x130   :  { %1781 = vmatmul.mubr.bf16.vlgmr.msra.gmra.mxu0 %v6888_v11  ;;  %v5967_v11 = vld [vmem:[#allocation2 + $0x66c] ss:$16 sps:$4 sm:$0xff]  }
 0x131   :  { %1831 = vmatpush1.bf16.msra.mxu0 %v5941_v27  ;;  %1862 = vmatprep.mubr.bf16.mxu0 %v6755_v0  ;;  %v5968_v0 = vld [vmem:[#allocation2 + $0x548] ss:$16 sps:$4 sm:$0xff]  }
 0x132   :  { %1806 = vmatpush2.bf16.msra.mxu1 %v5938_v26  ;;  %1832 = vmatprep.subr.bf16.mxu0 %v5949_v29  ;;  %v6049_v26 = vld [vmem:[#allocation7 + $0x120] ss:$8 sps:$4 sm:$0xff]   ;;  %v6016_v29 = vld [vmem:[#allocation7 + $0xd0] ss:$8 sps:$4 sm:$0xff]  }
 0x133   :  { %1807 = vmatprep.subr.bf16.mxu1 %v5946_v28 }
 0x135   :  { %1833 = vmatpush1.bf16.msra.mxu0 %v5947_v31 }
 0x136   :  { %1808 = vmatpush2.bf16.msra.mxu1 %v5944_v30  ;;  %1834 = vmatprep.subr.bf16.mxu0 %v5955_v33  ;;  %v6054_v30 = vld [vmem:[#allocation7 + $0x114] ss:$8 sps:$4 sm:$0xff]   ;;  %v6052_v33 = vld [vmem:[#allocation7 + $0x110] ss:$8 sps:$4 sm:$0xff]  }
 0x137   :  { %1809 = vmatprep.subr.bf16.mxu1 %v5952_v32 }
 0x139   :  { %1835 = vmatpush1.bf16.msra.mxu0 %v5953_v35 }
 0x13a   :  { %1810 = vmatpush2.bf16.msra.mxu1 %v5950_v34  ;;  %1836 = vmatprep.subr.bf16.mxu0 %v5961_v37  ;;  %v6055_v37 = vld [vmem:[#allocation7 + $0x100] ss:$8 sps:$4 sm:$0xff]  }
 0x13b   :  { %1811 = vmatprep.subr.bf16.mxu1 %v5958_v36  ;;  %v6021_v36 = vld [vmem:[#allocation7 + $0xc4] ss:$8 sps:$4 sm:$0xff]  }
 0x13d   :  { %1837 = vmatpush1.bf16.msra.mxu0 %v5959_v53  ;;  %v6060_v53 = vld [vmem:[#allocation7 + $0x1f4] ss:$8 sps:$4 sm:$0xff]  }
 0x13e   :  { %1812 = vmatpush2.bf16.msra.mxu1 %v5956_v38  ;;  %1838 = vmatprep.subr.bf16.mxu0 %v5967_v11  ;;  %v6057_v38 = vld [vmem:[#allocation7 + $0x104] ss:$8 sps:$4 sm:$0xff]   ;;  %v6024_v11 = vld [vmem:[#allocation7 + $0xb4] ss:$8 sps:$4 sm:$0xff]  }
 0x13f   :  { %1813 = vmatprep.subr.bf16.mxu1 %v5964_v39  ;;  %v6019_v39 = vld [vmem:[#allocation7 + $0xc0] ss:$8 sps:$4 sm:$0xff]  }
 0x141   :  { %1839 = vmatpush1.bf16.msra.mxu0 %v5965_v42  ;;  %v6063_v42 = vld [vmem:[#allocation7 + $0x1e4] ss:$8 sps:$4 sm:$0xff]  }
 0x142   :  { %1814 = vmatpush2.bf16.msra.mxu1 %v5962_v41  ;;  %1840 = vmatprep.subr.bf16.mxu0 %v5973_v44  ;;  %v6058_v41 = vld [vmem:[#allocation7 + $0x1f0] ss:$8 sps:$4 sm:$0xff]   ;;  %v6027_v44 = vld [vmem:[#allocation7 + $0xa4] ss:$8 sps:$4 sm:$0xff]  }
 0x143   :  { %1815 = vmatprep.subr.bf16.mxu1 %v5970_v43  ;;  %v6022_v43 = vld [vmem:[#allocation7 + $0xb0] ss:$8 sps:$4 sm:$0xff]  }
 0x145   :  { %1841 = vmatpush1.bf16.msra.mxu0 %v5971_v45  ;;  %v6066_v45 = vld [vmem:[#allocation7 + $0x1d4] ss:$8 sps:$4 sm:$0xff]  }
 0x146   :  { %1816 = vmatpush2.bf16.msra.mxu1 %v5968_v0  ;;  %1842 = vmatprep.subr.bf16.mxu0 %v5979_v47  ;;  %v6061_v0 = vld [vmem:[#allocation7 + $0x1e0] ss:$8 sps:$4 sm:$0xff]   ;;  %v6030_v47 = vld [vmem:[#allocation7 + $0x94] ss:$8 sps:$4 sm:$0xff]  }
 0x147   :  { %1817 = vmatprep.subr.bf16.mxu1 %v5976_v46  ;;  %v6025_v46 = vld [vmem:[#allocation7 + $0xa0] ss:$8 sps:$4 sm:$0xff]  }
 0x149   :  { %1843 = vmatpush1.bf16.msra.mxu0 %v5977_v51  ;;  %v6069_v51 = vld [vmem:[#allocation7 + $0x1c4] ss:$8 sps:$4 sm:$0xff]  }
 0x14a   :  { %1818 = vmatpush2.bf16.msra.mxu1 %v5974_v49  ;;  %1844 = vmatprep.subr.bf16.mxu0 %v5985_v54  ;;  %v6064_v49 = vld [vmem:[#allocation7 + $0x1d0] ss:$8 sps:$4 sm:$0xff]   ;;  %v6033_v54 = vld [vmem:[#allocation7 + $0x84] ss:$8 sps:$4 sm:$0xff]  }
 0x14b   :  { %1819 = vmatprep.subr.bf16.mxu1 %v5982_v52  ;;  %v6028_v52 = vld [vmem:[#allocation7 + $0x90] ss:$8 sps:$4 sm:$0xff]  }
 0x14d   :  { %1845 = vmatpush1.bf16.msra.mxu0 %v5983_v56  ;;  %v6072_v56 = vld [vmem:[#allocation7 + $0x1b4] ss:$8 sps:$4 sm:$0xff]  }
 0x14e   :  { %1820 = vmatpush2.bf16.msra.mxu1 %v5980_v55  ;;  %2283 = vmatprep.subr.bf16.mxu0 %v5988_v57  ;;  %v6067_v55 = vld [vmem:[#allocation7 + $0x1c0] ss:$8 sps:$4 sm:$0xff]  }
 0x14f   :  { %2324 = vmatprep.subr.bf16.mxu1 %v6036_v2  ;;  %v6031_v57 = vld [vmem:[#allocation7 + $0x80] ss:$8 sps:$4 sm:$0xff]   ;;  %v6078_v2 = vld [vmem:[#allocation7 + $0x194] ss:$8 sps:$4 sm:$0xff]  }
 0x150   :  { %1863 = vmatmul.mubr.bf16.vlgmr.msra.gmra.mxu0 %v6902_v48  ;;  %v5998_v48 = vld [vmem:[#allocation7 + $0x30] ss:$8 sps:$4 sm:$0xff]  }
 0x151   :  { %1822 = vmatmul.mubr.bf16.vlgmr.msra.gmra.mxu1 %v6909_v21  ;;  %2284 = vmatpush1.bf16.msra.mxu0 %v5986_v58  ;;  %v6040_v21 = vld [vmem:[#allocation7 + $0x150] ss:$8 sps:$4 sm:$0xff]  }
 0x152   :  { %2285 = vmatprep.subr.bf16.mxu0 %v5991_v59  ;;  %2325 = vmatpush1.bf16.msra.mxu1 %v6034_v1  ;;  %v6070_v58 = vld [vmem:[#allocation7 + $0x1b0] ss:$8 sps:$4 sm:$0xff]   ;;  %v403_v59 = vlaneseq }
 0x153   :  { %2326 = vmatprep.subr.bf16.mxu1 %v6039_v3 }
 0x155   :  { %2286 = vmatpush1.bf16.msra.mxu0 %v5989_v60  ;;  %v6927_v60 = vshrl.u32 %v403_v59, 7 }
 0x156   :  { %2287 = vmatprep.subr.bf16.mxu0 %v5994_v61  ;;  %2327 = vmatpush1.bf16.msra.mxu1 %v6037_v5  ;;  %v6075_v61 = vld [vmem:[#allocation7 + $0x1a4] ss:$8 sps:$4 sm:$0xff]  }
 0x157   :  { %2328 = vmatprep.subr.bf16.mxu1 %v6042_v10  ;;  %v6081_v5 = vld [vmem:[#allocation7 + $0x184] ss:$8 sps:$4 sm:$0xff]   ;;  %v6079_v10 = vld [vmem:[#allocation7 + $0x180] ss:$8 sps:$4 sm:$0xff]  }
 0x159   :  { %2288 = vmatpush1.bf16.msra.mxu0 %v5992_v62 }
 0x15a   :  { %2289 = vmatprep.subr.bf16.mxu0 %v5997_v63  ;;  %2329 = vmatpush1.bf16.msra.mxu1 %v6040_v21  ;;  %v6073_v63 = vld [vmem:[#allocation7 + $0x1a0] ss:$8 sps:$4 sm:$0xff]   ;;  %v401_v21 = vld [vmem:[#allocation5] sm:$0xf] }
 0x15b   :  { %2330 = vmatprep.subr.bf16.mxu1 %v6045_v7 }
 0x15d   :  { %2290 = vmatpush1.bf16.msra.mxu0 %v5995_v50  ;;  %v6076_v50 = vld [vmem:[#allocation7 + $0x190] ss:$8 sps:$4 sm:$0xff]  }
 0x15e   :  { %2291 = vmatprep.subr.bf16.mxu0 %v6000_v4  ;;  %2331 = vmatpush1.bf16.msra.mxu1 %v6043_v9 }
 0x15f   :  { %2332 = vmatprep.subr.bf16.mxu1 %v6048_v13 }
 0x161   :  { %2292 = vmatpush1.bf16.msra.mxu0 %v5998_v48  ;;  %v6930_v48 = vsub.s32 0, %v6927_v60 }
 0x162   :  { %2293 = vmatprep.subr.bf16.mxu0 %v6003_v6  ;;  %2333 = vmatpush1.bf16.msra.mxu1 %v6046_v14  ;;  %v6933_v6 = vsub.s32 1, %v6927_v60 }
 0x163   :  { %2334 = vmatprep.subr.bf16.mxu1 %v6051_v22  ;;  %v406_v7 = vrot.slane %v401_v21, %v6930_v48 }
 0x165   :  { %2294 = vmatpush1.bf16.msra.mxu0 %v6001_v8  ;;  %v410_v8 = vrot.slane %v401_v21, %v6933_v6 }
 0x166   :  { %2295 = vmatprep.subr.bf16.mxu0 %v6006_v12  ;;  %2335 = vmatpush1.bf16.msra.mxu1 %v6049_v26 }
 0x167   :  { %2336 = vmatprep.subr.bf16.mxu1 %v6054_v30 }
 0x169   :  { %2296 = vmatpush1.bf16.msra.mxu0 %v6004_v40 }
 0x16a   :  { %2297 = vmatprep.subr.bf16.mxu0 %v6009_v15  ;;  %2337 = vmatpush1.bf16.msra.mxu1 %v6052_v33 }
 0x16b   :  { %2338 = vmatprep.subr.bf16.mxu1 %v6057_v38  ;;  %v6083_v38 = vld [vmem:[%s7081_s6 + $0x38] sm:$0xff]  }
 0x16d   :  { %2298 = vmatpush1.bf16.msra.mxu0 %v6007_v16 }
 0x16e   :  { %2299 = vmatprep.subr.bf16.mxu0 %v6012_v17  ;;  %2339 = vmatpush1.bf16.msra.mxu1 %v6055_v37  ;;  %v6082_v37 = vld [vmem:[%s7081_s6 + $0x78] sm:$0xff]  }
 0x16f   :  { %2340 = vmatprep.subr.bf16.mxu1 %v6060_v53  ;;  %v6084_v53 = vld [vmem:[%s7081_s6 + $0x70] sm:$0xff]  }
 0x170   :  { %v6919_v23 = vpop.f32.mrf.mxu0 }
 0x171   :  { %v6921_v24 = vpop.f32.mrf.mxu1  ;;  %2300 = vmatpush2.bf16.msra.mxu0 %v6010_v18  ;;  %v1578_v9 = vadd.f32 %v6919_v23, %v406_v7 }
 0x172   :  { %v6923_v27 = vpop.f32.mrf.mxu0  ;;  %2301 = vmatprep.subr.bf16.mxu0 %v6015_v19  ;;  %2341 = vmatpush2.bf16.msra.mxu1 %v6058_v41  ;;  %v6957_v41 = vsub.s32 3, %v6927_v60 }
 0x173   :  { %v6925_v28 = vpop.f32.mrf.mxu1  ;;  %2342 = vmatprep.subr.bf16.mxu1 %v6063_v42  ;;  %v1580_v12 = vadd.f32 %v6923_v27, %v410_v8  ;;  %v1619_v13 = vadd.f32 %v6921_v24, %v1578_v9  ;;  %v6086_v42 = vld [vmem:[%s7081_s6 + $0x68] sm:$0xff]  }
 0x174   :  { %v1581_v31 = vpop.f32.mrf.mxu0 }
 0x175   :  { %v1622_v32 = vpop.f32.mrf.mxu1  ;;  %2302 = vmatpush2.bf16.msra.mxu0 %v6013_v20  ;;  %v1621_v14 = vadd.f32 %v6925_v28, %v1580_v12 }
 0x176   :  { %v1582_v34 = vpop.f32.mrf.mxu0  ;;  %2303 = vmatprep.subr.bf16.mxu0 %v6018_v25  ;;  %2343 = vmatpush2.bf16.msra.mxu1 %v6061_v0  ;;  %v418_v0 = vrot.slane %v401_v21, %v6957_v41 }
 0x177   :  { %v1623_v35 = vpop.f32.mrf.mxu1  ;;  %2344 = vmatprep.subr.bf16.mxu1 %v6066_v45  ;;  %v6088_v45 = vld [vmem:[%s7081_s6 + $0x60] sm:$0xff]  }
 0x179   :  { %2304 = vmatpush2.bf16.msra.mxu0 %v6016_v29 }
 0x17a   :  { %2305 = vmatprep.subr.bf16.mxu0 %v6021_v36  ;;  %2345 = vmatpush2.bf16.msra.mxu1 %v6064_v49 }
 0x17b   :  { %2346 = vmatprep.subr.bf16.mxu1 %v6069_v51 }
 0x17d   :  { %2306 = vmatpush2.bf16.msra.mxu0 %v6019_v39  ;;  %v6951_v39 = vsub.s32 2, %v6927_v60 }
 0x17e   :  { %2307 = vmatprep.subr.bf16.mxu0 %v6024_v11  ;;  %2347 = vmatpush2.bf16.msra.mxu1 %v6067_v55  ;;  %v6085_v11 = vld [vmem:[%s7081_s6 + $0x30] sm:$0xff]  }
 0x17f   :  { %2348 = vmatprep.subr.bf16.mxu1 %v6072_v56 }
 0x181   :  { %2308 = vmatpush2.bf16.msra.mxu0 %v6022_v43  ;;  %v414_v43 = vrot.slane %v401_v21, %v6951_v39 }
 0x182   :  { %2309 = vmatprep.subr.bf16.mxu0 %v6027_v44  ;;  %2349 = vmatpush2.bf16.msra.mxu1 %v6070_v58  ;;  %v6087_v44 = vld [vmem:[%s7081_s6 + $0x28] sm:$0xff]  }
 0x183   :  { %2350 = vmatprep.subr.bf16.mxu1 %v6075_v61  ;;  %v6091_v61 = vld [vmem:[%s7081_s6 + $0x18] sm:$0xff]  }
 0x185   :  { %2310 = vmatpush2.bf16.msra.mxu0 %v6025_v46 }
 0x186   :  { %2311 = vmatprep.subr.bf16.mxu0 %v6030_v47  ;;  %2351 = vmatpush2.bf16.msra.mxu1 %v6073_v63  ;;  %v6089_v47 = vld [vmem:[%s7081_s6 + $0x20] sm:$0xff]  }
 0x187   :  { %2352 = vmatprep.subr.bf16.mxu1 %v6078_v2 }
 0x189   :  { %2312 = vmatpush2.bf16.msra.mxu0 %v6028_v52  ;;  %v6090_v52 = vld [vmem:[%s7081_s6 + $0x58] sm:$0xff]  }
 0x18a   :  { %2313 = vmatprep.subr.bf16.mxu0 %v6033_v54  ;;  %2353 = vmatpush2.bf16.msra.mxu1 %v6076_v50 }
 0x18b   :  { %2354 = vmatprep.subr.bf16.mxu1 %v6081_v5 }
 0x18d   :  { %2314 = vmatpush2.bf16.msra.mxu0 %v6031_v57 }
 0x18e   :  { %2355 = vmatpush2.bf16.msra.mxu1 %v6079_v10  ;;  %5561 = vmatprep.subr.bf16.mxu0 %v6082_v37 }
 0x191   :  { %v1700_v62 = vpop.f32.mrf.mxu1 }
 0x193   :  { %v1702_v1 = vpop.f32.mrf.mxu1 }
 0x195   :  { %v1704_v3 = vpop.f32.mrf.mxu1 }
 0x197   :  { %v1705_v4 = vpop.f32.mrf.mxu1 }
 0x1b0   :  { %v1659_v40 = vpop.f32.mrf.mxu0 }
 0x1b1   :  { %v1660_v15 = vadd.f32 %v1659_v40, %v1619_v13  ;;  %v6093_v13 = vld [vmem:[%s7081_s6 + $0x10] sm:$0xff]   ;;  %v6094_v40 = vld [vmem:[%s7081_s6 + $0x48] sm:$0xff]  }
 0x1b2   :  { %v1661_v16 = vpop.f32.mrf.mxu0 }
 0x1b3   :  { %v1701_v17 = vadd.f32 %v1700_v62, %v1660_v15  ;;  %v1662_v18 = vadd.f32 %v1661_v16, %v1621_v14  ;;  %v6095_v14 = vld [vmem:[%s7081_s6 + $0x8] sm:$0xff]   ;;  %v6096_v15 = vld [vmem:[%s7081_s6 + $0x40] sm:$0xff]  }
 0x1b4   :  { %v1663_v19 = vpop.f32.mrf.mxu0  ;;  %v6097_v16 = vld [vmem:[%s7081_s6] sm:$0xff]  }
 0x1b5   :  { %vm1871_vm0 = vcmp.gt.f32.partialorder %v1701_v17, 0.0  ;;  %v1875_v20 = vmul.f32 0.2, %v1701_v17  ;;  %v1703_v22 = vadd.f32 %v1702_v1, %v1662_v18  ;;  %v6092_v1 = vld [vmem:[%s7081_s6 + $0x50] sm:$0xff]  }
 0x1b6   :  { %v1664_v25 = vpop.f32.mrf.mxu0 }
 0x1b7   :  { %v1876_v26 = vmul.f32 0.2, %v1703_v22  ;;  %vm1872_vm1 = vcmp.gt.f32.partialorder %v1703_v22, 0.0  ;;  %v1879_v29 = vsel %vm1871_vm0, %v1701_v17, %v1875_v20  ;;  %v2549_v17 = vld [vmem:[%s7076_s1] sm:$0xff] }
 0x1b8   :  { %v1883_v27 = vpack.c.bf16 %v1879_v29, %v1879_v29  ;;  %2551 = vrot.lane.b32.xlu0 %v2549_v17, %s6756_s28  ;;  %v1951_v25 = vld [vmem:[#allocation8] sm:$0x3]  ;;  %v6137_v17 = vld [vmem:[#allocation14 + $0x28] ss:$16 sps:$4 sm:$0xff]  }
 0x1b9   :  { %v1880_v23 = vsel %vm1872_vm1, %v1703_v22, %v1876_v26  ;;  %v1956_v26 = vrot.slane %v1951_v25, %v6930_v48  ;;  %v1960_v29 = vrot.slane %v1951_v25, %v6933_v6  ;;  %v6148_v25 = vld [vmem:[#allocation14 + $0x1e4] ss:$16 sps:$4 sm:$0xff]  }
 0x1ba   :  { %v1884_v30 = vpack.c.bf16 %v1880_v23, %v1880_v23 }
 0x1bc   :  { %2315 = vmatprep.mubr.bf16.mxu0 %v1884_v30 }
 0x1bd   :  { %2316 = vmatmul.mubr.bf16.vlgmr.msra.gmra.mxu0 %v1883_v27 }
 0x1be   :  { %5562 = vmatpush3.bf16.msra.mxu0 %v6083_v38 }
 0x1bf   :  { %5563 = vmatprep.subr.bf16.mxu0 %v6084_v53 }
 0x1c2   :  { %5564 = vmatpush3.bf16.msra.mxu0 %v6085_v11  ;;  %v6757_v11 = vmov 1  }
 0x1c3   :  { %5565 = vmatprep.subr.bf16.mxu0 %v6086_v42  ;;  %5649 = vset.pattern.permute.xlu0 %v6757_v11 }
 0x1c6   :  { %5566 = vmatpush3.bf16.msra.mxu0 %v6087_v44 }
 0x1c7   :  { %5567 = vmatprep.subr.bf16.mxu0 %v6088_v45  ;;  %v6098_v45 = vld [vmem:[#allocation14 + $0xe0] ss:$16 sps:$4 sm:$0xff]  }
 0x1ca   :  { %5568 = vmatpush3.bf16.msra.mxu0 %v6089_v47  ;;  %v6101_v47 = vld [vmem:[#allocation14 + $0xe8] ss:$16 sps:$4 sm:$0xff]  }
 0x1cb   :  { %5569 = vmatprep.subr.bf16.mxu0 %v6090_v52  ;;  %v6103_v52 = vld [vmem:[#allocation14 + $0xec] ss:$16 sps:$4 sm:$0xff]  }
 0x1ce   :  { %5570 = vmatpush3.bf16.msra.mxu0 %v6091_v61  ;;  %v6107_v61 = vld [vmem:[#allocation14 + $0xc8] ss:$16 sps:$4 sm:$0xff]  }
 0x1cf   :  { %5571 = vmatprep.subr.bf16.mxu0 %v6092_v1  ;;  %v6110_v1 = vld [vmem:[#allocation14 + $0xa0] ss:$16 sps:$4 sm:$0xff]  }
 0x1d1   :  { %v1741_v24 = vpop.f32.mrf.mxu1 }
 0x1d2   :  { %v1742_v46 = vadd.f32 %v1741_v24, %v414_v43  ;;  %5572 = vmatpush3.bf16.msra.mxu0 %v6093_v13  ;;  %v5256_v43 = vld [vmem:[#allocation10] ss:$0 sm:$0xff]  ;;  %v6128_v13 = vld [vmem:[#allocation14 + $0x40] ss:$16 sps:$4 sm:$0xff]  }
 0x1d3   :  { %v1743_v31 = vpop.f32.mrf.mxu1  ;;  %5573 = vmatprep.subr.bf16.mxu0 %v6094_v40  ;;  %v6131_v40 = vld [vmem:[#allocation14 + $0x48] ss:$16 sps:$4 sm:$0xff]  }
 0x1d4   :  { %v1744_v49 = vadd.f32 %v1743_v31, %v418_v0 }
 0x1d5   :  { %v1745_v28 = vpop.f32.mrf.mxu1 }
 0x1d6   :  { %5574 = vmatpush3.bf16.msra.mxu0 %v6095_v14  ;;  %v6136_v14 = vld [vmem:[#allocation14 + $0x24] ss:$16 sps:$4 sm:$0xff]  }
 0x1d7   :  { %v1746_v32 = vpop.f32.mrf.mxu1  ;;  %5575 = vmatprep.subr.bf16.mxu0 %v6096_v15  ;;  %v6139_v15 = vld [vmem:[#allocation14 + $0x2c] ss:$16 sps:$4 sm:$0xff]  }
 0x1da   :  { %5576 = vmatpush3.bf16.msra.mxu0 %v6097_v16  ;;  %v6134_v16 = vld [vmem:[#allocation14 + $0x20] ss:$16 sps:$4 sm:$0xff]  }
 0x1db   :  { %3082 = vmatprep.subr.bf16.mxu0 %v6103_v52  ;;  %v6184_v52 = vld [vmem:[#allocation14 + $0x124] ss:$16 sps:$4 sm:$0xff]  }
 0x1f0   :  { %v1782_v33 = vpop.f32.mrf.mxu0 }
 0x1f1   :  { %v1783_v51 = vadd.f32 %v1782_v33, %v1742_v46  ;;  %v6100_v46 = vld [vmem:[#allocation14 + $0xe4] ss:$16 sps:$4 sm:$0xff]  }
 0x1f2   :  { %v1784_v34 = vpop.f32.mrf.mxu0  ;;  %3041 = vmatprep.subr.bf16.mxu1 %v6100_v46  ;;  %v6178_v46 = vld [vmem:[#allocation14 + $0x144] ss:$16 sps:$4 sm:$0xff]  }
 0x1f3   :  { %v1785_v56 = vadd.f32 %v1784_v34, %v1744_v49 }
 0x1f4   :  { %v1786_v35 = vpop.f32.mrf.mxu0 }
 0x1f6   :  { %v1787_v36 = vpop.f32.mrf.mxu0 }
 0x210   :  { %v1864_v55 = vpop.f32.mrf.mxu0 }
 0x211   :  { %v1823_v54 = vpop.f32.mrf.mxu1 }
 0x212   :  { %v1824_v57 = vadd.f32 %v1823_v54, %v1783_v51  ;;  %v1866_v59 = vpop.f32.mrf.mxu0  ;;  %v6106_v54 = vld [vmem:[#allocation14 + $0xc4] ss:$16 sps:$4 sm:$0xff]  }
 0x213   :  { %v1825_v58 = vpop.f32.mrf.mxu1 }
 0x214   :  { %v1865_v62 = vadd.f32 %v1864_v55, %v1824_v57  ;;  %v1826_v63 = vadd.f32 %v1825_v58, %v1785_v56  ;;  %v1868_v3 = vpop.f32.mrf.mxu0  ;;  %v6109_v56 = vld [vmem:[#allocation14 + $0xcc] ss:$16 sps:$4 sm:$0xff]   ;;  %v6104_v58 = vld [vmem:[#allocation14 + $0xc0] ss:$16 sps:$4 sm:$0xff]  }
 0x215   :  { %v1827_v2 = vpop.f32.mrf.mxu1  ;;  %v6118_v3 = vld [vmem:[#allocation14 + $0x84] ss:$16 sps:$4 sm:$0xff]  }
 0x216   :  { %vm1873_vm2 = vcmp.gt.f32.partialorder %v1865_v62, 0.0  ;;  %v1877_v50 = vmul.f32 0.2, %v1865_v62  ;;  %v1867_v4 = vadd.f32 %v1866_v59, %v1826_v63  ;;  %v1869_v10 = vpop.f32.mrf.mxu0  ;;  %v6115_v63 = vld [vmem:[#allocation14 + $0xac] ss:$16 sps:$4 sm:$0xff]  }
 0x217   :  { %v1828_v5 = vpop.f32.mrf.mxu1  ;;  %v6113_v2 = vld [vmem:[#allocation14 + $0xa8] ss:$16 sps:$4 sm:$0xff]   ;;  %v6124_v10 = vld [vmem:[#allocation14 + $0x64] ss:$16 sps:$4 sm:$0xff]  }
 0x218   :  { %vm1874_vm3 = vcmp.gt.f32.partialorder %v1867_v4, 0.0  ;;  %v1878_v21 = vmul.f32 0.2, %v1867_v4  ;;  %v1881_v7 = vsel %vm1873_vm2, %v1865_v62, %v1877_v50  ;;  %v6112_v62 = vld [vmem:[#allocation14 + $0xa4] ss:$16 sps:$4 sm:$0xff]  }
 0x219   :  { %v1885_v12 = vpack.c.bf16 %v1881_v7, %v1881_v7  ;;  %v6121_v50 = vld [vmem:[#allocation14 + $0x8c] ss:$16 sps:$4 sm:$0xff]   ;;  %v6119_v5 = vld [vmem:[#allocation14 + $0x88] ss:$16 sps:$4 sm:$0xff]   ;;  %v6122_v7 = vld [vmem:[#allocation14 + $0x60] ss:$16 sps:$4 sm:$0xff]  }
 0x21a   :  { %v1882_v8 = vsel %vm1874_vm3, %v1867_v4, %v1878_v21  ;;  %v6116_v4 = vld [vmem:[#allocation14 + $0x80] ss:$16 sps:$4 sm:$0xff]   ;;  %v6127_v21 = vld [vmem:[#allocation14 + $0x6c] ss:$16 sps:$4 sm:$0xff]  }
 0x21b   :  { %v1886_v9 = vpack.c.bf16 %v1882_v8, %v1882_v8  ;;  %v6125_v8 = vld [vmem:[#allocation14 + $0x68] ss:$16 sps:$4 sm:$0xff]  }
 0x21d   :  { %2356 = vmatprep.mubr.bf16.mxu1 %v1886_v9  ;;  %v6130_v9 = vld [vmem:[#allocation14 + $0x44] ss:$16 sps:$4 sm:$0xff]  }
 0x21e   :  { %2357 = vmatmul.mubr.bf16.vlgmr.msra.gmra.mxu1 %v1885_v12  ;;  %v6133_v12 = vld [vmem:[#allocation14 + $0x4c] ss:$16 sps:$4 sm:$0xff]  }
 0x21f   :  { %3042 = vmatpush1.bf16.msra.mxu1 %v6098_v45 }
 0x220   :  { %3043 = vmatprep.subr.bf16.mxu1 %v6106_v54  ;;  %v6187_v54 = vld [vmem:[#allocation14 + $0x12c] ss:$16 sps:$4 sm:$0xff]  }
 0x223   :  { %3044 = vmatpush1.bf16.msra.mxu1 %v6104_v58  ;;  %v6190_v58 = vld [vmem:[#allocation14 + $0x104] ss:$16 sps:$4 sm:$0xff]  }
 0x224   :  { %3045 = vmatprep.subr.bf16.mxu1 %v6112_v62  ;;  %v6196_v62 = vld [vmem:[#allocation16 + $0x18c] ss:$28 sps:$4 sm:$0xff]  }
 0x227   :  { %3046 = vmatpush1.bf16.msra.mxu1 %v6110_v1 }
 0x228   :  { %3047 = vmatprep.subr.bf16.mxu1 %v6118_v3 }
 0x22a   :  { %v2552_v51 = vpop.permute.xlu0 %2551 }
 0x22b   :  { %3048 = vmatpush1.bf16.msra.mxu1 %v6116_v4 }
 0x22c   :  { %3049 = vmatprep.subr.bf16.mxu1 %v6124_v10 }
 0x22f   :  { %3050 = vmatpush1.bf16.msra.mxu1 %v6122_v7 }
 0x230   :  { %3051 = vmatprep.subr.bf16.mxu1 %v6130_v9 }
 0x233   :  { %3052 = vmatpush1.bf16.msra.mxu1 %v6128_v13 }
 0x234   :  { %3053 = vmatprep.subr.bf16.mxu1 %v6136_v14 }
 0x237   :  { %3054 = vmatpush1.bf16.msra.mxu1 %v6134_v16 }
 0x27d   :  { %v2317_v18 = vpop.f32.mrf.mxu0 }
 0x27e   :  { %v2318_v23 = vadd.f32 %v2317_v18, %v1956_v26  ;;  %v6142_v18 = vld [vmem:[#allocation14 + $0x4] ss:$16 sps:$4 sm:$0xff]   ;;  %v6151_v26 = vld [vmem:[#allocation14 + $0x1ec] ss:$16 sps:$4 sm:$0xff]  }
 0x27f   :  { %v2319_v19 = vpop.f32.mrf.mxu0  ;;  %3055 = vmatprep.subr.bf16.mxu1 %v6142_v18 }
 0x280   :  { %v2320_v27 = vadd.f32 %v2319_v19, %v1960_v29  ;;  %v6145_v19 = vld [vmem:[#allocation14 + $0xc] ss:$16 sps:$4 sm:$0xff]   ;;  %v6146_v29 = vld [vmem:[#allocation14 + $0x1e0] ss:$16 sps:$4 sm:$0xff]  }
 0x281   :  { %v2321_v20 = vpop.f32.mrf.mxu0 }
 0x282   :  { %v6140_v20 = vld [vmem:[#allocation14] ss:$16 sps:$4 sm:$0xff]  }
 0x283   :  { %v2322_v22 = vpop.f32.mrf.mxu0  ;;  %3056 = vmatpush1.bf16.msra.mxu1 %v6140_v20 }
 0x284   :  { %v6143_v22 = vld [vmem:[#allocation14 + $0x8] ss:$16 sps:$4 sm:$0xff]   ;;  %3057 = vmatprep.subr.bf16.mxu1 %v6148_v25 }
 0x287   :  { %3058 = vmatpush2.bf16.msra.mxu1 %v6146_v29 }
 0x2de   :  { %v2358_v30 = vpop.f32.mrf.mxu1 }
 0x2df   :  { %v2359_v24 = vadd.f32 %v2358_v30, %v2318_v23  ;;  %v6149_v23 = vld [vmem:[#allocation14 + $0x1e8] ss:$16 sps:$4 sm:$0xff]   ;;  %v6154_v30 = vld [vmem:[#allocation14 + $0x1c4] ss:$16 sps:$4 sm:$0xff]  }
 0x2e0   :  { %v2360_v31 = vpop.f32.mrf.mxu1  ;;  %3059 = vmatprep.subr.bf16.mxu1 %v6154_v30 }
 0x2e1   :  { %vm2365_vm4 = vcmp.gt.f32.partialorder %v2359_v24, 0.0  ;;  %v2367_v28 = vmul.f32 0.2, %v2359_v24  ;;  %v2361_v32 = vadd.f32 %v2360_v31, %v2320_v27  ;;  %v6157_v27 = vld [vmem:[#allocation14 + $0x1cc] ss:$16 sps:$4 sm:$0xff]  }
 0x2e2   :  { %v2362_v33 = vpop.f32.mrf.mxu1  ;;  %v6155_v31 = vld [vmem:[#allocation14 + $0x1c8] ss:$16 sps:$4 sm:$0xff]  }
 0x2e3   :  { %vm2366_vm5 = vcmp.gt.f32.partialorder %v2361_v32, 0.0  ;;  %v2368_v34 = vmul.f32 0.2, %v2361_v32  ;;  %v2369_v35 = vsel %vm2365_vm4, %v2359_v24, %v2367_v28  ;;  %v6152_v24 = vld [vmem:[#allocation14 + $0x1c0] ss:$16 sps:$4 sm:$0xff]  }
 0x2e4   :  { %v2363_v36 = vpop.f32.mrf.mxu1  ;;  %v2371_v53 = vpack.c.bf16 %v2369_v35, %v2369_v35  ;;  %v6160_v28 = vld [vmem:[#allocation14 + $0x1a4] ss:$16 sps:$4 sm:$0xff]   ;;  %3060 = vmatpush2.bf16.msra.mxu1 %v6152_v24  ;;  %v6158_v33 = vld [vmem:[#allocation14 + $0x1a0] ss:$16 sps:$4 sm:$0xff]  }
 0x2e5   :  { %v2370_v37 = vsel %vm2366_vm5, %v2361_v32, %v2368_v34  ;;  %v6163_v32 = vld [vmem:[#allocation14 + $0x1ac] ss:$16 sps:$4 sm:$0xff]   ;;  %3061 = vmatprep.subr.bf16.mxu1 %v6160_v28  ;;  %v6161_v34 = vld [vmem:[#allocation14 + $0x1a8] ss:$16 sps:$4 sm:$0xff]   ;;  %v6166_v35 = vld [vmem:[#allocation14 + $0x184] ss:$16 sps:$4 sm:$0xff]  }
 0x2e6   :  { %v2372_v38 = vpack.c.bf16 %v2370_v37, %v2370_v37  ;;  %v6169_v36 = vld [vmem:[#allocation14 + $0x18c] ss:$16 sps:$4 sm:$0xff]   ;;  %v6164_v37 = vld [vmem:[#allocation14 + $0x180] ss:$16 sps:$4 sm:$0xff]   ;;  %v6197_v24 = vld [vmem:[#allocation16 + $0x508] ss:$28 sps:$4 sm:$0xff]  }
 0x2e7   :  { %v6205_v28 = vld [vmem:[#allocation16 + $0x4d4] ss:$28 sps:$4 sm:$0xff]  }
 0x2e8   :  { %2540 = vmatprep.mubr.bf16.mxu0 %v2372_v38  ;;  %3062 = vmatpush2.bf16.msra.mxu1 %v6158_v33  ;;  %v6167_v38 = vld [vmem:[#allocation14 + $0x188] ss:$16 sps:$4 sm:$0xff]   ;;  %v6203_v33 = vld [vmem:[#allocation16 + $0x4d0] ss:$28 sps:$4 sm:$0xff]  }
 0x2e9   :  { %2541 = vmatmul.mubr.bf16.vlgmr.msra.gmra.mxu0 %v2371_v53  ;;  %3063 = vmatprep.subr.bf16.mxu1 %v6166_v35  ;;  %v6172_v53 = vld [vmem:[#allocation14 + $0x164] ss:$16 sps:$4 sm:$0xff]   ;;  %v6211_v35 = vld [vmem:[#allocation16 + $0x49c] ss:$28 sps:$4 sm:$0xff]  }
 0x2ea   :  { %3083 = vmatpush1.bf16.msra.mxu0 %v6101_v47  ;;  %v6181_v47 = vld [vmem:[#allocation14 + $0x14c] ss:$16 sps:$4 sm:$0xff]  }
 0x2eb   :  { %3084 = vmatprep.subr.bf16.mxu0 %v6109_v56  ;;  %v6182_v56 = vld [vmem:[#allocation14 + $0x120] ss:$16 sps:$4 sm:$0xff]  }
 0x2ec   :  { %3064 = vmatpush2.bf16.msra.mxu1 %v6164_v37  ;;  %v6209_v37 = vld [vmem:[#allocation16 + $0x498] ss:$28 sps:$4 sm:$0xff]  }
 0x2ed   :  { %3065 = vmatprep.subr.bf16.mxu1 %v6172_v53  ;;  %v6217_v53 = vld [vmem:[#allocation16 + $0x464] ss:$28 sps:$4 sm:$0xff]  }
 0x2ee   :  { %3085 = vmatpush1.bf16.msra.mxu0 %v6107_v61  ;;  %v6193_v61 = vld [vmem:[#allocation14 + $0x10c] ss:$16 sps:$4 sm:$0xff]  }
 0x2ef   :  { %3086 = vmatprep.subr.bf16.mxu0 %v6115_v63  ;;  %v6199_v63 = vld [vmem:[#allocation16 + $0x50c] ss:$28 sps:$4 sm:$0xff]  }
 0x2f2   :  { %3087 = vmatpush1.bf16.msra.mxu0 %v6113_v2 }
 0x2f3   :  { %3088 = vmatprep.subr.bf16.mxu0 %v6121_v50 }
 0x2f6   :  { %3089 = vmatpush1.bf16.msra.mxu0 %v6119_v5 }
 0x2f7   :  { %3090 = vmatprep.subr.bf16.mxu0 %v6127_v21 }
 0x2fa   :  { %3091 = vmatpush1.bf16.msra.mxu0 %v6125_v8  ;;  %v2613_v8 = vld [vmem:[#allocation13] sm:$0x3] }
 0x2fb   :  { %3092 = vmatprep.subr.bf16.mxu0 %v6133_v12  ;;  %v2618_v9 = vrot.slane %v2613_v8, %v6930_v48  ;;  %v2622_v12 = vrot.slane %v2613_v8, %v6933_v6  ;;  %v6257_v8 = vld [vmem:[#allocation16 + $0x658] ss:$28 sps:$4 sm:$0xff]  }
 0x2fe   :  { %3093 = vmatpush1.bf16.msra.mxu0 %v6131_v40 }
 0x2ff   :  { %3094 = vmatprep.subr.bf16.mxu0 %v6139_v15 }
 0x302   :  { %3095 = vmatpush1.bf16.msra.mxu0 %v6137_v17 }
 0x303   :  { %3096 = vmatprep.subr.bf16.mxu0 %v6145_v19 }
 0x306   :  { %3097 = vmatpush1.bf16.msra.mxu0 %v6143_v22 }
 0x307   :  { %3098 = vmatprep.subr.bf16.mxu0 %v6151_v26 }
 0x30a   :  { %3099 = vmatpush2.bf16.msra.mxu0 %v6149_v23 }
 0x30b   :  { %3100 = vmatprep.subr.bf16.mxu0 %v6157_v27  ;;  %v6194_v27 = vld [vmem:[#allocation16 + $0x188] ss:$28 sps:$4 sm:$0xff]  }
 0x30e   :  { %3101 = vmatpush2.bf16.msra.mxu0 %v6155_v31  ;;  %v6202_v31 = vld [vmem:[#allocation16 + $0x154] ss:$28 sps:$4 sm:$0xff]  }
 0x30f   :  { %3102 = vmatprep.subr.bf16.mxu0 %v6163_v32  ;;  %v6200_v32 = vld [vmem:[#allocation16 + $0x150] ss:$28 sps:$4 sm:$0xff]  }
 0x312   :  { %3103 = vmatpush2.bf16.msra.mxu0 %v6161_v34  ;;  %v6208_v34 = vld [vmem:[#allocation16 + $0x11c] ss:$28 sps:$4 sm:$0xff]  }
 0x313   :  { %3104 = vmatprep.subr.bf16.mxu0 %v6169_v36  ;;  %v6206_v36 = vld [vmem:[#allocation16 + $0x118] ss:$28 sps:$4 sm:$0xff]  }
 0x316   :  { %3105 = vmatpush2.bf16.msra.mxu0 %v6167_v38  ;;  %v6214_v38 = vld [vmem:[#allocation16 + $0xe4] ss:$28 sps:$4 sm:$0xff]  }
 0x3a9   :  { %v5577_v42 = vpop.f32.mrf.mxu0 }
 0x3ab   :  { %v5578_v44 = vpop.f32.mrf.mxu0 }
 0x3ac   :  { %v5579_v0 = vadd.f32 %v5578_v44, %v5577_v42  ;;  %v6175_v42 = vld [vmem:[#allocation14 + $0x16c] ss:$16 sps:$4 sm:$0xff]   ;;  %v6173_v44 = vld [vmem:[#allocation14 + $0x168] ss:$16 sps:$4 sm:$0xff]  }
 0x3ad   :  { %v5580_v49 = vpop.f32.mrf.mxu0  ;;  %3106 = vmatprep.subr.bf16.mxu0 %v6175_v42  ;;  %v6212_v42 = vld [vmem:[#allocation16 + $0xe0] ss:$28 sps:$4 sm:$0xff]  }
 0x3ae   :  { %v7003_v55 = vadd.f32 %v5579_v0, %v5256_v43  ;;  %v6170_v43 = vld [vmem:[#allocation14 + $0x160] ss:$16 sps:$4 sm:$0xff]   ;;  %3107 = vmatpush2.bf16.msra.mxu0 %v6173_v44  ;;  %v6220_v44 = vld [vmem:[#allocation16 + $0xac] ss:$28 sps:$4 sm:$0xff]  }
 0x3af   :  { %v5581_v57 = vpop.f32.mrf.mxu0  ;;  %3066 = vmatpush2.bf16.msra.mxu1 %v6170_v43  ;;  %v6176_v49 = vld [vmem:[#allocation14 + $0x140] ss:$16 sps:$4 sm:$0xff]   ;;  %3108 = vmatprep.subr.bf16.mxu0 %v6181_v47 }
 0x3b0   :  { %2548 = vst [vmem:[%s7090_s15] sm:$0xff] %v7003_v55  ;;  %v2554_v59 = vmul.f32 %v2552_v51, %v7003_v55  ;;  %v6179_v51 = vld [vmem:[#allocation14 + $0x148] ss:$16 sps:$4 sm:$0xff]   ;;  %3067 = vmatprep.subr.bf16.mxu1 %v6178_v46  ;;  %v6215_v43 = vld [vmem:[#allocation16 + $0x460] ss:$28 sps:$4 sm:$0xff]   ;;  %v6226_v47 = vld [vmem:[#allocation16 + $0x74] ss:$28 sps:$4 sm:$0xff]  }
 0x3b1   :  { %v6185_v57 = vld [vmem:[#allocation14 + $0x128] ss:$16 sps:$4 sm:$0xff]  }
 0x3b2   :  { %2556 = vrot.lane.b32.xlu0 %v2554_v59, %s6758_s29  ;;  %3109 = vmatpush2.bf16.msra.mxu0 %v6179_v51  ;;  %v6191_v59 = vld [vmem:[#allocation14 + $0x108] ss:$16 sps:$4 sm:$0xff]   ;;  %v6224_v51 = vld [vmem:[#allocation16 + $0x70] ss:$28 sps:$4 sm:$0xff]  }
 0x3b3   :  { %3068 = vmatpush2.bf16.msra.mxu1 %v6176_v49  ;;  %3110 = vmatprep.subr.bf16.mxu0 %v6187_v54  ;;  %v6221_v46 = vld [vmem:[#allocation16 + $0x428] ss:$28 sps:$4 sm:$0xff]   ;;  %v6229_v49 = vld [vmem:[#allocation16 + $0x3f4] ss:$28 sps:$4 sm:$0xff]   ;;  %v6232_v54 = vld [vmem:[#allocation16 + $0x3c] ss:$28 sps:$4 sm:$0xff]  }
 0x3b4   :  { %3069 = vmatprep.subr.bf16.mxu1 %v6184_v52  ;;  %v6227_v52 = vld [vmem:[#allocation16 + $0x3f0] ss:$28 sps:$4 sm:$0xff]  }
 0x3b6   :  { %3111 = vmatpush2.bf16.msra.mxu0 %v6185_v57  ;;  %v6230_v57 = vld [vmem:[#allocation16 + $0x38] ss:$28 sps:$4 sm:$0xff]  }
 0x3b7   :  { %3070 = vmatpush2.bf16.msra.mxu1 %v6182_v56  ;;  %3112 = vmatprep.subr.bf16.mxu0 %v6193_v61  ;;  %v6235_v56 = vld [vmem:[#allocation16 + $0x3bc] ss:$28 sps:$4 sm:$0xff]  }
 0x3b8   :  { %3071 = vmatprep.subr.bf16.mxu1 %v6190_v58  ;;  %v6238_v58 = vld [vmem:[#allocation16 + $0x4] ss:$28 sps:$4 sm:$0xff]  }
 0x3b9   :  { %v6236_v61 = vld [vmem:[#allocation16] ss:$28 sps:$4 sm:$0xff]  }
 0x3ba   :  { %3113 = vmatpush2.bf16.msra.mxu0 %v6191_v59  ;;  %v6241_v59 = vld [vmem:[#allocation16 + $0x384] ss:$28 sps:$4 sm:$0xff]  }
 0x3bb   :  { %4625 = vmatprep.subr.bf16.mxu0 %v6199_v63  ;;  %v6244_v63 = vld [vmem:[#allocation16 + $0x34c] ss:$28 sps:$4 sm:$0xff]  }
 0x424   :  { %v2557_v0 = vpop.permute.xlu0 %2556 }
 0x425   :  { %v2559_v45 = vadd.f32 %v2557_v0, %v7003_v55  ;;  %v6188_v55 = vld [vmem:[#allocation14 + $0x100] ss:$16 sps:$4 sm:$0xff]   ;;  %v6223_v0 = vld [vmem:[#allocation16 + $0x42c] ss:$28 sps:$4 sm:$0xff]  }
 0x426   :  { %3072 = vmatpush2.bf16.msra.mxu1 %v6188_v55  ;;  %v6233_v55 = vld [vmem:[#allocation16 + $0x3b8] ss:$28 sps:$4 sm:$0xff]  }
 0x427   :  { %2563 = vperm.xlu1 %5647, %v2559_v45   ;;  %4584 = vmatprep.subr.bf16.mxu1 %v6196_v62  ;;  %v6239_v62 = vld [vmem:[#allocation16 + $0x380] ss:$28 sps:$4 sm:$0xff]  }
 0x42b   :  { %5648 = vset.pattern.permute.xlu1 %v6757_v11  ;;  %v2560_v11 = vld [vmem:[#allocation11] sm:$0xf] }
 0x42c   :  { %2588 = vperm.xlu1 %5648, %v2559_v45   ;;  %v2570_v1 = vrot.slane %v2560_v11, %v6930_v48  ;;  %v2574_v2 = vrot.slane %v2560_v11, %v6951_v39  ;;  %v2594_v3 = vrot.slane %v2560_v11, %v6933_v6  ;;  %v2598_v50 = vrot.slane %v2560_v11, %v6957_v41  ;;  %v6218_v45 = vld [vmem:[#allocation16 + $0xa8] ss:$28 sps:$4 sm:$0xff]  }
 0x42d   :  { %v6247_v11 = vld [vmem:[#allocation16 + $0x6cc] ss:$28 sps:$4 sm:$0xff]  }
 0x42e   :  { %v2580_v5 = vrot.slane %v2570_v1, %v6930_v48  ;;  %v2584_v10 = vrot.slane %v2574_v2, %v6930_v48  ;;  %v2604_v21 = vrot.slane %v2594_v3, %v6933_v6  ;;  %v2608_v7 = vrot.slane %v2598_v50, %v6933_v6  ;;  %v6242_v1 = vld [vmem:[#allocation16 + $0x348] ss:$28 sps:$4 sm:$0xff]   ;;  %v6250_v3 = vld [vmem:[#allocation16 + $0x314] ss:$28 sps:$4 sm:$0xff]  }
 0x42f   :  { %v6245_v2 = vld [vmem:[#allocation16 + $0x6c8] ss:$28 sps:$4 sm:$0xff]   ;;  %v6253_v50 = vld [vmem:[#allocation16 + $0x694] ss:$28 sps:$4 sm:$0xff]  }
 0x4a2   :  { %v2564_v4 = vpop.permute.xlu1 %2563 }
 0x4a3   :  { %v2585_v40 = vmul.f32 %v2580_v5, %v2564_v4  ;;  %v2586_v14 = vmul.f32 %v2584_v10, %v2564_v4  ;;  %v6248_v4 = vld [vmem:[#allocation16 + $0x310] ss:$28 sps:$4 sm:$0xff]   ;;  %v6256_v10 = vld [vmem:[#allocation16 + $0x2dc] ss:$28 sps:$4 sm:$0xff]  }
 0x4a4   :  { %v6251_v5 = vld [vmem:[#allocation16 + $0x690] ss:$28 sps:$4 sm:$0xff]  }
 0x4a7   :  { %v2589_v13 = vpop.permute.xlu1 %2588 }
 0x4a8   :  { %v2609_v15 = vmul.f32 %v2604_v21, %v2589_v13  ;;  %v2610_v16 = vmul.f32 %v2608_v7, %v2589_v13  ;;  %v6259_v21 = vld [vmem:[#allocation16 + $0x65c] ss:$28 sps:$4 sm:$0xff]  }
 0x4a9   :  { %v6254_v7 = vld [vmem:[#allocation16 + $0x2d8] ss:$28 sps:$4 sm:$0xff]   ;;  %v6260_v13 = vld [vmem:[#allocation16 + $0x2a0] ss:$28 sps:$4 sm:$0xff]  }
 0x4aa   :  { %v2611_v17 = vadd.f32 %v2609_v15, %v2585_v40  ;;  %v2612_v18 = vadd.f32 %v2610_v16, %v2586_v14  ;;  %v6263_v40 = vld [vmem:[#allocation16 + $0x620] ss:$28 sps:$4 sm:$0xff]   ;;  %v6268_v14 = vld [vmem:[#allocation16 + $0x26c] ss:$28 sps:$4 sm:$0xff]  }
 0x4ab   :  { %v6271_v15 = vld [vmem:[#allocation16 + $0x5ec] ss:$28 sps:$4 sm:$0xff]  }
 0x4ac   :  { %v2625_v19 = vadd.f32 %v2618_v9, %v2611_v17  ;;  %v2626_v20 = vadd.f32 %v2622_v12, %v2612_v18  ;;  %v6262_v9 = vld [vmem:[#allocation16 + $0x2a4] ss:$28 sps:$4 sm:$0xff]   ;;  %v6274_v18 = vld [vmem:[#allocation16 + $0x234] ss:$28 sps:$4 sm:$0xff]  }
 0x4ad   :  { %v6265_v12 = vld [vmem:[#allocation16 + $0x624] ss:$28 sps:$4 sm:$0xff]  }
 0x4ae   :  { %vm2627_vm6 = vcmp.gt.f32.partialorder %v2625_v19, 0.0  ;;  %v2629_v22 = vmul.f32 0.2, %v2625_v19  ;;  %vm2628_vm7 = vcmp.gt.f32.partialorder %v2626_v20, 0.0  ;;  %v2630_v25 = vmul.f32 0.2, %v2626_v20 }
 0x4af   :  { %v6266_v16 = vld [vmem:[#allocation16 + $0x268] ss:$28 sps:$4 sm:$0xff]  }
 0x4b0   :  { %v2632_v26 = vsel %vm2628_vm7, %v2626_v20, %v2630_v25  ;;  %v2631_v29 = vsel %vm2627_vm6, %v2625_v19, %v2629_v22  ;;  %v6269_v17 = vld [vmem:[#allocation16 + $0x5e8] ss:$28 sps:$4 sm:$0xff]   ;;  %v6277_v19 = vld [vmem:[#allocation16 + $0x5b4] ss:$28 sps:$4 sm:$0xff]   ;;  %v6280_v25 = vld [vmem:[#allocation16 + $0x1fc] ss:$28 sps:$4 sm:$0xff]  }
 0x4b1   :  { %v2634_v23 = vpack.c.bf16 %v2632_v26, %v2632_v26  ;;  %v2633_v30 = vpack.c.bf16 %v2631_v29, %v2631_v29  ;;  %v6272_v20 = vld [vmem:[#allocation16 + $0x230] ss:$28 sps:$4 sm:$0xff]   ;;  %v6283_v26 = vld [vmem:[#allocation16 + $0x57c] ss:$28 sps:$4 sm:$0xff]  }
 0x4b2   :  { %v6275_v22 = vld [vmem:[#allocation16 + $0x5b0] ss:$28 sps:$4 sm:$0xff]   ;;  %v6278_v29 = vld [vmem:[#allocation16 + $0x1f8] ss:$28 sps:$4 sm:$0xff]  }
 0x4b3   :  { %3073 = vmatprep.mubr.bf16.mxu1 %v2634_v23  ;;  %3114 = vmatprep.mubr.bf16.mxu0 %v2634_v23  ;;  %v6281_v23 = vld [vmem:[#allocation16 + $0x578] ss:$28 sps:$4 sm:$0xff]  }
 0x4b4   :  { %3074 = vmatmul.mubr.bf16.vlgmr.msra.gmra.mxu1 %v2633_v30  ;;  %3115 = vmatmul.mubr.bf16.vlgmr.msra.gmra.mxu0 %v2633_v30  ;;  %v6286_v30 = vld [vmem:[#allocation16 + $0x1c4] ss:$28 sps:$4 sm:$0xff]  }
 0x4b5   :  { %4585 = vmatpush1.bf16.msra.mxu1 %v6194_v27  ;;  %4626 = vmatpush1.bf16.msra.mxu0 %v6197_v24  ;;  %v6289_v27 = vld [vmem:[#allocation16 + $0x544] ss:$28 sps:$4 sm:$0xff]  }
 0x4b6   :  { %4586 = vmatprep.subr.bf16.mxu1 %v6202_v31  ;;  %4627 = vmatprep.subr.bf16.mxu0 %v6205_v28  ;;  %v6284_v24 = vld [vmem:[#allocation16 + $0x1c0] ss:$28 sps:$4 sm:$0xff]   ;;  %v6292_v28 = vld [vmem:[#allocation16 + $0x194] ss:$28 sps:$4 sm:$0xff]  }
 0x4b7   :  { %v6287_v31 = vld [vmem:[#allocation16 + $0x540] ss:$28 sps:$4 sm:$0xff]  }
 0x4b9   :  { %4587 = vmatpush1.bf16.msra.mxu1 %v6200_v32  ;;  %4628 = vmatpush1.bf16.msra.mxu0 %v6203_v33  ;;  %v6295_v32 = vld [vmem:[#allocation16 + $0x514] ss:$28 sps:$4 sm:$0xff]  }
 0x4ba   :  { %4588 = vmatprep.subr.bf16.mxu1 %v6208_v34  ;;  %4629 = vmatprep.subr.bf16.mxu0 %v6211_v35  ;;  %v2699_v33 = vld [vmem:[%s7086_s11] sm:$0xf] }
 0x4bb   :  { %v2704_v34 = vrot.slane %v2699_v33, %v6930_v48  ;;  %v2712_v35 = vrot.slane %v2699_v33, %v6951_v39 }
 0x4bd   :  { %4589 = vmatpush1.bf16.msra.mxu1 %v6206_v36  ;;  %4630 = vmatpush1.bf16.msra.mxu0 %v6209_v37 }
 0x4be   :  { %4590 = vmatprep.subr.bf16.mxu1 %v6214_v38  ;;  %4631 = vmatprep.subr.bf16.mxu0 %v6217_v53  ;;  %v2708_v38 = vrot.slane %v2699_v33, %v6933_v6  ;;  %v2716_v53 = vrot.slane %v2699_v33, %v6957_v41  ;;  %v6340_v33 = vld [vmem:[#allocation16 + $0x354] ss:$28 sps:$4 sm:$0xff]  }
 0x4c1   :  { %4591 = vmatpush1.bf16.msra.mxu1 %v6212_v42  ;;  %4632 = vmatpush1.bf16.msra.mxu0 %v6215_v43 }
 0x4c2   :  { %4592 = vmatprep.subr.bf16.mxu1 %v6220_v44  ;;  %4633 = vmatprep.subr.bf16.mxu0 %v6223_v0 }
 0x4c5   :  { %4593 = vmatpush1.bf16.msra.mxu1 %v6218_v45  ;;  %4634 = vmatpush1.bf16.msra.mxu0 %v6221_v46 }
 0x4c6   :  { %4594 = vmatprep.subr.bf16.mxu1 %v6226_v47  ;;  %4635 = vmatprep.subr.bf16.mxu0 %v6229_v49 }
 0x4c9   :  { %4595 = vmatpush1.bf16.msra.mxu1 %v6224_v51  ;;  %4636 = vmatpush1.bf16.msra.mxu0 %v6227_v52 }
 0x4ca   :  { %4596 = vmatprep.subr.bf16.mxu1 %v6232_v54  ;;  %4637 = vmatprep.subr.bf16.mxu0 %v6235_v56 }
 0x4cd   :  { %4597 = vmatpush1.bf16.msra.mxu1 %v6230_v57  ;;  %4638 = vmatpush1.bf16.msra.mxu0 %v6233_v55 }
 0x4ce   :  { %4598 = vmatprep.subr.bf16.mxu1 %v6238_v58  ;;  %4639 = vmatprep.subr.bf16.mxu0 %v6241_v59 }
 0x4d1   :  { %4599 = vmatpush1.bf16.msra.mxu1 %v6236_v61  ;;  %4640 = vmatpush1.bf16.msra.mxu0 %v6239_v62 }
 0x4d2   :  { %4600 = vmatprep.subr.bf16.mxu1 %v6244_v63  ;;  %4641 = vmatprep.subr.bf16.mxu0 %v6247_v11  ;;  %v6290_v11 = vld [vmem:[#allocation16 + $0x190] ss:$28 sps:$4 sm:$0xff]  }
 0x4d5   :  { %4601 = vmatpush2.bf16.msra.mxu1 %v6242_v1  ;;  %4642 = vmatpush2.bf16.msra.mxu0 %v6245_v2 }
 0x4d6   :  { %4602 = vmatprep.subr.bf16.mxu1 %v6250_v3  ;;  %4643 = vmatprep.subr.bf16.mxu0 %v6253_v50  ;;  %v6293_v3 = vld [vmem:[#allocation16 + $0x510] ss:$28 sps:$4 sm:$0xff]  }
 0x4d9   :  { %4603 = vmatpush2.bf16.msra.mxu1 %v6248_v4  ;;  %4644 = vmatpush2.bf16.msra.mxu0 %v6251_v5  ;;  %v6298_v4 = vld [vmem:[#allocation16 + $0x15c] ss:$28 sps:$4 sm:$0xff]  }
 0x4da   :  { %4604 = vmatprep.subr.bf16.mxu1 %v6256_v10  ;;  %4645 = vmatprep.subr.bf16.mxu0 %v6259_v21  ;;  %v6301_v5 = vld [vmem:[#allocation16 + $0x4dc] ss:$28 sps:$4 sm:$0xff]  }
 0x4db   :  { %v6296_v10 = vld [vmem:[#allocation16 + $0x158] ss:$28 sps:$4 sm:$0xff]  }
 0x4dc   :  { %v6299_v21 = vld [vmem:[#allocation16 + $0x4d8] ss:$28 sps:$4 sm:$0xff]  }
 0x4dd   :  { %4605 = vmatpush2.bf16.msra.mxu1 %v6254_v7  ;;  %4646 = vmatpush2.bf16.msra.mxu0 %v6257_v8  ;;  %v6304_v7 = vld [vmem:[#allocation16 + $0x124] ss:$28 sps:$4 sm:$0xff]  }
 0x4de   :  { %4606 = vmatprep.subr.bf16.mxu1 %v6262_v9  ;;  %4647 = vmatprep.subr.bf16.mxu0 %v6265_v12  ;;  %v6307_v8 = vld [vmem:[#allocation16 + $0x4a4] ss:$28 sps:$4 sm:$0xff]  }
 0x4df   :  { %v6302_v9 = vld [vmem:[#allocation16 + $0x120] ss:$28 sps:$4 sm:$0xff]  }
 0x4e0   :  { %v6305_v12 = vld [vmem:[#allocation16 + $0x4a0] ss:$28 sps:$4 sm:$0xff]  }
 0x4e1   :  { %4607 = vmatpush2.bf16.msra.mxu1 %v6260_v13  ;;  %4648 = vmatpush2.bf16.msra.mxu0 %v6263_v40  ;;  %v6310_v13 = vld [vmem:[#allocation16 + $0xec] ss:$28 sps:$4 sm:$0xff]  }
 0x4e2   :  { %4608 = vmatprep.subr.bf16.mxu1 %v6268_v14  ;;  %4649 = vmatprep.subr.bf16.mxu0 %v6271_v15  ;;  %v6313_v40 = vld [vmem:[#allocation16 + $0x46c] ss:$28 sps:$4 sm:$0xff]  }
 0x4e3   :  { %v6308_v14 = vld [vmem:[#allocation16 + $0xe8] ss:$28 sps:$4 sm:$0xff]  }
 0x4e4   :  { %v6311_v15 = vld [vmem:[#allocation16 + $0x468] ss:$28 sps:$4 sm:$0xff]  }
 0x4e5   :  { %4609 = vmatpush2.bf16.msra.mxu1 %v6266_v16  ;;  %4650 = vmatpush2.bf16.msra.mxu0 %v6269_v17  ;;  %v6316_v16 = vld [vmem:[#allocation16 + $0xb4] ss:$28 sps:$4 sm:$0xff]  }
 0x4e6   :  { %4610 = vmatprep.subr.bf16.mxu1 %v6274_v18  ;;  %4651 = vmatprep.subr.bf16.mxu0 %v6277_v19  ;;  %v6319_v17 = vld [vmem:[#allocation16 + $0x434] ss:$28 sps:$4 sm:$0xff]  }
 0x4e7   :  { %v6314_v18 = vld [vmem:[#allocation16 + $0xb0] ss:$28 sps:$4 sm:$0xff]  }
 0x4e8   :  { %v6317_v19 = vld [vmem:[#allocation16 + $0x430] ss:$28 sps:$4 sm:$0xff]  }
 0x4e9   :  { %4611 = vmatpush2.bf16.msra.mxu1 %v6272_v20  ;;  %4652 = vmatpush2.bf16.msra.mxu0 %v6275_v22  ;;  %v6322_v20 = vld [vmem:[#allocation16 + $0x7c] ss:$28 sps:$4 sm:$0xff]  }
 0x4ea   :  { %4612 = vmatprep.subr.bf16.mxu1 %v6280_v25  ;;  %4653 = vmatprep.subr.bf16.mxu0 %v6283_v26  ;;  %v6325_v22 = vld [vmem:[#allocation16 + $0x3fc] ss:$28 sps:$4 sm:$0xff]  }
 0x4eb   :  { %v6320_v25 = vld [vmem:[#allocation16 + $0x78] ss:$28 sps:$4 sm:$0xff]  }
 0x4ec   :  { %v6323_v26 = vld [vmem:[#allocation16 + $0x3f8] ss:$28 sps:$4 sm:$0xff]  }
 0x4ed   :  { %4613 = vmatpush2.bf16.msra.mxu1 %v6278_v29  ;;  %4654 = vmatpush2.bf16.msra.mxu0 %v6281_v23  ;;  %v6328_v29 = vld [vmem:[#allocation16 + $0x44] ss:$28 sps:$4 sm:$0xff]  }
 0x4ee   :  { %4614 = vmatprep.subr.bf16.mxu1 %v6286_v30  ;;  %4655 = vmatprep.subr.bf16.mxu0 %v6289_v27  ;;  %v6331_v23 = vld [vmem:[#allocation16 + $0x3c4] ss:$28 sps:$4 sm:$0xff]  }
 0x4ef   :  { %v6326_v30 = vld [vmem:[#allocation16 + $0x40] ss:$28 sps:$4 sm:$0xff]  }
 0x4f0   :  { %v6329_v27 = vld [vmem:[#allocation16 + $0x3c0] ss:$28 sps:$4 sm:$0xff]  }
 0x4f1   :  { %4615 = vmatpush2.bf16.msra.mxu1 %v6284_v24  ;;  %4656 = vmatpush2.bf16.msra.mxu0 %v6287_v31  ;;  %v6334_v24 = vld [vmem:[#allocation16 + $0xc] ss:$28 sps:$4 sm:$0xff]  }
 0x4f2   :  { %4666 = vmatprep.subr.bf16.mxu1 %v6292_v28  ;;  %4707 = vmatprep.subr.bf16.mxu0 %v6295_v32  ;;  %v6337_v31 = vld [vmem:[#allocation16 + $0x38c] ss:$28 sps:$4 sm:$0xff]  }
 0x4f3   :  { %v6332_v28 = vld [vmem:[#allocation16 + $0x8] ss:$28 sps:$4 sm:$0xff]  }
 0x4f4   :  { %v6335_v32 = vld [vmem:[#allocation16 + $0x388] ss:$28 sps:$4 sm:$0xff]  }
 0x574   :  { %v3075_v36 = vpop.f32.mrf.mxu1  ;;  %v3116_v37 = vpop.f32.mrf.mxu0 }
 0x575   :  { %v3076_v42 = vadd.f32 %v3075_v36, %v2704_v34  ;;  %v3117_v43 = vadd.f32 %v3116_v37, %v2712_v35  ;;  %v6343_v34 = vld [vmem:[#allocation16 + $0x6d4] ss:$28 sps:$4 sm:$0xff]   ;;  %v6346_v37 = vld [vmem:[#allocation16 + $0x31c] ss:$28 sps:$4 sm:$0xff]  }
 0x576   :  { %v3077_v44 = vpop.f32.mrf.mxu1  ;;  %v3118_v0 = vpop.f32.mrf.mxu0  ;;  %v6338_v35 = vld [vmem:[#allocation16 + $0x350] ss:$28 sps:$4 sm:$0xff]  }
 0x577   :  { %v3127_v45 = vmul.f32 0.2, %v3076_v42  ;;  %vm3123_vm8 = vcmp.gt.f32.partialorder %v3076_v42, 0.0  ;;  %v3129_v46 = vmul.f32 0.2, %v3117_v43  ;;  %v3078_v47 = vadd.f32 %v3077_v44, %v2708_v38 }
 0x578   :  { %v3119_v49 = vadd.f32 %v3118_v0, %v2716_v53  ;;  %v3079_v51 = vpop.f32.mrf.mxu1  ;;  %v3120_v52 = vpop.f32.mrf.mxu0  ;;  %vm3125_vm9 = vcmp.gt.f32.partialorder %v3117_v43, 0.0  ;;  %v6341_v36 = vld [vmem:[#allocation16 + $0x6d0] ss:$28 sps:$4 sm:$0xff]   ;;  %v6349_v38 = vld [vmem:[#allocation16 + $0x69c] ss:$28 sps:$4 sm:$0xff]  }
 0x579   :  { %vm3124_vm10 = vcmp.gt.f32.partialorder %v3078_v47, 0.0  ;;  %v3128_v54 = vmul.f32 0.2, %v3078_v47  ;;  %v3131_v55 = vsel %vm3123_vm8, %v3076_v42, %v3127_v45  ;;  %v3133_v59 = vsel %vm3125_vm9, %v3117_v43, %v3129_v46  ;;  %v6344_v53 = vld [vmem:[#allocation16 + $0x318] ss:$28 sps:$4 sm:$0xff]  }
 0x57a   :  { %v3080_v56 = vpop.f32.mrf.mxu1  ;;  %v3121_v57 = vpop.f32.mrf.mxu0  ;;  %vm3126_vm11 = vcmp.gt.f32.partialorder %v3119_v49, 0.0  ;;  %v3130_v58 = vmul.f32 0.2, %v3119_v49  ;;  %v7031_v1 = vpack.c.bf16 %v3131_v55, %v3131_v55  ;;  %v7035_v50 = vpack.c.bf16 %v3133_v59, %v3133_v59  ;;  %v6347_v42 = vld [vmem:[#allocation16 + $0x698] ss:$28 sps:$4 sm:$0xff]  }
 0x57b   :  { %v3132_v61 = vsel %vm3124_vm10, %v3078_v47, %v3128_v54  ;;  %v6352_v43 = vld [vmem:[#allocation16 + $0x2e4] ss:$28 sps:$4 sm:$0xff]   ;;  %v6358_v46 = vld [vmem:[#allocation16 + $0x2ac] ss:$28 sps:$4 sm:$0xff]   ;;  %v6364_v52 = vld [vmem:[#allocation16 + $0x274] ss:$28 sps:$4 sm:$0xff]  }
 0x57c   :  { %v7029_v62 = vpack.c.bf16 %v3132_v61, %v3132_v61  ;;  %v3134_v63 = vsel %vm3126_vm11, %v3119_v49, %v3130_v58  ;;  %v6355_v44 = vld [vmem:[#allocation16 + $0x664] ss:$28 sps:$4 sm:$0xff]   ;;  %v6361_v47 = vld [vmem:[#allocation16 + $0x62c] ss:$28 sps:$4 sm:$0xff]   ;;  %v6367_v54 = vld [vmem:[#allocation16 + $0x5f4] ss:$28 sps:$4 sm:$0xff]  }
 0x57d   :  { %v7033_v2 = vpack.c.bf16 %v3134_v63, %v3134_v63  ;;  %v6350_v0 = vld [vmem:[#allocation16 + $0x2e0] ss:$28 sps:$4 sm:$0xff]   ;;  %v6356_v49 = vld [vmem:[#allocation16 + $0x2a8] ss:$28 sps:$4 sm:$0xff]   ;;  %v6362_v56 = vld [vmem:[#allocation16 + $0x270] ss:$28 sps:$4 sm:$0xff]  }
 0x57e   :  { %4616 = vmatprep.mubr.bf16.mxu1 %v7029_v62  ;;  %v6353_v45 = vld [vmem:[#allocation16 + $0x660] ss:$28 sps:$4 sm:$0xff]   ;;  %v6359_v51 = vld [vmem:[#allocation16 + $0x628] ss:$28 sps:$4 sm:$0xff]   ;;  %v6365_v57 = vld [vmem:[#allocation16 + $0x5f0] ss:$28 sps:$4 sm:$0xff]  }
 0x57f   :  { %4657 = vmatprep.mubr.bf16.mxu0 %v7033_v2  ;;  %4617 = vmatmul.mubr.bf16.vlgmr.msra.gmra.mxu1 %v7031_v1  ;;  %v6370_v55 = vld [vmem:[#allocation16 + $0x23c] ss:$28 sps:$4 sm:$0xff]   ;;  %v6376_v63 = vld [vmem:[#allocation16 + $0x204] ss:$28 sps:$4 sm:$0xff]  }
 0x580   :  { %4658 = vmatmul.mubr.bf16.vlgmr.msra.gmra.mxu0 %v7035_v50  ;;  %4667 = vmatpush1.bf16.msra.mxu1 %v6290_v11  ;;  %v6373_v58 = vld [vmem:[#allocation16 + $0x5bc] ss:$28 sps:$4 sm:$0xff]   ;;  %v6379_v11 = vld [vmem:[#allocation16 + $0x584] ss:$28 sps:$4 sm:$0xff]  }
 0x581   :  { %4708 = vmatpush1.bf16.msra.mxu0 %v6293_v3  ;;  %4698 = vmatprep.mubr.bf16.mxu1 %v7029_v62  ;;  %v6368_v59 = vld [vmem:[#allocation16 + $0x238] ss:$28 sps:$4 sm:$0xff]   ;;  %v6374_v3 = vld [vmem:[#allocation16 + $0x200] ss:$28 sps:$4 sm:$0xff]  }
 0x582   :  { %4739 = vmatprep.mubr.bf16.mxu0 %v7033_v2  ;;  %4668 = vmatprep.subr.bf16.mxu1 %v6298_v4  ;;  %v6371_v61 = vld [vmem:[#allocation16 + $0x5b8] ss:$28 sps:$4 sm:$0xff]   ;;  %v6377_v4 = vld [vmem:[#allocation16 + $0x580] ss:$28 sps:$4 sm:$0xff]  }
 0x583   :  { %4709 = vmatprep.subr.bf16.mxu0 %v6301_v5  ;;  %v6382_v5 = vld [vmem:[#allocation16 + $0x1cc] ss:$28 sps:$4 sm:$0xff]  }
 0x584   :  { %4669 = vmatpush1.bf16.msra.mxu1 %v6296_v10  ;;  %v6385_v10 = vld [vmem:[#allocation16 + $0x54c] ss:$28 sps:$4 sm:$0xff]  }
 0x585   :  { %4710 = vmatpush1.bf16.msra.mxu0 %v6299_v21  ;;  %4670 = vmatprep.subr.bf16.mxu1 %v6304_v7  ;;  %v6380_v21 = vld [vmem:[#allocation16 + $0x1c8] ss:$28 sps:$4 sm:$0xff]  }
 0x586   :  { %4711 = vmatprep.subr.bf16.mxu0 %v6307_v8  ;;  %v6383_v7 = vld [vmem:[#allocation16 + $0x548] ss:$28 sps:$4 sm:$0xff]   ;;  %v6388_v8 = vld [vmem:[#allocation16 + $0x19c] ss:$28 sps:$4 sm:$0xff]  }
 0x588   :  { %4671 = vmatpush1.bf16.msra.mxu1 %v6302_v9  ;;  %v6391_v9 = vld [vmem:[#allocation16 + $0x51c] ss:$28 sps:$4 sm:$0xff]  }
 0x589   :  { %4712 = vmatpush1.bf16.msra.mxu0 %v6305_v12  ;;  %4672 = vmatprep.subr.bf16.mxu1 %v6310_v13  ;;  %v6386_v12 = vld [vmem:[#allocation16 + $0x198] ss:$28 sps:$4 sm:$0xff]  }
 0x58a   :  { %4713 = vmatprep.subr.bf16.mxu0 %v6313_v40  ;;  %v6389_v13 = vld [vmem:[#allocation16 + $0x518] ss:$28 sps:$4 sm:$0xff]   ;;  %v6394_v40 = vld [vmem:[#allocation16 + $0x164] ss:$28 sps:$4 sm:$0xff]  }
 0x58c   :  { %4673 = vmatpush1.bf16.msra.mxu1 %v6308_v14  ;;  %v6397_v14 = vld [vmem:[#allocation16 + $0x4e4] ss:$28 sps:$4 sm:$0xff]  }
 0x58d   :  { %4714 = vmatpush1.bf16.msra.mxu0 %v6311_v15  ;;  %4674 = vmatprep.subr.bf16.mxu1 %v6316_v16  ;;  %v6392_v15 = vld [vmem:[#allocation16 + $0x160] ss:$28 sps:$4 sm:$0xff]  }
 0x58e   :  { %4715 = vmatprep.subr.bf16.mxu0 %v6319_v17  ;;  %v6395_v16 = vld [vmem:[#allocation16 + $0x4e0] ss:$28 sps:$4 sm:$0xff]   ;;  %v6400_v17 = vld [vmem:[#allocation16 + $0x12c] ss:$28 sps:$4 sm:$0xff]  }
 0x590   :  { %4675 = vmatpush1.bf16.msra.mxu1 %v6314_v18  ;;  %v6403_v18 = vld [vmem:[#allocation16 + $0x4ac] ss:$28 sps:$4 sm:$0xff]  }
 0x591   :  { %4716 = vmatpush1.bf16.msra.mxu0 %v6317_v19  ;;  %4676 = vmatprep.subr.bf16.mxu1 %v6322_v20  ;;  %v6398_v19 = vld [vmem:[#allocation16 + $0x128] ss:$28 sps:$4 sm:$0xff]  }
 0x592   :  { %4717 = vmatprep.subr.bf16.mxu0 %v6325_v22  ;;  %v6401_v20 = vld [vmem:[#allocation16 + $0x4a8] ss:$28 sps:$4 sm:$0xff]   ;;  %v6406_v22 = vld [vmem:[#allocation16 + $0xf4] ss:$28 sps:$4 sm:$0xff]  }
 0x594   :  { %4677 = vmatpush1.bf16.msra.mxu1 %v6320_v25  ;;  %v6409_v25 = vld [vmem:[#allocation16 + $0x474] ss:$28 sps:$4 sm:$0xff]  }
 0x595   :  { %4718 = vmatpush1.bf16.msra.mxu0 %v6323_v26  ;;  %4678 = vmatprep.subr.bf16.mxu1 %v6328_v29  ;;  %v6404_v26 = vld [vmem:[#allocation16 + $0xf0] ss:$28 sps:$4 sm:$0xff]  }
 0x596   :  { %4719 = vmatprep.subr.bf16.mxu0 %v6331_v23  ;;  %v6407_v29 = vld [vmem:[#allocation16 + $0x470] ss:$28 sps:$4 sm:$0xff]   ;;  %v6412_v23 = vld [vmem:[#allocation16 + $0xbc] ss:$28 sps:$4 sm:$0xff]  }
 0x598   :  { %4679 = vmatpush1.bf16.msra.mxu1 %v6326_v30  ;;  %v6415_v30 = vld [vmem:[#allocation16 + $0x43c] ss:$28 sps:$4 sm:$0xff]  }
 0x599   :  { %4720 = vmatpush1.bf16.msra.mxu0 %v6329_v27  ;;  %4680 = vmatprep.subr.bf16.mxu1 %v6334_v24  ;;  %v6410_v27 = vld [vmem:[#allocation16 + $0xb8] ss:$28 sps:$4 sm:$0xff]  }
 0x59a   :  { %4721 = vmatprep.subr.bf16.mxu0 %v6337_v31  ;;  %v6413_v24 = vld [vmem:[#allocation16 + $0x438] ss:$28 sps:$4 sm:$0xff]   ;;  %v6418_v31 = vld [vmem:[#allocation16 + $0x84] ss:$28 sps:$4 sm:$0xff]  }
 0x59c   :  { %4681 = vmatpush1.bf16.msra.mxu1 %v6332_v28  ;;  %v6421_v28 = vld [vmem:[#allocation16 + $0x404] ss:$28 sps:$4 sm:$0xff]  }
 0x59d   :  { %4722 = vmatpush1.bf16.msra.mxu0 %v6335_v32  ;;  %4682 = vmatprep.subr.bf16.mxu1 %v6340_v33  ;;  %v6416_v32 = vld [vmem:[#allocation16 + $0x80] ss:$28 sps:$4 sm:$0xff]  }
 0x59e   :  { %4723 = vmatprep.subr.bf16.mxu0 %v6343_v34  ;;  %v6419_v33 = vld [vmem:[#allocation16 + $0x400] ss:$28 sps:$4 sm:$0xff]   ;;  %v6424_v34 = vld [vmem:[#allocation16 + $0x4c] ss:$28 sps:$4 sm:$0xff]  }
 0x5a0   :  { %4683 = vmatpush2.bf16.msra.mxu1 %v6338_v35  ;;  %v6427_v35 = vld [vmem:[#allocation16 + $0x3cc] ss:$28 sps:$4 sm:$0xff]  }
 0x5a1   :  { %4724 = vmatpush2.bf16.msra.mxu0 %v6341_v36  ;;  %4684 = vmatprep.subr.bf16.mxu1 %v6346_v37  ;;  %v6422_v36 = vld [vmem:[#allocation16 + $0x48] ss:$28 sps:$4 sm:$0xff]  }
 0x5a2   :  { %4725 = vmatprep.subr.bf16.mxu0 %v6349_v38  ;;  %v6425_v37 = vld [vmem:[#allocation16 + $0x3c8] ss:$28 sps:$4 sm:$0xff]   ;;  %v6430_v38 = vld [vmem:[#allocation16 + $0x14] ss:$28 sps:$4 sm:$0xff]  }
 0x5a4   :  { %4685 = vmatpush2.bf16.msra.mxu1 %v6344_v53  ;;  %v6433_v53 = vld [vmem:[#allocation16 + $0x394] ss:$28 sps:$4 sm:$0xff]  }
 0x5a5   :  { %4726 = vmatpush2.bf16.msra.mxu0 %v6347_v42  ;;  %4686 = vmatprep.subr.bf16.mxu1 %v6352_v43  ;;  %v6428_v42 = vld [vmem:[#allocation16 + $0x10] ss:$28 sps:$4 sm:$0xff]  }
 0x5a6   :  { %4727 = vmatprep.subr.bf16.mxu0 %v6355_v44  ;;  %v6431_v43 = vld [vmem:[#allocation16 + $0x390] ss:$28 sps:$4 sm:$0xff]   ;;  %v6436_v44 = vld [vmem:[#allocation16 + $0x35c] ss:$28 sps:$4 sm:$0xff]  }
 0x5a8   :  { %4687 = vmatpush2.bf16.msra.mxu1 %v6350_v0  ;;  %v6439_v0 = vld [vmem:[#allocation16 + $0x6dc] ss:$28 sps:$4 sm:$0xff]  }
 0x5a9   :  { %4728 = vmatpush2.bf16.msra.mxu0 %v6353_v45  ;;  %4688 = vmatprep.subr.bf16.mxu1 %v6358_v46  ;;  %v6434_v45 = vld [vmem:[#allocation16 + $0x358] ss:$28 sps:$4 sm:$0xff]  }
 0x5aa   :  { %4729 = vmatprep.subr.bf16.mxu0 %v6361_v47  ;;  %v6437_v46 = vld [vmem:[#allocation16 + $0x6d8] ss:$28 sps:$4 sm:$0xff]   ;;  %v6442_v47 = vld [vmem:[#allocation16 + $0x324] ss:$28 sps:$4 sm:$0xff]  }
 0x5ac   :  { %4689 = vmatpush2.bf16.msra.mxu1 %v6356_v49  ;;  %v6445_v49 = vld [vmem:[#allocation16 + $0x6a4] ss:$28 sps:$4 sm:$0xff]  }
 0x5ad   :  { %4730 = vmatpush2.bf16.msra.mxu0 %v6359_v51  ;;  %4690 = vmatprep.subr.bf16.mxu1 %v6364_v52  ;;  %v6440_v51 = vld [vmem:[#allocation16 + $0x320] ss:$28 sps:$4 sm:$0xff]  }
 0x5ae   :  { %4731 = vmatprep.subr.bf16.mxu0 %v6367_v54  ;;  %v6443_v52 = vld [vmem:[#allocation16 + $0x6a0] ss:$28 sps:$4 sm:$0xff]   ;;  %v6448_v54 = vld [vmem:[#allocation16 + $0x2ec] ss:$28 sps:$4 sm:$0xff]  }
 0x5b0   :  { %4691 = vmatpush2.bf16.msra.mxu1 %v6362_v56  ;;  %v6451_v56 = vld [vmem:[#allocation16 + $0x66c] ss:$28 sps:$4 sm:$0xff]  }
 0x5b1   :  { %4732 = vmatpush2.bf16.msra.mxu0 %v6365_v57  ;;  %4692 = vmatprep.subr.bf16.mxu1 %v6370_v55  ;;  %v6446_v57 = vld [vmem:[#allocation16 + $0x2e8] ss:$28 sps:$4 sm:$0xff]  }
 0x5b2   :  { %4733 = vmatprep.subr.bf16.mxu0 %v6373_v58  ;;  %v6449_v55 = vld [vmem:[#allocation16 + $0x668] ss:$28 sps:$4 sm:$0xff]   ;;  %v6454_v58 = vld [vmem:[#allocation16 + $0x2b4] ss:$28 sps:$4 sm:$0xff]  }
 0x5b4   :  { %4693 = vmatpush2.bf16.msra.mxu1 %v6368_v59  ;;  %v6457_v59 = vld [vmem:[#allocation16 + $0x634] ss:$28 sps:$4 sm:$0xff]  }
 0x5b5   :  { %4734 = vmatpush2.bf16.msra.mxu0 %v6371_v61  ;;  %4694 = vmatprep.subr.bf16.mxu1 %v6376_v63  ;;  %v6452_v61 = vld [vmem:[#allocation16 + $0x2b0] ss:$28 sps:$4 sm:$0xff]  }
 0x5b6   :  { %4735 = vmatprep.subr.bf16.mxu0 %v6379_v11  ;;  %v6455_v63 = vld [vmem:[#allocation16 + $0x630] ss:$28 sps:$4 sm:$0xff]   ;;  %v6460_v11 = vld [vmem:[#allocation16 + $0x27c] ss:$28 sps:$4 sm:$0xff]  }
 0x5b8   :  { %4695 = vmatpush2.bf16.msra.mxu1 %v6374_v3  ;;  %v6463_v3 = vld [vmem:[#allocation16 + $0x5fc] ss:$28 sps:$4 sm:$0xff]  }
 0x5b9   :  { %4736 = vmatpush2.bf16.msra.mxu0 %v6377_v4  ;;  %4696 = vmatprep.subr.bf16.mxu1 %v6382_v5  ;;  %v6458_v4 = vld [vmem:[#allocation16 + $0x278] ss:$28 sps:$4 sm:$0xff]  }
 0x5ba   :  { %4737 = vmatprep.subr.bf16.mxu0 %v6385_v10  ;;  %v6461_v5 = vld [vmem:[#allocation16 + $0x5f8] ss:$28 sps:$4 sm:$0xff]   ;;  %v6466_v10 = vld [vmem:[#allocation16 + $0x244] ss:$28 sps:$4 sm:$0xff]  }
 0x5bc   :  { %4697 = vmatpush2.bf16.msra.mxu1 %v6380_v21  ;;  %v6469_v21 = vld [vmem:[#allocation16 + $0x5c4] ss:$28 sps:$4 sm:$0xff]  }
 0x5bd   :  { %4738 = vmatpush2.bf16.msra.mxu0 %v6383_v7  ;;  %4748 = vmatprep.subr.bf16.mxu1 %v6388_v8  ;;  %v6464_v7 = vld [vmem:[#allocation16 + $0x240] ss:$28 sps:$4 sm:$0xff]  }
 0x5be   :  { %4789 = vmatprep.subr.bf16.mxu0 %v6391_v9  ;;  %v6467_v8 = vld [vmem:[#allocation16 + $0x5c0] ss:$28 sps:$4 sm:$0xff]   ;;  %v6472_v9 = vld [vmem:[#allocation16 + $0x20c] ss:$28 sps:$4 sm:$0xff]  }
 0x5bf   :  { %4699 = vmatmul.mubr.bf16.vlgmr.msra.gmra.mxu1 %v7031_v1 }
 0x5c0   :  { %4740 = vmatmul.mubr.bf16.vlgmr.msra.gmra.mxu0 %v7035_v50  ;;  %4749 = vmatpush1.bf16.msra.mxu1 %v6386_v12  ;;  %v6475_v12 = vld [vmem:[#allocation16 + $0x58c] ss:$28 sps:$4 sm:$0xff]  }
 0x5c1   :  { %4780 = vmatprep.mubr.bf16.mxu1 %v7029_v62  ;;  %4790 = vmatpush1.bf16.msra.mxu0 %v6389_v13  ;;  %v6470_v13 = vld [vmem:[#allocation16 + $0x208] ss:$28 sps:$4 sm:$0xff]  }
 0x5c2   :  { %4821 = vmatprep.mubr.bf16.mxu0 %v7033_v2  ;;  %4750 = vmatprep.subr.bf16.mxu1 %v6394_v40  ;;  %v6473_v40 = vld [vmem:[#allocation16 + $0x588] ss:$28 sps:$4 sm:$0xff]  }
 0x5c3   :  { %4791 = vmatprep.subr.bf16.mxu0 %v6397_v14  ;;  %v6478_v14 = vld [vmem:[#allocation16 + $0x1d4] ss:$28 sps:$4 sm:$0xff]  }
 0x5c4   :  { %4751 = vmatpush1.bf16.msra.mxu1 %v6392_v15  ;;  %v6481_v15 = vld [vmem:[#allocation16 + $0x554] ss:$28 sps:$4 sm:$0xff]  }
 0x5c5   :  { %4792 = vmatpush1.bf16.msra.mxu0 %v6395_v16  ;;  %4752 = vmatprep.subr.bf16.mxu1 %v6400_v17  ;;  %v6476_v16 = vld [vmem:[#allocation16 + $0x1d0] ss:$28 sps:$4 sm:$0xff]  }
 0x5c6   :  { %4793 = vmatprep.subr.bf16.mxu0 %v6403_v18  ;;  %v6479_v17 = vld [vmem:[#allocation16 + $0x550] ss:$28 sps:$4 sm:$0xff]   ;;  %v6482_v18 = vld [vmem:[#allocation16 + $0x360] ss:$28 sps:$4 sm:$0xff]  }
 0x5c8   :  { %4753 = vmatpush1.bf16.msra.mxu1 %v6398_v19  ;;  %v6483_v19 = vld [vmem:[#allocation16 + $0x6e0] ss:$28 sps:$4 sm:$0xff]  }
 0x5c9   :  { %4794 = vmatpush1.bf16.msra.mxu0 %v6401_v20  ;;  %4754 = vmatprep.subr.bf16.mxu1 %v6406_v22  ;;  %v6484_v20 = vld [vmem:[#allocation16 + $0x1a0] ss:$28 sps:$4 sm:$0xff]  }
 0x5ca   :  { %4795 = vmatprep.subr.bf16.mxu0 %v6409_v25  ;;  %v6485_v22 = vld [vmem:[#allocation16 + $0x520] ss:$28 sps:$4 sm:$0xff]   ;;  %v6486_v25 = vld [vmem:[#allocation16 + $0x328] ss:$28 sps:$4 sm:$0xff]  }
 0x5cc   :  { %4755 = vmatpush1.bf16.msra.mxu1 %v6404_v26  ;;  %v6487_v26 = vld [vmem:[#allocation16 + $0x6a8] ss:$28 sps:$4 sm:$0xff]  }
 0x5cd   :  { %4796 = vmatpush1.bf16.msra.mxu0 %v6407_v29  ;;  %4756 = vmatprep.subr.bf16.mxu1 %v6412_v23  ;;  %v6488_v29 = vld [vmem:[#allocation16 + $0x168] ss:$28 sps:$4 sm:$0xff]  }
 0x5ce   :  { %4797 = vmatprep.subr.bf16.mxu0 %v6415_v30  ;;  %v6489_v23 = vld [vmem:[#allocation16 + $0x4e8] ss:$28 sps:$4 sm:$0xff]   ;;  %v6490_v30 = vld [vmem:[#allocation16 + $0x2f0] ss:$28 sps:$4 sm:$0xff]  }
 0x5d0   :  { %4757 = vmatpush1.bf16.msra.mxu1 %v6410_v27  ;;  %v6491_v27 = vld [vmem:[#allocation16 + $0x670] ss:$28 sps:$4 sm:$0xff]  }
 0x5d1   :  { %4798 = vmatpush1.bf16.msra.mxu0 %v6413_v24  ;;  %4758 = vmatprep.subr.bf16.mxu1 %v6418_v31  ;;  %v6492_v24 = vld [vmem:[#allocation16 + $0x130] ss:$28 sps:$4 sm:$0xff]  }
 0x5d2   :  { %4799 = vmatprep.subr.bf16.mxu0 %v6421_v28  ;;  %v6493_v31 = vld [vmem:[#allocation16 + $0x4b0] ss:$28 sps:$4 sm:$0xff]   ;;  %v6494_v28 = vld [vmem:[#allocation16 + $0x2b8] ss:$28 sps:$4 sm:$0xff]  }
 0x5d4   :  { %4759 = vmatpush1.bf16.msra.mxu1 %v6416_v32  ;;  %v6495_v32 = vld [vmem:[#allocation16 + $0x638] ss:$28 sps:$4 sm:$0xff]  }
 0x5d5   :  { %4800 = vmatpush1.bf16.msra.mxu0 %v6419_v33  ;;  %4760 = vmatprep.subr.bf16.mxu1 %v6424_v34  ;;  %v6496_v33 = vld [vmem:[#allocation16 + $0xf8] ss:$28 sps:$4 sm:$0xff]   ;;  %v6498_v34 = vld [vmem:[#allocation16 + $0x280] ss:$28 sps:$4 sm:$0xff]  }
 0x5d6   :  { %4801 = vmatprep.subr.bf16.mxu0 %v6427_v35  ;;  %v6499_v35 = vld [vmem:[#allocation16 + $0x600] ss:$28 sps:$4 sm:$0xff]  }
 0x5d8   :  { %4761 = vmatpush1.bf16.msra.mxu1 %v6422_v36  ;;  %v6501_v36 = vld [vmem:[#allocation16 + $0x440] ss:$28 sps:$4 sm:$0xff]  }
 0x5d9   :  { %4802 = vmatpush1.bf16.msra.mxu0 %v6425_v37  ;;  %4762 = vmatprep.subr.bf16.mxu1 %v6430_v38  ;;  %v6502_v37 = vld [vmem:[#allocation16 + $0x248] ss:$28 sps:$4 sm:$0xff]  }
 0x5da   :  { %4803 = vmatprep.subr.bf16.mxu0 %v6433_v53  ;;  %v6503_v38 = vld [vmem:[#allocation16 + $0x5c8] ss:$28 sps:$4 sm:$0xff]  }
 0x5db   :  { %v6504_v53 = vld [vmem:[#allocation16 + $0x88] ss:$28 sps:$4 sm:$0xff]  }
 0x5dc   :  { %4763 = vmatpush1.bf16.msra.mxu1 %v6428_v42  ;;  %v6505_v42 = vld [vmem:[#allocation16 + $0x408] ss:$28 sps:$4 sm:$0xff]  }
 0x5dd   :  { %4804 = vmatpush1.bf16.msra.mxu0 %v6431_v43  ;;  %4764 = vmatprep.subr.bf16.mxu1 %v6436_v44  ;;  %v6506_v43 = vld [vmem:[#allocation16 + $0x210] ss:$28 sps:$4 sm:$0xff]  }
 0x5de   :  { %4805 = vmatprep.subr.bf16.mxu0 %v6439_v0  ;;  %v6507_v44 = vld [vmem:[#allocation16 + $0x590] ss:$28 sps:$4 sm:$0xff]  }
 0x5df   :  { %v6508_v0 = vld [vmem:[#allocation16 + $0x50] ss:$28 sps:$4 sm:$0xff]  }
 0x5e0   :  { %4765 = vmatpush2.bf16.msra.mxu1 %v6434_v45  ;;  %v6509_v45 = vld [vmem:[#allocation16 + $0x3d0] ss:$28 sps:$4 sm:$0xff]  }
 0x5e1   :  { %4806 = vmatpush2.bf16.msra.mxu0 %v6437_v46  ;;  %4766 = vmatprep.subr.bf16.mxu1 %v6442_v47  ;;  %v6510_v46 = vld [vmem:[#allocation16 + $0x1d8] ss:$28 sps:$4 sm:$0xff]  }
 0x5e2   :  { %4807 = vmatprep.subr.bf16.mxu0 %v6445_v49  ;;  %v6511_v47 = vld [vmem:[#allocation16 + $0x558] ss:$28 sps:$4 sm:$0xff]  }
 0x5e3   :  { %v6512_v49 = vld [vmem:[#allocation16 + $0x18] ss:$28 sps:$4 sm:$0xff]  }
 0x5e4   :  { %4767 = vmatpush2.bf16.msra.mxu1 %v6440_v51  ;;  %v6513_v51 = vld [vmem:[#allocation16 + $0x398] ss:$28 sps:$4 sm:$0xff]  }
 0x5e5   :  { %4808 = vmatpush2.bf16.msra.mxu0 %v6443_v52  ;;  %4768 = vmatprep.subr.bf16.mxu1 %v6448_v54  ;;  %v7056_v52 = vld [vmem:[%s7088_s13] sm:$0xff]  ;;  %s6759_s13 = smov [#allocation17]  }
 0x5e6   :  { %4809 = vmatprep.subr.bf16.mxu0 %v6451_v56  ;;  %v3400_v54 = vrot.slane %v7056_v52, %v6930_v48  ;;  %v3404_v56 = vrot.slane %v7056_v52, %v6933_v6  ;;  %s4951_s10 = sshll.u32 %s6759_s13, 4  ;;  %s4952_s10 = int_to_ptr.vmem [resolvable:$true] %s4951_s10 }
 0x5e7   :  { %s6708_s30 = scalar_lea.vmem %s4952_s10, 896  ;;  %p6713_p4 = scmp.lt.s32.totalorder %s4952_s10, %s4952_s10 }
 0x5e8   :  { %4769 = vmatpush2.bf16.msra.mxu1 %v6446_v57  ;;  %p6709_p3 = scmp.ne.s32.totalorder %s4952_s10, %s6708_s30  ;;  %p6714_p5 = scmp.lt.s32.totalorder %s6708_s30, %s6708_s30 }
 0x5e9   :  { %4810 = vmatpush2.bf16.msra.mxu0 %v6449_v55  ;;  %4770 = vmatprep.subr.bf16.mxu1 %v6454_v58 }
 0x5ea   :  { %4811 = vmatprep.subr.bf16.mxu0 %v6457_v59  ;;  %p6715_p6 = por %p6714_p5, %p6713_p4 }
 0x5ec   :  { %4771 = vmatpush2.bf16.msra.mxu1 %v6452_v61  ;;  %p6716_p7 = pnand %p6715_p6, %p6709_p3 }
 0x5ed   :  { %4812 = vmatpush2.bf16.msra.mxu0 %v6455_v63  ;;  %4772 = vmatprep.subr.bf16.mxu1 %v6460_v11 }
 0x5ee   :  { %4813 = vmatprep.subr.bf16.mxu0 %v6463_v3 }
 0x5f0   :  { %4773 = vmatpush2.bf16.msra.mxu1 %v6458_v4 }
 0x5f1   :  { %4814 = vmatpush2.bf16.msra.mxu0 %v6461_v5  ;;  %4774 = vmatprep.subr.bf16.mxu1 %v6466_v10 }
 0x5f2   :  { %4815 = vmatprep.subr.bf16.mxu0 %v6469_v21 }
 0x5f4   :  { %4775 = vmatpush2.bf16.msra.mxu1 %v6464_v7 }
 0x5f5   :  { %4816 = vmatpush2.bf16.msra.mxu0 %v6467_v8  ;;  %4776 = vmatprep.subr.bf16.mxu1 %v6472_v9 }
 0x5f6   :  { %4817 = vmatprep.subr.bf16.mxu0 %v6475_v12 }
 0x5f8   :  { %4777 = vmatpush2.bf16.msra.mxu1 %v6470_v13  ;;  %v3408_v13 = vrot.slane %v7056_v52, %v6951_v39 }
 0x5f9   :  { %4818 = vmatpush2.bf16.msra.mxu0 %v6473_v40  ;;  %4778 = vmatprep.subr.bf16.mxu1 %v6478_v14  ;;  %v3412_v40 = vrot.slane %v7056_v52, %v6957_v41 }
 0x5fa   :  { %4819 = vmatprep.subr.bf16.mxu0 %v6481_v15 }
 0x5fc   :  { %4779 = vmatpush2.bf16.msra.mxu1 %v6476_v16 }
 0x5fd   :  { %4820 = vmatpush2.bf16.msra.mxu0 %v6479_v17  ;;  %5583 = vmatprep.subr.bf16.mxu1 %v6482_v18 }
 0x5fe   :  { %5605 = vmatprep.subr.bf16.mxu0 %v6483_v19 }
 0x5ff   :  { %4781 = vmatmul.mubr.bf16.vlgmr.msra.gmra.mxu1 %v7031_v1 }
 0x600   :  { %4822 = vmatmul.mubr.bf16.vlgmr.msra.gmra.mxu0 %v7035_v50  ;;  %5584 = vmatpush3.bf16.msra.mxu1 %v6484_v20 }
 0x601   :  { %4862 = vmatprep.mubr.bf16.mxu1 %v7029_v62  ;;  %5606 = vmatpush3.bf16.msra.mxu0 %v6485_v22  ;;  %v6497_v62 = vld [vmem:[#allocation16 + $0x478] ss:$28 sps:$4 sm:$0xff]  }
 0x602   :  { %4902 = vmatprep.mubr.bf16.mxu0 %v7033_v2  ;;  %5585 = vmatprep.subr.bf16.mxu1 %v6486_v25  ;;  %v6500_v2 = vld [vmem:[#allocation16 + $0xc0] ss:$28 sps:$4 sm:$0xff]  }
 0x603   :  { %5607 = vmatprep.subr.bf16.mxu0 %v6487_v26 }
 0x604   :  { %5586 = vmatpush3.bf16.msra.mxu1 %v6488_v29 }
 0x605   :  { %5608 = vmatpush3.bf16.msra.mxu0 %v6489_v23  ;;  %5587 = vmatprep.subr.bf16.mxu1 %v6490_v30 }
 0x606   :  { %5609 = vmatprep.subr.bf16.mxu0 %v6491_v27 }
 0x608   :  { %5588 = vmatpush3.bf16.msra.mxu1 %v6492_v24 }
 0x609   :  { %5610 = vmatpush3.bf16.msra.mxu0 %v6493_v31  ;;  %5589 = vmatprep.subr.bf16.mxu1 %v6494_v28 }
 0x60a   :  { %5611 = vmatprep.subr.bf16.mxu0 %v6495_v32 }
 0x60c   :  { %5590 = vmatpush3.bf16.msra.mxu1 %v6496_v33  ;;  %v3415_v33 = vsub.s32 4, %v6927_v60 }
 0x60d   :  { %5612 = vmatpush3.bf16.msra.mxu0 %v6497_v62  ;;  %5591 = vmatprep.subr.bf16.mxu1 %v6498_v34  ;;  %v3419_v62 = vsub.s32 5, %v6927_v60 }
 0x60e   :  { %5613 = vmatprep.subr.bf16.mxu0 %v6499_v35  ;;  %v3416_v34 = vrot.slane %v7056_v52, %v3415_v33 }
 0x60f   :  { %v3420_v35 = vrot.slane %v7056_v52, %v3419_v62 }
 0x610   :  { %5592 = vmatpush3.bf16.msra.mxu1 %v6500_v2 }
 0x611   :  { %5614 = vmatpush3.bf16.msra.mxu0 %v6501_v36  ;;  %5593 = vmatprep.subr.bf16.mxu1 %v6502_v37 }
 0x612   :  { %5615 = vmatprep.subr.bf16.mxu0 %v6503_v38 }
 0x614   :  { %5594 = vmatpush3.bf16.msra.mxu1 %v6504_v53 }
 0x615   :  { %5616 = vmatpush3.bf16.msra.mxu0 %v6505_v42  ;;  %5595 = vmatprep.subr.bf16.mxu1 %v6506_v43 }
 0x616   :  { %5617 = vmatprep.subr.bf16.mxu0 %v6507_v44 }
 0x618   :  { %5596 = vmatpush3.bf16.msra.mxu1 %v6508_v0 }
 0x619   :  { %5618 = vmatpush3.bf16.msra.mxu0 %v6509_v45  ;;  %5597 = vmatprep.subr.bf16.mxu1 %v6510_v46 }
 0x61a   :  { %5619 = vmatprep.subr.bf16.mxu0 %v6511_v47 }
 0x61c   :  { %5598 = vmatpush3.bf16.msra.mxu1 %v6512_v49 }
 0x61d   :  { %5620 = vmatpush3.bf16.msra.mxu0 %v6513_v51 }
 0x61f   :  { %4863 = vmatmul.mubr.bf16.vlgmr.msra.gmra.mxu1 %v7031_v1 }
 0x620   :  { %4903 = vmatmul.mubr.bf16.vlgmr.msra.gmra.mxu0 %v7035_v50 }
 0x63f   :  { %v4618_v57 = vpop.f32.mrf.mxu1 }
 0x640   :  { %v4619_v55 = vadd.f32 %v4618_v57, %v3400_v54  ;;  %v4659_v58 = vpop.f32.mrf.mxu0 }
 0x641   :  { %v4620_v59 = vpop.f32.mrf.mxu1 }
 0x642   :  { %v4660_v61 = vadd.f32 %v4659_v58, %v4619_v55  ;;  %v4621_v63 = vadd.f32 %v4620_v59, %v3404_v56  ;;  %v4661_v1 = vpop.f32.mrf.mxu0 }
 0x643   :  { %v4622_v11 = vpop.f32.mrf.mxu1 }
 0x644   :  { %v4910_v50 = vmul.f32 0.5, %v4660_v61  ;;  %v4662_v3 = vadd.f32 %v4661_v1, %v4621_v63  ;;  %v4663_v4 = vpop.f32.mrf.mxu0  ;;  %v3423_v61 = vsub.s32 6, %v6927_v60 }
 0x645   :  { %v4623_v5 = vpop.f32.mrf.mxu1 }
 0x646   :  { %6514 = vtanh.f32 %v4910_v50  ;;  %v4911_v10 = vmul.f32 0.5, %v4662_v3  ;;  %v4664_v21 = vpop.f32.mrf.mxu0  ;;  %v3424_v11 = vrot.slane %v7056_v52, %v3423_v61 }
 0x648   :  { %6516 = vtanh.f32 %v4911_v10 }
 0x653   :  { %v6515_v48 = vpop.eup %6514 }
 0x654   :  { %v4924_v7 = vadd.f32 1.0, %v6515_v48 }
 0x655   :  { %v6517_v8 = vpop.eup %6516 }
 0x656   :  { %v4931_v6 = vmul.f32 0.5, %v4924_v7  ;;  %v4925_v9 = vadd.f32 1.0, %v6517_v8 }
 0x658   :  { %4938 = vst [vmem:[#allocation17] sm:$0xff] %v4931_v6  ;;  %v4932_v12 = vmul.f32 0.5, %v4925_v9 }
 0x65a   :  { %4939 = vst [vmem:[#allocation17 + $0x8] sm:$0xff] %v4932_v12 }
 0x67f   :  { %v4700_v14 = vpop.f32.mrf.mxu1 }
 0x680   :  { %v4701_v15 = vadd.f32 %v4700_v14, %v3408_v13  ;;  %v4741_v16 = vpop.f32.mrf.mxu0 }
 0x681   :  { %v4702_v17 = vpop.f32.mrf.mxu1 }
 0x682   :  { %v4742_v18 = vadd.f32 %v4741_v16, %v4701_v15  ;;  %v4703_v19 = vadd.f32 %v4702_v17, %v3412_v40  ;;  %v4743_v20 = vpop.f32.mrf.mxu0 }
 0x683   :  { %v4704_v22 = vpop.f32.mrf.mxu1 }
 0x684   :  { %v4912_v25 = vmul.f32 0.5, %v4742_v18  ;;  %v4744_v26 = vadd.f32 %v4743_v20, %v4703_v19  ;;  %v4745_v29 = vpop.f32.mrf.mxu0 }
 0x685   :  { %v4705_v23 = vpop.f32.mrf.mxu1 }
 0x686   :  { %6518 = vtanh.f32 %v4912_v25  ;;  %v4913_v30 = vmul.f32 0.5, %v4744_v26  ;;  %v4746_v27 = vpop.f32.mrf.mxu0 }
 0x688   :  { %6520 = vtanh.f32 %v4913_v30 }
 0x693   :  { %v6519_v39 = vpop.eup %6518 }
 0x694   :  { %v4926_v24 = vadd.f32 1.0, %v6519_v39 }
 0x695   :  { %v6521_v31 = vpop.eup %6520 }
 0x696   :  { %v4933_v41 = vmul.f32 0.5, %v4926_v24  ;;  %v4927_v28 = vadd.f32 1.0, %v6521_v31 }
 0x698   :  { %4940 = vst [vmem:[#allocation17 + $0x10] sm:$0xff] %v4933_v41  ;;  %v4934_v32 = vmul.f32 0.5, %v4927_v28 }
 0x69a   :  { %4941 = vst [vmem:[#allocation17 + $0x18] sm:$0xff] %v4934_v32 }
 0x6bf   :  { %v4782_v2 = vpop.f32.mrf.mxu1 }
 0x6c0   :  { %v4783_v36 = vadd.f32 %v4782_v2, %v3416_v34  ;;  %v4823_v37 = vpop.f32.mrf.mxu0 }
 0x6c1   :  { %v4784_v38 = vpop.f32.mrf.mxu1 }
 0x6c2   :  { %v4824_v53 = vadd.f32 %v4823_v37, %v4783_v36  ;;  %v4785_v42 = vadd.f32 %v4784_v38, %v3420_v35  ;;  %v4825_v43 = vpop.f32.mrf.mxu0 }
 0x6c3   :  { %v4786_v44 = vpop.f32.mrf.mxu1 }
 0x6c4   :  { %v4914_v0 = vmul.f32 0.5, %v4824_v53  ;;  %v4826_v45 = vadd.f32 %v4825_v43, %v4785_v42  ;;  %v4827_v46 = vpop.f32.mrf.mxu0 }
 0x6c5   :  { %v4787_v47 = vpop.f32.mrf.mxu1 }
 0x6c6   :  { %6522 = vtanh.f32 %v4914_v0  ;;  %v4915_v49 = vmul.f32 0.5, %v4826_v45  ;;  %v4828_v51 = vpop.f32.mrf.mxu0 }
 0x6c8   :  { %6524 = vtanh.f32 %v4915_v49 }
 0x6d3   :  { %v6523_v54 = vpop.eup %6522 }
 0x6d4   :  { %v4928_v56 = vadd.f32 1.0, %v6523_v54 }
 0x6d5   :  { %v6525_v57 = vpop.eup %6524 }
 0x6d6   :  { %v4935_v55 = vmul.f32 0.5, %v4928_v56  ;;  %v4929_v58 = vadd.f32 1.0, %v6525_v57 }
 0x6d8   :  { %4942 = vst [vmem:[#allocation17 + $0x20] sm:$0xff] %v4935_v55  ;;  %v4936_v59 = vmul.f32 0.5, %v4929_v58 }
 0x6da   :  { %4943 = vst [vmem:[#allocation17 + $0x28] sm:$0xff] %v4936_v59 }
 0x6df   :  { %v5599_v63 = vpop.f32.mrf.mxu1 }
 0x6e0   :  { %v5621_v1 = vpop.f32.mrf.mxu0 }
 0x6e1   :  { %v5600_v50 = vpop.f32.mrf.mxu1 }
 0x6e2   :  { %v5601_v3 = vadd.f32 %v5600_v50, %v5599_v63  ;;  %v5622_v4 = vpop.f32.mrf.mxu0 }
 0x6e3   :  { %v5602_v5 = vpop.f32.mrf.mxu1  ;;  %v5623_v21 = vadd.f32 %v5622_v4, %v5621_v1 }
 0x6e4   :  { %v4865_v10 = vadd.f32 %v5601_v3, %v3424_v11  ;;  %v5624_v48 = vpop.f32.mrf.mxu0 }
 0x6e5   :  { %v5603_v7 = vpop.f32.mrf.mxu1 }
 0x6e6   :  { %v4905_v8 = vadd.f32 %v5623_v21, %v4865_v10  ;;  %v5625_v6 = vpop.f32.mrf.mxu0 }
 0x6e8   :  { %v4916_v9 = vmul.f32 0.5, %v4905_v8 }
 0x6ea   :  { %6526 = vtanh.f32 %v4916_v9 }
 0x6f7   :  { %v6527_v12 = vpop.eup %6526 }
 0x6f8   :  { %v4930_v60 = vadd.f32 1.0, %v6527_v12 }
 0x6fa   :  { %v4937_v13 = vmul.f32 0.5, %v4930_v60 }
 0x6fc   :  { %4944 = vst [vmem:[#allocation17 + $0x30] sm:$0xff] %v4937_v13 }
 0x6fd   :  { %6719 = shalt.err (!%p6716_p7)
}
 0x6fe   :  { %4954 = dma.vmem_to_hbm [thread:$0]  %s4952_s10, 896, %s7089_s14, [#allocation4]  }
 0x6ff   :  { %6738 = dma.done.wait [#allocation4], 896  }
 0x700   :  { %6739 = vsyncadd [#allocation4], 4294966400 }
 0x701   :  { %4962 = vsyncpa [#allocation3], 1 }
 0x702   :  { %4963 = vsyncpa [#allocation6], 1 }
 0x703   :  { %4964 = vsyncpa [#allocation9], 1 }
 0x704   :  { %4965 = vsyncpa [#allocation12], 1 }
 0x705   :  { %4966 = vsyncpa [#allocation15], 1 }
 0x706   :  { %4967 = vsyncpa [#allocation4], 1 }

</bundles_post_ra>
